<compile_context>
chip_gen: v6e
topology: v6e:2x2x1
jax: 0.10.0
libtpu: 0.0.40
codegen_flags: <defaults>
</compile_context>

<pallas_src>
import functools

import jax
import jax.numpy as jnp
from jax.experimental import pallas as pl
from jax.experimental.pallas import tpu as pltpu

COMPUTE_DTYPE = jnp.bfloat16  # MXU-native on v5e/v6e/v7x; accumulation is f32.


def _round_up(x, m):
    return (x + m - 1) // m * m


def _pick_tm(M, tm_target=256):
    """(Mp, tm). Sublane quantum is 16 for bf16 operands."""
    Mp = _round_up(M, 16)
    if Mp <= tm_target:
        return Mp, Mp
    return _round_up(M, tm_target), tm_target


def _pick_tk(Kp, max_tk=2048):
    """Largest multiple of 128 that divides Kp and is <= max_tk (no zero K tail)."""
    assert Kp % 128 == 0
    best = 128
    for t in range(128, min(Kp, max_tk) + 1, 128):
        if Kp % t == 0:
            best = t
    return best


# ---------------------------------------------------------------------------
# Pallas kernel 1: matmul + fused bias-add (+ optional ReLU).
# Grid = (M tiles [parallel], K steps [arbitrary]); accumulates directly in the
# resident output block (no scratch accumulator).
# ---------------------------------------------------------------------------
def _mm_bias_kernel(a_ref, b_ref, bias_ref, o_ref, *, relu, nsteps):
    if nsteps == 1:  # single K step: no accumulation needed, keep f32 until store
        out = jnp.dot(a_ref[...], b_ref[...], preferred_element_type=jnp.float32)
        out = out + bias_ref[...]
        if relu:
            out = jnp.maximum(out, 0.0)
        o_ref[...] = out.astype(o_ref.dtype)
        return

    k = pl.program_id(1)

    @pl.when(k == 0)
    def _():
        o_ref[...] = jnp.zeros_like(o_ref)

    o_ref[...] += jnp.dot(a_ref[...], b_ref[...], preferred_element_type=jnp.float32)

    @pl.when(k == nsteps - 1)
    def _():
        out = o_ref[...] + bias_ref[...]
        if relu:
            out = jnp.maximum(out, 0.0)
        o_ref[...] = out


def matmul_bias(a, b_p, bias_p, *, n_valid, relu, out_dtype=jnp.float32,
                tm_target=256, max_tk=2048):
    """y = a @ b + bias (optionally ReLU'd). b_p / bias_p are pre-padded."""
    M, K = a.shape
    Kp, Np = b_p.shape
    assert K <= Kp and bias_p.shape == (1, Np)

    Mp, tm = _pick_tm(M, tm_target)
    tk = _pick_tk(Kp, max_tk)
    nsteps = Kp // tk
    assert nsteps == 1 or out_dtype == jnp.float32  # multi-step accumulates in o_ref

    a = a.astype(b_p.dtype)
    if (Mp, Kp) != (M, K):  # pad activations only when actually needed
        a = jnp.zeros((Mp, Kp), b_p.dtype).at[:M, :K].set(a)

    out = pl.pallas_call(
        functools.partial(_mm_bias_kernel, relu=relu, nsteps=nsteps),
        out_shape=jax.ShapeDtypeStruct((Mp, Np), out_dtype),
        grid_spec=pltpu.PrefetchScalarGridSpec(
            num_scalar_prefetch=0,
            grid=(Mp // tm, nsteps),
            in_specs=[
                pl.BlockSpec((tm, tk), lambda i, k: (i, k)),
                pl.BlockSpec((tk, Np), lambda i, k: (k, 0)),
                pl.BlockSpec((1, Np), lambda i, k: (0, 0)),
            ],
            out_specs=pl.BlockSpec((tm, Np), lambda i, k: (i, 0)),
        ),
        compiler_params=pltpu.CompilerParams(
            dimension_semantics=("parallel", "arbitrary"),
        ),
    )(a, b_p, bias_p)
    return out[:M, :n_valid]


# ---------------------------------------------------------------------------
# Pallas kernel 2: fused fc1 (K-tiled) + ReLU + fc2 + bias.
# ---------------------------------------------------------------------------
def _fc_fused_kernel(a_ref, w1_ref, b1_ref, w2_ref, b2_ref, o_ref, h_ref, *, nsteps):
    k = pl.program_id(1)

    @pl.when(k == 0)
    def _():
        h_ref[...] = jnp.zeros_like(h_ref)

    h_ref[...] += jnp.dot(a_ref[...], w1_ref[...], preferred_element_type=jnp.float32)

    @pl.when(k == nsteps - 1)
    def _():
        h = jnp.maximum(h_ref[...] + b1_ref[...], 0.0)         # fc1 + ReLU
        q = jnp.dot(h.astype(w2_ref.dtype), w2_ref[...],
                    preferred_element_type=jnp.float32)        # fc2
        o_ref[...] = q + b2_ref[...]


def fc_fused(a, w1_p, b1_p, w2_p, b2_p, *, n_out, tm_target=256, max_tk=2048):
    M, K = a.shape
    Kp, H = w1_p.shape
    H2, Na = w2_p.shape
    assert K == Kp and H == H2 and b1_p.shape == (1, H) and b2_p.shape == (1, Na)

    Mp, tm = _pick_tm(M, tm_target)
    tk = _pick_tk(Kp, max_tk)
    nsteps = Kp // tk

    a = a.astype(w1_p.dtype)
    if Mp != M:
        a = jnp.zeros((Mp, Kp), w1_p.dtype).at[:M, :].set(a)

    out = pl.pallas_call(
        functools.partial(_fc_fused_kernel, nsteps=nsteps),
        out_shape=jax.ShapeDtypeStruct((Mp, Na), jnp.float32),
        grid_spec=pltpu.PrefetchScalarGridSpec(
            num_scalar_prefetch=0,
            grid=(Mp // tm, nsteps),
            in_specs=[
                pl.BlockSpec((tm, tk), lambda i, k: (i, k)),
                pl.BlockSpec((tk, H), lambda i, k: (k, 0)),
                pl.BlockSpec((1, H), lambda i, k: (0, 0)),
                pl.BlockSpec((H, Na), lambda i, k: (0, 0)),
                pl.BlockSpec((1, Na), lambda i, k: (0, 0)),
            ],
            out_specs=pl.BlockSpec((tm, Na), lambda i, k: (i, 0)),
            scratch_shapes=[pltpu.VMEM((tm, H), jnp.float32)],
        ),
        compiler_params=pltpu.CompilerParams(
            dimension_semantics=("parallel", "arbitrary"),
        ),
    )(a, w1_p, b1_p, w2_p, b2_p)
    return out[:M, :n_out]


# ---------------------------------------------------------------------------
# Convolution = im2col (XLA glue, bf16) + Pallas matmul kernel.
# ---------------------------------------------------------------------------
def _im2col(x_nhwc, k, stride, pad):
    B, Hh, Ww, C = x_nhwc.shape
    xp = jnp.pad(x_nhwc, ((0, 0), (pad, pad), (pad, pad), (0, 0)))
    OH = (Hh + 2 * pad - k) // stride + 1
    OW = (Ww + 2 * pad - k) // stride + 1
    cols = []
    for di in range(k):
        for dj in range(k):
            cols.append(xp[:, di:di + (OH - 1) * stride + 1:stride,
                           dj:dj + (OW - 1) * stride + 1:stride, :])
    patches = jnp.stack(cols, axis=3)  # (B, OH, OW, k*k, C)
    return patches.reshape(B * OH * OW, k * k * C), OH, OW


def conv2d_relu(x_nhwc, w_p, b_p, *, k, stride, pad, cout):
    B = x_nhwc.shape[0]
    patches, OH, OW = _im2col(x_nhwc, k, stride, pad)
    y = matmul_bias(patches, w_p, b_p, n_valid=cout, relu=True,
                    out_dtype=x_nhwc.dtype)
    return y.reshape(B, OH, OW, cout)


# ---------------------------------------------------------------------------
# Parameters: PyTorch-layout init + one-time prep (hoisted weight transforms).
# ---------------------------------------------------------------------------
def init_params(key, in_channels=4, out_actions=2):
    ks = jax.random.split(key, 10)

    def _w(k, shape, fan_in):
        return jax.random.normal(k, shape, jnp.float32) / jnp.sqrt(float(fan_in))

    return {
        # conv weights in PyTorch OIHW layout
        "conv1_w": _w(ks[0], (32, in_channels, 8, 8), in_channels * 8 * 8),
        "conv1_b": _w(ks[1], (32,), 32),
        "conv2_w": _w(ks[2], (64, 32, 4, 4), 32 * 4 * 4),
        "conv2_b": _w(ks[3], (64,), 64),
        "conv3_w": _w(ks[4], (64, 64, 3, 3), 64 * 3 * 3),
        "conv3_b": _w(ks[5], (64,), 64),
        # fc weights in PyTorch (out, in) layout
        "fc1_w": _w(ks[6], (512, 6400), 6400),
        "fc1_b": _w(ks[7], (512,), 512),
        "fc2_w": _w(ks[8], (out_actions, 512), 512),
        "fc2_b": _w(ks[9], (out_actions,), out_actions),
    }


def prepare_params(params, compute_dtype=COMPUTE_DTYPE):
    """One-time weight prep: transposes, K/N zero-padding, bf16 cast, and the
    fc1 row permutation from NCHW-flatten to NHWC-flatten order (so the forward
    pass needs no activation transpose before fc1). Returns (weights, meta)."""
    weights, meta = {}, {}

    conv_cfg = {"conv1": (4, 2), "conv2": (2, 1), "conv3": (1, 1)}
    for name, (stride, pad) in conv_cfg.items():
        w = params[name + "_w"]  # (Cout, Cin, kh, kw)
        b = params[name + "_b"]
        cout, cin, kh, kw = w.shape
        K = kh * kw * cin
        Kp, Np = _round_up(K, 128), _round_up(cout, 128)
        w_mat = jnp.transpose(w, (2, 3, 1, 0)).reshape(K, cout)  # match im2col order
        weights[name + "_w"] = (jnp.zeros((Kp, Np), compute_dtype)
                                .at[:K, :cout].set(w_mat.astype(compute_dtype)))
        weights[name + "_b"] = (jnp.zeros((1, Np), jnp.float32)
                                .at[0, :cout].set(b))
        meta[name] = {"k": kh, "stride": stride, "pad": pad, "cout": cout}

    # fc1: (512, 6400) -> (6400, 512), rows reordered for NHWC flatten.
    c3 = params["conv3_w"].shape[0]
    fc1_out, fc1_in = params["fc1_w"].shape
    assert fc1_in % 128 == 0 and fc1_out % 128 == 0
    side = int(round((fc1_in // c3) ** 0.5))
    assert side * side * c3 == fc1_in
    w1 = params["fc1_w"].T.reshape(c3, side, side, fc1_out)        # (C,H,W,512)
    w1 = jnp.transpose(w1, (1, 2, 0, 3)).reshape(fc1_in, fc1_out)  # (H*W*C, 512)
    weights["fc1_w"] = w1.astype(compute_dtype)
    weights["fc1_b"] = params["fc1_b"].reshape(1, fc1_out).astype(jnp.float32)

    # fc2: (A, 512) -> (512, A) padded to (512, 128).
    out_actions = params["fc2_w"].shape[0]
    Na = _round_up(out_actions, 128)
    weights["fc2_w"] = (jnp.zeros((fc1_out, Na), compute_dtype)
                        .at[:, :out_actions].set(params["fc2_w"].T.astype(compute_dtype)))
    weights["fc2_b"] = (jnp.zeros((1, Na), jnp.float32)
                        .at[0, :out_actions].set(params["fc2_b"]))
    meta["out_actions"] = out_actions
    return weights, meta


def dqn_forward(weights, x_nchw, meta):
    compute_dtype = weights["conv1_w"].dtype
    # NCHW (PyTorch) -> NHWC (internal), bf16 activations through the convs.
    x = jnp.transpose(x_nchw, (0, 2, 3, 1)).astype(compute_dtype)
    for name in ("conv1", "conv2", "conv3"):
        m = meta[name]
        x = conv2d_relu(x, weights[name + "_w"], weights[name + "_b"],
                        k=m["k"], stride=m["stride"], pad=m["pad"], cout=m["cout"])
    B = x.shape[0]
    feats = x.reshape(B, -1)  # NHWC flatten; fc1 rows were pre-permuted to match
    return fc_fused(feats, weights["fc1_w"], weights["fc1_b"],
                    weights["fc2_w"], weights["fc2_b"],
                    n_out=meta["out_actions"])  # (B, out_actions) f32


if __name__ == "__main__":
    key = jax.random.PRNGKey(0)
    k_param, k_x = jax.random.split(key)
    params = init_params(k_param, in_channels=4, out_actions=2)
    weights, meta = prepare_params(params)  # one-time, hoisted out of forward
    jax.block_until_ready(weights)

    # fc1 expects 6400 = 64*10*10 features, which implies 80x80 spatial input.
    x = jax.random.normal(k_x, (2, 4, 80, 80), jnp.float32)

    forward = jax.jit(functools.partial(dqn_forward, meta=meta))
    q_values = forward(weights, x)
    jax.block_until_ready(q_values)
    assert q_values.shape == (2, 2) and q_values.dtype == jnp.float32
    print("KERNEL_OK")
</pallas_src>

<mosaic_0001>
module attributes {stable_mosaic.version = 11 : i64} {
  func.func @_mm_bias_kernel(%arg0: i32, %arg1: i32, %arg2: memref<256x256xbf16, #tpu.memory_space<vmem>>, %arg3: memref<256x128xbf16, #tpu.memory_space<vmem>>, %arg4: memref<1x128xf32, #tpu.memory_space<vmem>>, %arg5: memref<256x128xbf16, #tpu.memory_space<vmem>>) attributes {dimension_semantics = [#tpu.dimension_semantics<parallel>, #tpu.dimension_semantics<arbitrary>], iteration_bounds = array<i64: 4, 1>, scalar_prefetch = 0 : i64, scratch_operands = 0 : i64, tpu.core_type = #tpu.core_type<tc>, window_params = [{transform_indices = @transform_0, window_bounds = array<i64: 256, 256>}, {transform_indices = @transform_1, window_bounds = array<i64: 256, 128>}, {pipeline_mode = #tpu.pipeline_mode<synchronous>, transform_indices = @transform_2, window_bounds = array<i64: 1, 128>}, {transform_indices = @transform_3, window_bounds = array<i64: 256, 128>}]} {
    %c0 = arith.constant 0 : index
    %c0_0 = arith.constant 0 : index
    %0 = vector.load %arg2[%c0, %c0_0] : memref<256x256xbf16, #tpu.memory_space<vmem>>, vector<256x256xbf16>
    %c0_1 = arith.constant 0 : index
    %c0_2 = arith.constant 0 : index
    %1 = vector.load %arg3[%c0_1, %c0_2] : memref<256x128xbf16, #tpu.memory_space<vmem>>, vector<256x128xbf16>
    %cst = arith.constant dense<0.000000e+00> : vector<256x128xf32>
    %2 = tpu.matmul %0, %1, %cst {dimension_numbers = #tpu.dot_dimension_numbers<[1], [0], [0], [1], [0, 0, 1, 1], [], []>} : vector<256x256xbf16>, vector<256x128xbf16>, vector<256x128xf32> -> vector<256x128xf32>
    %c0_3 = arith.constant 0 : index
    %c0_4 = arith.constant 0 : index
    %3 = vector.load %arg4[%c0_3, %c0_4] : memref<1x128xf32, #tpu.memory_space<vmem>>, vector<1x128xf32>
    %4 = vector.broadcast %3 : vector<1x128xf32> to vector<256x128xf32>
    %5 = arith.addf %2, %4 : vector<256x128xf32>
    %cst_5 = arith.constant 0.000000e+00 : f32
    %6 = vector.broadcast %cst_5 : f32 to vector<256x128xf32>
    %7 = arith.maximumf %5, %6 : vector<256x128xf32>
    %8 = arith.truncf %7 : vector<256x128xf32> to vector<256x128xbf16>
    %c0_6 = arith.constant 0 : index
    %c0_7 = arith.constant 0 : index
    %9 = vector.load %arg5[%c0_6, %c0_7] : memref<256x128xbf16, #tpu.memory_space<vmem>>, vector<256x128xbf16>
    tpu.vector_store %arg5[%c0_6, %c0_7], %8 {strides = array<i32>} : memref<256x128xbf16, #tpu.memory_space<vmem>>, vector<256x128xbf16>,
    return
  }
  func.func @transform_0(%arg0: i32, %arg1: i32) -> (i32, i32) {
    %c0_i32 = arith.constant 0 : i32
    return %arg0, %arg1 : i32, i32
  }
  func.func @transform_1(%arg0: i32, %arg1: i32) -> (i32, i32) {
    %c0_i32 = arith.constant 0 : i32
    %c0_i32_0 = arith.constant 0 : i32
    return %arg1, %c0_i32 : i32, i32
  }
  func.func @transform_2(%arg0: i32, %arg1: i32) -> (i32, i32) {
    %c0_i32 = arith.constant 0 : i32
    %c0_i32_0 = arith.constant 0 : i32
    %c0_i32_1 = arith.constant 0 : i32
    return %c0_i32, %c0_i32_0 : i32, i32
  }
  func.func @transform_3(%arg0: i32, %arg1: i32) -> (i32, i32) {
    %c0_i32 = arith.constant 0 : i32
    %c0_i32_0 = arith.constant 0 : i32
    return %arg0, %c0_i32 : i32, i32
  }
}

module attributes {stable_mosaic.version = 11 : i64} {
  func.func @_mm_bias_kernel(%arg0: i32, %arg1: i32, %arg2: memref<208x512xbf16, #tpu.memory_space<vmem>>, %arg3: memref<512x128xbf16, #tpu.memory_space<vmem>>, %arg4: memref<1x128xf32, #tpu.memory_space<vmem>>, %arg5: memref<208x128xbf16, #tpu.memory_space<vmem>>) attributes {dimension_semantics = [#tpu.dimension_semantics<parallel>, #tpu.dimension_semantics<arbitrary>], iteration_bounds = array<i64: 1, 1>, scalar_prefetch = 0 : i64, scratch_operands = 0 : i64, tpu.core_type = #tpu.core_type<tc>, window_params = [{transform_indices = @transform_0, window_bounds = array<i64: 208, 512>}, {transform_indices = @transform_1, window_bounds = array<i64: 512, 128>}, {pipeline_mode = #tpu.pipeline_mode<synchronous>, transform_indices = @transform_2, window_bounds = array<i64: 1, 128>}, {transform_indices = @transform_3, window_bounds = array<i64: 208, 128>}]} {
    %c0 = arith.constant 0 : index
    %c0_0 = arith.constant 0 : index
    %0 = vector.load %arg2[%c0, %c0_0] : memref<208x512xbf16, #tpu.memory_space<vmem>>, vector<208x512xbf16>
    %c0_1 = arith.constant 0 : index
    %c0_2 = arith.constant 0 : index
    %1 = vector.load %arg3[%c0_1, %c0_2] : memref<512x128xbf16, #tpu.memory_space<vmem>>, vector<512x128xbf16>
    %cst = arith.constant dense<0.000000e+00> : vector<208x128xf32>
    %2 = tpu.matmul %0, %1, %cst {dimension_numbers = #tpu.dot_dimension_numbers<[1], [0], [0], [1], [0, 0, 1, 1], [], []>} : vector<208x512xbf16>, vector<512x128xbf16>, vector<208x128xf32> -> vector<208x128xf32>
    %c0_3 = arith.constant 0 : index
    %c0_4 = arith.constant 0 : index
    %3 = vector.load %arg4[%c0_3, %c0_4] : memref<1x128xf32, #tpu.memory_space<vmem>>, vector<1x128xf32>
    %4 = vector.broadcast %3 : vector<1x128xf32> to vector<208x128xf32>
    %5 = arith.addf %2, %4 : vector<208x128xf32>
    %cst_5 = arith.constant 0.000000e+00 : f32
    %6 = vector.broadcast %cst_5 : f32 to vector<208x128xf32>
    %7 = arith.maximumf %5, %6 : vector<208x128xf32>
    %8 = arith.truncf %7 : vector<208x128xf32> to vector<208x128xbf16>
    %c0_6 = arith.constant 0 : index
    %c0_7 = arith.constant 0 : index
    %9 = vector.load %arg5[%c0_6, %c0_7] : memref<208x128xbf16, #tpu.memory_space<vmem>>, vector<208x128xbf16>
    tpu.vector_store %arg5[%c0_6, %c0_7], %8 {strides = array<i32>} : memref<208x128xbf16, #tpu.memory_space<vmem>>, vector<208x128xbf16>,
    return
  }
  func.func @transform_0(%arg0: i32, %arg1: i32) -> (i32, i32) {
    %c0_i32 = arith.constant 0 : i32
    return %arg0, %arg1 : i32, i32
  }
  func.func @transform_1(%arg0: i32, %arg1: i32) -> (i32, i32) {
    %c0_i32 = arith.constant 0 : i32
    %c0_i32_0 = arith.constant 0 : i32
    return %arg1, %c0_i32 : i32, i32
  }
  func.func @transform_2(%arg0: i32, %arg1: i32) -> (i32, i32) {
    %c0_i32 = arith.constant 0 : i32
    %c0_i32_0 = arith.constant 0 : i32
    %c0_i32_1 = arith.constant 0 : i32
    return %c0_i32, %c0_i32_0 : i32, i32
  }
  func.func @transform_3(%arg0: i32, %arg1: i32) -> (i32, i32) {
    %c0_i32 = arith.constant 0 : i32
    %c0_i32_0 = arith.constant 0 : i32
    return %arg0, %c0_i32 : i32, i32
  }
}

module attributes {stable_mosaic.version = 11 : i64} {
  func.func @_mm_bias_kernel(%arg0: i32, %arg1: i32, %arg2: memref<208x640xbf16, #tpu.memory_space<vmem>>, %arg3: memref<640x128xbf16, #tpu.memory_space<vmem>>, %arg4: memref<1x128xf32, #tpu.memory_space<vmem>>, %arg5: memref<208x128xbf16, #tpu.memory_space<vmem>>) attributes {dimension_semantics = [#tpu.dimension_semantics<parallel>, #tpu.dimension_semantics<arbitrary>], iteration_bounds = array<i64: 1, 1>, scalar_prefetch = 0 : i64, scratch_operands = 0 : i64, tpu.core_type = #tpu.core_type<tc>, window_params = [{transform_indices = @transform_0, window_bounds = array<i64: 208, 640>}, {transform_indices = @transform_1, window_bounds = array<i64: 640, 128>}, {pipeline_mode = #tpu.pipeline_mode<synchronous>, transform_indices = @transform_2, window_bounds = array<i64: 1, 128>}, {transform_indices = @transform_3, window_bounds = array<i64: 208, 128>}]} {
    %c0 = arith.constant 0 : index
    %c0_0 = arith.constant 0 : index
    %0 = vector.load %arg2[%c0, %c0_0] : memref<208x640xbf16, #tpu.memory_space<vmem>>, vector<208x640xbf16>
    %c0_1 = arith.constant 0 : index
    %c0_2 = arith.constant 0 : index
    %1 = vector.load %arg3[%c0_1, %c0_2] : memref<640x128xbf16, #tpu.memory_space<vmem>>, vector<640x128xbf16>
    %cst = arith.constant dense<0.000000e+00> : vector<208x128xf32>
    %2 = tpu.matmul %0, %1, %cst {dimension_numbers = #tpu.dot_dimension_numbers<[1], [0], [0], [1], [0, 0, 1, 1], [], []>} : vector<208x640xbf16>, vector<640x128xbf16>, vector<208x128xf32> -> vector<208x128xf32>
    %c0_3 = arith.constant 0 : index
    %c0_4 = arith.constant 0 : index
    %3 = vector.load %arg4[%c0_3, %c0_4] : memref<1x128xf32, #tpu.memory_space<vmem>>, vector<1x128xf32>
    %4 = vector.broadcast %3 : vector<1x128xf32> to vector<208x128xf32>
    %5 = arith.addf %2, %4 : vector<208x128xf32>
    %cst_5 = arith.constant 0.000000e+00 : f32
    %6 = vector.broadcast %cst_5 : f32 to vector<208x128xf32>
    %7 = arith.maximumf %5, %6 : vector<208x128xf32>
    %8 = arith.truncf %7 : vector<208x128xf32> to vector<208x128xbf16>
    %c0_6 = arith.constant 0 : index
    %c0_7 = arith.constant 0 : index
    %9 = vector.load %arg5[%c0_6, %c0_7] : memref<208x128xbf16, #tpu.memory_space<vmem>>, vector<208x128xbf16>
    tpu.vector_store %arg5[%c0_6, %c0_7], %8 {strides = array<i32>} : memref<208x128xbf16, #tpu.memory_space<vmem>>, vector<208x128xbf16>,
    return
  }
  func.func @transform_0(%arg0: i32, %arg1: i32) -> (i32, i32) {
    %c0_i32 = arith.constant 0 : i32
    return %arg0, %arg1 : i32, i32
  }
  func.func @transform_1(%arg0: i32, %arg1: i32) -> (i32, i32) {
    %c0_i32 = arith.constant 0 : i32
    %c0_i32_0 = arith.constant 0 : i32
    return %arg1, %c0_i32 : i32, i32
  }
  func.func @transform_2(%arg0: i32, %arg1: i32) -> (i32, i32) {
    %c0_i32 = arith.constant 0 : i32
    %c0_i32_0 = arith.constant 0 : i32
    %c0_i32_1 = arith.constant 0 : i32
    return %c0_i32, %c0_i32_0 : i32, i32
  }
  func.func @transform_3(%arg0: i32, %arg1: i32) -> (i32, i32) {
    %c0_i32 = arith.constant 0 : i32
    %c0_i32_0 = arith.constant 0 : i32
    return %arg0, %c0_i32 : i32, i32
  }
}

module attributes {stable_mosaic.version = 11 : i64} {
  func.func @_fc_fused_kernel(%arg0: i32, %arg1: i32, %arg2: memref<16x1280xbf16, #tpu.memory_space<vmem>>, %arg3: memref<1280x512xbf16, #tpu.memory_space<vmem>>, %arg4: memref<1x512xf32, #tpu.memory_space<vmem>>, %arg5: memref<512x128xbf16, #tpu.memory_space<vmem>>, %arg6: memref<1x128xf32, #tpu.memory_space<vmem>>, %arg7: memref<16x128xf32, #tpu.memory_space<vmem>>, %arg8: memref<16x512xf32, #tpu.memory_space<vmem>>) attributes {dimension_semantics = [#tpu.dimension_semantics<parallel>, #tpu.dimension_semantics<arbitrary>], iteration_bounds = array<i64: 1, 5>, scalar_prefetch = 0 : i64, scratch_operands = 1 : i64, tpu.core_type = #tpu.core_type<tc>, window_params = [{transform_indices = @transform_0, window_bounds = array<i64: 16, 1280>}, {transform_indices = @transform_1, window_bounds = array<i64: 1280, 512>}, {pipeline_mode = #tpu.pipeline_mode<synchronous>, transform_indices = @transform_2, window_bounds = array<i64: 1, 512>}, {pipeline_mode = #tpu.pipeline_mode<synchronous>, transform_indices = @transform_3, window_bounds = array<i64: 512, 128>}, {pipeline_mode = #tpu.pipeline_mode<synchronous>, transform_indices = @transform_4, window_bounds = array<i64: 1, 128>}, {transform_indices = @transform_5, window_bounds = array<i64: 16, 128>}]} {
    %c0_i32 = arith.constant 0 : i32
    %0 = arith.cmpi eq, %arg1, %c0_i32 : i32
    %1 = arith.extui %0 : i1 to i32
    %c0_i32_0 = arith.constant 0 : i32
    %2 = arith.cmpi ne, %1, %c0_i32_0 : i32
    scf.if %2 {
      %cst_9 = arith.constant 0.000000e+00 : f32
      %12 = vector.broadcast %cst_9 : f32 to vector<16x512xf32>
      %c0_10 = arith.constant 0 : index
      %c0_11 = arith.constant 0 : index
      %13 = vector.load %arg8[%c0_10, %c0_11] : memref<16x512xf32, #tpu.memory_space<vmem>>, vector<16x512xf32>
      tpu.vector_store %arg8[%c0_10, %c0_11], %12 {strides = array<i32>} : memref<16x512xf32, #tpu.memory_space<vmem>>, vector<16x512xf32>,
    } else {
    }
    %c0 = arith.constant 0 : index
    %c0_1 = arith.constant 0 : index
    %3 = vector.load %arg8[%c0, %c0_1] : memref<16x512xf32, #tpu.memory_space<vmem>>, vector<16x512xf32>
    %c0_2 = arith.constant 0 : index
    %c0_3 = arith.constant 0 : index
    %4 = vector.load %arg2[%c0_2, %c0_3] : memref<16x1280xbf16, #tpu.memory_space<vmem>>, vector<16x1280xbf16>
    %c0_4 = arith.constant 0 : index
    %c0_5 = arith.constant 0 : index
    %5 = vector.load %arg3[%c0_4, %c0_5] : memref<1280x512xbf16, #tpu.memory_space<vmem>>, vector<1280x512xbf16>
    %cst = arith.constant dense<0.000000e+00> : vector<16x512xf32>
    %6 = tpu.matmul %4, %5, %cst {dimension_numbers = #tpu.dot_dimension_numbers<[1], [0], [0], [1], [0, 0, 1, 1], [], []>} : vector<16x1280xbf16>, vector<1280x512xbf16>, vector<16x512xf32> -> vector<16x512xf32>
    %7 = arith.addf %3, %6 : vector<16x512xf32>
    %c0_6 = arith.constant 0 : index
    %c0_7 = arith.constant 0 : index
    %8 = vector.load %arg8[%c0_6, %c0_7] : memref<16x512xf32, #tpu.memory_space<vmem>>, vector<16x512xf32>
    tpu.vector_store %arg8[%c0_6, %c0_7], %7 {strides = array<i32>} : memref<16x512xf32, #tpu.memory_space<vmem>>, vector<16x512xf32>,
    %c4_i32 = arith.constant 4 : i32
    %9 = arith.cmpi eq, %arg1, %c4_i32 : i32
    %10 = arith.extui %9 : i1 to i32
    %c0_i32_8 = arith.constant 0 : i32
    %11 = arith.cmpi ne, %10, %c0_i32_8 : i32
    scf.if %11 {
      %c0_9 = arith.constant 0 : index
      %c0_10 = arith.constant 0 : index
      %12 = vector.load %arg8[%c0_9, %c0_10] : memref<16x512xf32, #tpu.memory_space<vmem>>, vector<16x512xf32>
      %c0_11 = arith.constant 0 : index
      %c0_12 = arith.constant 0 : index
      %13 = vector.load %arg4[%c0_11, %c0_12] : memref<1x512xf32, #tpu.memory_space<vmem>>, vector<1x512xf32>
      %14 = vector.broadcast %13 : vector<1x512xf32> to vector<16x512xf32>
      %15 = arith.addf %12, %14 : vector<16x512xf32>
      %cst_13 = arith.constant 0.000000e+00 : f32
      %16 = vector.broadcast %cst_13 : f32 to vector<16x512xf32>
      %17 = arith.maximumf %15, %16 : vector<16x512xf32>
      %18 = arith.truncf %17 : vector<16x512xf32> to vector<16x512xbf16>
      %c0_14 = arith.constant 0 : index
      %c0_15 = arith.constant 0 : index
      %19 = vector.load %arg5[%c0_14, %c0_15] : memref<512x128xbf16, #tpu.memory_space<vmem>>, vector<512x128xbf16>
      %cst_16 = arith.constant dense<0.000000e+00> : vector<16x128xf32>
      %20 = tpu.matmul %18, %19, %cst_16 {dimension_numbers = #tpu.dot_dimension_numbers<[1], [0], [0], [1], [0, 0, 1, 1], [], []>} : vector<16x512xbf16>, vector<512x128xbf16>, vector<16x128xf32> -> vector<16x128xf32>
      %c0_17 = arith.constant 0 : index
      %c0_18 = arith.constant 0 : index
      %21 = vector.load %arg6[%c0_17, %c0_18] : memref<1x128xf32, #tpu.memory_space<vmem>>, vector<1x128xf32>
      %22 = vector.broadcast %21 : vector<1x128xf32> to vector<16x128xf32>
      %23 = arith.addf %20, %22 : vector<16x128xf32>
      %c0_19 = arith.constant 0 : index
      %c0_20 = arith.constant 0 : index
      %24 = vector.load %arg7[%c0_19, %c0_20] : memref<16x128xf32, #tpu.memory_space<vmem>>, vector<16x128xf32>
      tpu.vector_store %arg7[%c0_19, %c0_20], %23 {strides = array<i32>} : memref<16x128xf32, #tpu.memory_space<vmem>>, vector<16x128xf32>,
    } else {
    }
    return
  }
  func.func @transform_0(%arg0: i32, %arg1: i32) -> (i32, i32) {
    %c0_i32 = arith.constant 0 : i32
    return %arg0, %arg1 : i32, i32
  }
  func.func @transform_1(%arg0: i32, %arg1: i32) -> (i32, i32) {
    %c0_i32 = arith.constant 0 : i32
    %c0_i32_0 = arith.constant 0 : i32
    return %arg1, %c0_i32 : i32, i32
  }
  func.func @transform_2(%arg0: i32, %arg1: i32) -> (i32, i32) {
    %c0_i32 = arith.constant 0 : i32
    %c0_i32_0 = arith.constant 0 : i32
    %c0_i32_1 = arith.constant 0 : i32
    return %c0_i32, %c0_i32_0 : i32, i32
  }
  func.func @transform_3(%arg0: i32, %arg1: i32) -> (i32, i32) {
    %c0_i32 = arith.constant 0 : i32
    %c0_i32_0 = arith.constant 0 : i32
    %c0_i32_1 = arith.constant 0 : i32
    return %c0_i32, %c0_i32_0 : i32, i32
  }
  func.func @transform_4(%arg0: i32, %arg1: i32) -> (i32, i32) {
    %c0_i32 = arith.constant 0 : i32
    %c0_i32_0 = arith.constant 0 : i32
    %c0_i32_1 = arith.constant 0 : i32
    return %c0_i32, %c0_i32_0 : i32, i32
  }
  func.func @transform_5(%arg0: i32, %arg1: i32) -> (i32, i32) {
    %c0_i32 = arith.constant 0 : i32
    %c0_i32_0 = arith.constant 0 : i32
    return %arg0, %c0_i32 : i32, i32
  }
}

</mosaic_0001>

<bundles_post_ra>
// kernel: dqn_forward.4
= control target key start
LH: loop header
LB: loop body
LE: loop exit
PB: predicated region body
PF: predicated region fallthrough
CT: control target
= control target key end

     0   :  { %s1476_s12 = smov 0   ;;  %s1478_s13 = smov 0   ;;  %s1650_s0 = inlined_call_operand.vmem [shape: bf16[1024,256], index: 0, kind: input, shape index: {}]   ;;  %s1651_s1 = inlined_call_operand.vmem [shape: bf16[256,128], index: 1, kind: input, shape index: {}]   ;;  %s1652_s2 = inlined_call_operand.vmem [shape: f32[1,128], index: 2, kind: input, shape index: {}]   ;;  %s1653_s3 = inlined_call_operand.vmem [shape: bf16[1024,128], index: 3, kind: output, shape index: {}]  }
   0x1   :  { %s1480_s14 = smov 0  }
   0x2 LB: > { %s25_s15 = sadd.s32 1, %s1450_s13  ;;  %p999_p0 = scmp.ge.s32.totalorder %s1454_s14, 1  ;;  %s1454_s14 = sphi %s1480_s14, %s13_s14   ;;  %s1450_s13 = sphi %s1478_s13, %s1655_s13   ;;  %s1446_s12 = sphi %s1476_s12, %s1654_s12  }
   0x3   : > { %p27_p1 = scmp.ge.s32.totalorder %s25_s15, 4  ;;  %p169_p2 = scmp.lt.s32.totalorder %s1454_s14, 5 }
   0x5   : > { %s1657_s15 = smov (%p27_p1, %s25_s15), 0  ;;  %p170_p3 = pnand %p999_p0, %p169_p2 }
   0x6   : > { %s1000_s18 = sshll.u32 (!%p170_p3), %s1446_s12, 5 }
   0x7   : > { %173 = sbr.rel (%p170_p3) target bundleno = 309 (0x135), region = 32  ;;  %p205_p4 = scmp.lt.s32.totalorder (!%p170_p3), %s1000_s18, 127 }
   0xc   : > { %v1368_v0 = vld [vmem:[%s1651_s1 + $0x78] sm:$0xff]   ;;  %v1370_v2 = vld [vmem:[%s1651_s1 + $0x70] sm:$0xff]   ;;  %v1372_v4 = vld [vmem:[%s1651_s1 + $0x68] sm:$0xff]   ;;  %s1659_s18 = smov (!%p205_p4, %s1000_s18), 127 }
   0xd   : > { %v1369_v1 = vld [vmem:[%s1651_s1 + $0x38] sm:$0xff]   ;;  %1216 = vmatprep.subr.bf16.mxu0 %v1368_v0  ;;  %1328 = vmatprep.subr.bf16.mxu1 %v1368_v0  ;;  %v1371_v3 = vld [vmem:[%s1651_s1 + $0x30] sm:$0xff]   ;;  %v1373_v5 = vld [vmem:[%s1651_s1 + $0x28] sm:$0xff]   ;;  %s1088_s6 = sshll.u32 %s1659_s18, 3  ;;  %s1004_s5 = sshll.u32 %s1659_s18, 2 }
   0xe   : > { %1217 = vmatpush3.bf16.msra.mxu0 %v1369_v1  ;;  %1336 = vmatpush3.bf16.msra.mxu1 %v1369_v1  ;;  %v1374_v6 = vld [vmem:[%s1651_s1 + $0x60] sm:$0xff]   ;;  %v1376_v8 = vld [vmem:[%s1651_s1 + $0x58] sm:$0xff]   ;;  %s1527_s11 = scalar_lea.vmem %s1650_s0, %s1088_s6  ;;  %v1378_v10 = vld [vmem:[%s1651_s1 + $0x50] sm:$0xff]   ;;  %s1595_s8 = scalar_lea.vmem %s1653_s3, %s1004_s5 }
   0xf   : > { %1218 = vmatprep.subr.bf16.mxu0 %v1370_v2  ;;  %1329 = vmatprep.subr.bf16.mxu1 %v1370_v2  ;;  %v1375_v7 = vld [vmem:[%s1651_s1 + $0x20] sm:$0xff]   ;;  %v1377_v9 = vld [vmem:[%s1651_s1 + $0x18] sm:$0xff]   ;;  %v1379_v13 = vld [vmem:[%s1651_s1 + $0x10] sm:$0xff]  }
  0x10   : > { %v1386_v11 = vld [vmem:[%s1527_s11 + $0x4] ss:$8 sps:$4 sm:$0xff]   ;;  %v1384_v18 = vld [vmem:[%s1527_s11] ss:$8 sps:$4 sm:$0xff]   ;;  %v1390_v20 = vld [vmem:[%s1527_s11 + $0x14] ss:$8 sps:$4 sm:$0xff]  }
  0x11   : > { %v1389_v12 = vld [vmem:[%s1527_s11 + $0x84] ss:$8 sps:$4 sm:$0xff]   ;;  %587 = vmatprep.mubr.bf16.mxu0 %v1386_v11  ;;  %v1387_v19 = vld [vmem:[%s1527_s11 + $0x80] ss:$8 sps:$4 sm:$0xff]   ;;  %v1392_v21 = vld [vmem:[%s1527_s11 + $0x94] ss:$8 sps:$4 sm:$0xff]  }
  0x12   : > { %1219 = vmatpush3.bf16.msra.mxu0 %v1371_v3  ;;  %1337 = vmatpush3.bf16.msra.mxu1 %v1371_v3  ;;  %v1380_v14 = vld [vmem:[%s1651_s1 + $0x48] sm:$0xff]   ;;  %v1382_v16 = vld [vmem:[%s1651_s1 + $0x40] sm:$0xff]   ;;  %v1394_v22 = vld [vmem:[%s1527_s11 + $0x10] ss:$8 sps:$4 sm:$0xff]  }
  0x13   : > { %1220 = vmatprep.subr.bf16.mxu0 %v1372_v4  ;;  %1330 = vmatprep.subr.bf16.mxu1 %v1372_v4  ;;  %v1381_v15 = vld [vmem:[%s1651_s1 + $0x8] sm:$0xff]   ;;  %v1383_v17 = vld [vmem:[%s1651_s1] sm:$0xff]   ;;  %v1395_v23 = vld [vmem:[%s1527_s11 + $0x90] ss:$8 sps:$4 sm:$0xff]  }
  0x14   : > { %651 = vmatprep.mubr.bf16.mxu1 %v1389_v12  ;;  %v1396_v24 = vld [vmem:[%s1527_s11 + $0x24] ss:$8 sps:$4 sm:$0xff]   ;;  %v1400_v26 = vld [vmem:[%s1527_s11 + $0x20] ss:$8 sps:$4 sm:$0xff]   ;;  %v1402_v28 = vld [vmem:[%s1527_s11 + $0x34] ss:$8 sps:$4 sm:$0xff]  }
  0x15   : > { %v1398_v25 = vld [vmem:[%s1527_s11 + $0xa4] ss:$8 sps:$4 sm:$0xff]   ;;  %v1401_v27 = vld [vmem:[%s1527_s11 + $0xa0] ss:$8 sps:$4 sm:$0xff]   ;;  %v1404_v29 = vld [vmem:[%s1527_s11 + $0xb4] ss:$8 sps:$4 sm:$0xff]  }
  0x16   : > { %1221 = vmatpush3.bf16.msra.mxu0 %v1373_v5  ;;  %1338 = vmatpush3.bf16.msra.mxu1 %v1373_v5  ;;  %v1406_v30 = vld [vmem:[%s1527_s11 + $0x30] ss:$8 sps:$4 sm:$0xff]   ;;  %v1408_v32 = vld [vmem:[%s1527_s11 + $0x44] ss:$8 sps:$4 sm:$0xff]   ;;  %v1412_v34 = vld [vmem:[%s1527_s11 + $0x40] ss:$8 sps:$4 sm:$0xff]  }
  0x17   : > { %1222 = vmatprep.subr.bf16.mxu0 %v1374_v6  ;;  %1331 = vmatprep.subr.bf16.mxu1 %v1374_v6  ;;  %v1407_v31 = vld [vmem:[%s1527_s11 + $0xb0] ss:$8 sps:$4 sm:$0xff]   ;;  %v1410_v33 = vld [vmem:[%s1527_s11 + $0xc4] ss:$8 sps:$4 sm:$0xff]   ;;  %v1413_v35 = vld [vmem:[%s1527_s11 + $0xc0] ss:$8 sps:$4 sm:$0xff]  }
  0x18   : > { %v1414_v36 = vld [vmem:[%s1527_s11 + $0x54] ss:$8 sps:$4 sm:$0xff]   ;;  %v1418_v38 = vld [vmem:[%s1527_s11 + $0x50] ss:$8 sps:$4 sm:$0xff]   ;;  %v1420_v40 = vld [vmem:[%s1527_s11 + $0x64] ss:$8 sps:$4 sm:$0xff]  }
  0x19   : > { %v1416_v37 = vld [vmem:[%s1527_s11 + $0xd4] ss:$8 sps:$4 sm:$0xff]   ;;  %v1419_v39 = vld [vmem:[%s1527_s11 + $0xd0] ss:$8 sps:$4 sm:$0xff]   ;;  %v1422_v41 = vld [vmem:[%s1527_s11 + $0xe4] ss:$8 sps:$4 sm:$0xff]  }
  0x1a   : > { %1223 = vmatpush3.bf16.msra.mxu0 %v1375_v7  ;;  %1339 = vmatpush3.bf16.msra.mxu1 %v1375_v7  ;;  %v1424_v42 = vld [vmem:[%s1527_s11 + $0x60] ss:$8 sps:$4 sm:$0xff]   ;;  %v1426_v44 = vld [vmem:[%s1527_s11 + $0x74] ss:$8 sps:$4 sm:$0xff]   ;;  %v1430_v46 = vld [vmem:[%s1527_s11 + $0x70] ss:$8 sps:$4 sm:$0xff]  }
  0x1b   : > { %1224 = vmatprep.subr.bf16.mxu0 %v1376_v8  ;;  %1332 = vmatprep.subr.bf16.mxu1 %v1376_v8  ;;  %v1425_v43 = vld [vmem:[%s1527_s11 + $0xe0] ss:$8 sps:$4 sm:$0xff]   ;;  %v1428_v45 = vld [vmem:[%s1527_s11 + $0xf4] ss:$8 sps:$4 sm:$0xff]   ;;  %v1431_v47 = vld [vmem:[%s1527_s11 + $0xf0] ss:$8 sps:$4 sm:$0xff]  }
  0x1c   : > { %v1585_v52 = vld [vmem:[%s1652_s2] ss:$0 sm:$0xff] }
  0x1e   : > { %1225 = vmatpush3.bf16.msra.mxu0 %v1377_v9  ;;  %1340 = vmatpush3.bf16.msra.mxu1 %v1377_v9 }
  0x1f   : > { %1226 = vmatprep.subr.bf16.mxu0 %v1378_v10  ;;  %1333 = vmatprep.subr.bf16.mxu1 %v1378_v10 }
  0x22   : > { %1227 = vmatpush3.bf16.msra.mxu0 %v1379_v13  ;;  %1341 = vmatpush3.bf16.msra.mxu1 %v1379_v13 }
  0x23   : > { %1228 = vmatprep.subr.bf16.mxu0 %v1380_v14  ;;  %1334 = vmatprep.subr.bf16.mxu1 %v1380_v14 }
  0x26   : > { %1229 = vmatpush3.bf16.msra.mxu0 %v1381_v15  ;;  %1342 = vmatpush3.bf16.msra.mxu1 %v1381_v15 }
  0x27   : > { %1230 = vmatprep.subr.bf16.mxu0 %v1382_v16  ;;  %1335 = vmatprep.subr.bf16.mxu1 %v1382_v16 }
  0x2a   : > { %1231 = vmatpush3.bf16.msra.mxu0 %v1383_v17  ;;  %1343 = vmatpush3.bf16.msra.mxu1 %v1383_v17 }
  0x2d   : > { %588 = vmatmul.mubr.bf16.vlgmr.msra.gmra.mxu0 %v1384_v18  ;;  %652 = vmatmul.mubr.bf16.vlgmr.msra.gmra.mxu1 %v1387_v19 }
  0x2e   : > { %595 = vmatprep.mubr.bf16.mxu0 %v1390_v20  ;;  %659 = vmatprep.mubr.bf16.mxu1 %v1392_v21 }
  0x35   : > { %596 = vmatmul.mubr.bf16.gmra.mxu0 %v1394_v22  ;;  %660 = vmatmul.mubr.bf16.gmra.mxu1 %v1395_v23 }
  0x36   : > { %603 = vmatprep.mubr.bf16.mxu0 %v1396_v24  ;;  %667 = vmatprep.mubr.bf16.mxu1 %v1398_v25 }
  0x3d   : > { %604 = vmatmul.mubr.bf16.gmra.mxu0 %v1400_v26  ;;  %668 = vmatmul.mubr.bf16.gmra.mxu1 %v1401_v27 }
  0x3e   : > { %611 = vmatprep.mubr.bf16.mxu0 %v1402_v28  ;;  %675 = vmatprep.mubr.bf16.mxu1 %v1404_v29 }
  0x45   : > { %612 = vmatmul.mubr.bf16.gmra.mxu0 %v1406_v30  ;;  %676 = vmatmul.mubr.bf16.gmra.mxu1 %v1407_v31 }
  0x46   : > { %619 = vmatprep.mubr.bf16.mxu0 %v1408_v32  ;;  %683 = vmatprep.mubr.bf16.mxu1 %v1410_v33 }
  0x4d   : > { %620 = vmatmul.mubr.bf16.gmra.mxu0 %v1412_v34  ;;  %684 = vmatmul.mubr.bf16.gmra.mxu1 %v1413_v35 }
  0x4e   : > { %627 = vmatprep.mubr.bf16.mxu0 %v1414_v36  ;;  %691 = vmatprep.mubr.bf16.mxu1 %v1416_v37 }
  0x55   : > { %628 = vmatmul.mubr.bf16.gmra.mxu0 %v1418_v38  ;;  %692 = vmatmul.mubr.bf16.gmra.mxu1 %v1419_v39 }
  0x56   : > { %635 = vmatprep.mubr.bf16.mxu0 %v1420_v40  ;;  %699 = vmatprep.mubr.bf16.mxu1 %v1422_v41 }
  0x5d   : > { %636 = vmatmul.mubr.bf16.gmra.mxu0 %v1424_v42  ;;  %700 = vmatmul.mubr.bf16.gmra.mxu1 %v1425_v43 }
  0x5e   : > { %643 = vmatprep.mubr.bf16.mxu0 %v1426_v44  ;;  %707 = vmatprep.mubr.bf16.mxu1 %v1428_v45 }
  0x65   : > { %644 = vmatmul.mubr.bf16.gmra.mxu0 %v1430_v46  ;;  %708 = vmatmul.mubr.bf16.gmra.mxu1 %v1431_v47 }
  0xed   : > { %v1232_v48 = vpop.f32.mrf.mxu0  ;;  %v1280_v49 = vpop.f32.mrf.mxu1 }
  0xef   : > { %v1233_v50 = vpop.f32.mrf.mxu0  ;;  %v1281_v51 = vpop.f32.mrf.mxu1 }
  0xf0   : > { %v1234_v53 = vadd.f32 %v1233_v50, %v1232_v48  ;;  %v1282_v54 = vadd.f32 %v1281_v51, %v1280_v49 }
  0xf1   : > { %v1235_v55 = vpop.f32.mrf.mxu0  ;;  %v1283_v56 = vpop.f32.mrf.mxu1 }
  0xf2   : > { %v590_v57 = vadd.f32 %v1234_v53, %v1585_v52  ;;  %v654_v58 = vadd.f32 %v1282_v54, %v1585_v52 }
  0xf3   : > { %v1236_v59 = vpop.f32.mrf.mxu0  ;;  %v1284_v60 = vpop.f32.mrf.mxu1 }
  0xf4   : > { %v1237_v61 = vadd.f32 %v1236_v59, %v1235_v55  ;;  %v1285_v62 = vadd.f32 %v1284_v60, %v1283_v56  ;;  %v716_v3 = vmax.f32 %v590_v57, 0.0  ;;  %v732_v4 = vmax.f32 %v654_v58, 0.0 }
  0xf5   : > { %v1238_v63 = vpop.f32.mrf.mxu0  ;;  %v1286_v0 = vpop.f32.mrf.mxu1 }
  0xf6   : > { %v593_v1 = vadd.f32 %v1237_v61, %v1585_v52  ;;  %v657_v2 = vadd.f32 %v1285_v62, %v1585_v52 }
  0xf7   : > { %v1239_v5 = vpop.f32.mrf.mxu0  ;;  %v1287_v6 = vpop.f32.mrf.mxu1 }
  0xf8   : > { %v717_v7 = vmax.f32 %v593_v1, 0.0  ;;  %v733_v8 = vmax.f32 %v657_v2, 0.0  ;;  %v1240_v9 = vadd.f32 %v1239_v5, %v1238_v63  ;;  %v1288_v10 = vadd.f32 %v1287_v6, %v1286_v0 }
  0xf9   : > { %v1241_v11 = vpop.f32.mrf.mxu0  ;;  %v1289_v12 = vpop.f32.mrf.mxu1 }
  0xfa   : > { %v1124_v13 = vpack.c.bf16 %v717_v7, %v716_v3  ;;  %v1164_v14 = vpack.c.bf16 %v733_v8, %v732_v4  ;;  %v598_v15 = vadd.f32 %v1240_v9, %v1585_v52  ;;  %v662_v16 = vadd.f32 %v1288_v10, %v1585_v52 }
  0xfb   : > { %v1242_v17 = vpop.f32.mrf.mxu0  ;;  %v1290_v18 = vpop.f32.mrf.mxu1 }
  0xfc   : > { %1125 = vst [vmem:[%s1595_s8] sm:$0xff] %v1124_v13   ;;  %1208 = vst [vmem:[%s1595_s8 + $0x40] sm:$0xff] %v1164_v14   ;;  %v1243_v19 = vadd.f32 %v1242_v17, %v1241_v11  ;;  %v1291_v20 = vadd.f32 %v1290_v18, %v1289_v12  ;;  %v718_v25 = vmax.f32 %v598_v15, 0.0  ;;  %v734_v26 = vmax.f32 %v662_v16, 0.0 }
  0xfd   : > { %v1244_v21 = vpop.f32.mrf.mxu0  ;;  %v1292_v22 = vpop.f32.mrf.mxu1 }
  0xfe   : > { %v601_v23 = vadd.f32 %v1243_v19, %v1585_v52  ;;  %v665_v24 = vadd.f32 %v1291_v20, %v1585_v52 }
  0xff   : > { %v1245_v27 = vpop.f32.mrf.mxu0  ;;  %v1293_v28 = vpop.f32.mrf.mxu1 }
 0x100   : > { %v719_v29 = vmax.f32 %v601_v23, 0.0  ;;  %v735_v30 = vmax.f32 %v665_v24, 0.0  ;;  %v1246_v31 = vadd.f32 %v1245_v27, %v1244_v21  ;;  %v1294_v32 = vadd.f32 %v1293_v28, %v1292_v22 }
 0x101   : > { %v1247_v33 = vpop.f32.mrf.mxu0  ;;  %v1295_v34 = vpop.f32.mrf.mxu1 }
 0x102   : > { %v1129_v35 = vpack.c.bf16 %v719_v29, %v718_v25  ;;  %v1169_v36 = vpack.c.bf16 %v735_v30, %v734_v26  ;;  %v606_v37 = vadd.f32 %v1246_v31, %v1585_v52  ;;  %v670_v38 = vadd.f32 %v1294_v32, %v1585_v52 }
 0x103   : > { %v1248_v39 = vpop.f32.mrf.mxu0  ;;  %v1296_v40 = vpop.f32.mrf.mxu1 }
 0x104   : > { %1201 = vst [vmem:[%s1595_s8 + $0x8] sm:$0xff] %v1129_v35   ;;  %1209 = vst [vmem:[%s1595_s8 + $0x48] sm:$0xff] %v1169_v36   ;;  %v1249_v41 = vadd.f32 %v1248_v39, %v1247_v33  ;;  %v1297_v42 = vadd.f32 %v1296_v40, %v1295_v34  ;;  %v720_v47 = vmax.f32 %v606_v37, 0.0  ;;  %v736_v48 = vmax.f32 %v670_v38, 0.0 }
 0x105   : > { %v1250_v43 = vpop.f32.mrf.mxu0  ;;  %v1298_v44 = vpop.f32.mrf.mxu1 }
 0x106   : > { %v609_v45 = vadd.f32 %v1249_v41, %v1585_v52  ;;  %v673_v46 = vadd.f32 %v1297_v42, %v1585_v52 }
 0x107   : > { %v1251_v49 = vpop.f32.mrf.mxu0  ;;  %v1299_v50 = vpop.f32.mrf.mxu1 }
 0x108   : > { %v721_v51 = vmax.f32 %v609_v45, 0.0  ;;  %v737_v53 = vmax.f32 %v673_v46, 0.0  ;;  %v1252_v54 = vadd.f32 %v1251_v49, %v1250_v43  ;;  %v1300_v55 = vadd.f32 %v1299_v50, %v1298_v44 }
 0x109   : > { %v1253_v56 = vpop.f32.mrf.mxu0  ;;  %v1301_v57 = vpop.f32.mrf.mxu1 }
 0x10a   : > { %v1134_v58 = vpack.c.bf16 %v721_v51, %v720_v47  ;;  %v1174_v59 = vpack.c.bf16 %v737_v53, %v736_v48  ;;  %v614_v60 = vadd.f32 %v1252_v54, %v1585_v52  ;;  %v678_v61 = vadd.f32 %v1300_v55, %v1585_v52 }
 0x10b   : > { %v1254_v62 = vpop.f32.mrf.mxu0  ;;  %v1302_v63 = vpop.f32.mrf.mxu1 }
 0x10c   : > { %1202 = vst [vmem:[%s1595_s8 + $0x10] sm:$0xff] %v1134_v58   ;;  %1210 = vst [vmem:[%s1595_s8 + $0x50] sm:$0xff] %v1174_v59   ;;  %v1255_v0 = vadd.f32 %v1254_v62, %v1253_v56  ;;  %v1303_v1 = vadd.f32 %v1302_v63, %v1301_v57  ;;  %v722_v6 = vmax.f32 %v614_v60, 0.0  ;;  %v738_v7 = vmax.f32 %v678_v61, 0.0 }
 0x10d   : > { %v1256_v2 = vpop.f32.mrf.mxu0  ;;  %v1304_v3 = vpop.f32.mrf.mxu1 }
 0x10e   : > { %v617_v4 = vadd.f32 %v1255_v0, %v1585_v52  ;;  %v681_v5 = vadd.f32 %v1303_v1, %v1585_v52 }
 0x10f   : > { %v1257_v8 = vpop.f32.mrf.mxu0  ;;  %v1305_v9 = vpop.f32.mrf.mxu1 }
 0x110   : > { %v723_v10 = vmax.f32 %v617_v4, 0.0  ;;  %v739_v11 = vmax.f32 %v681_v5, 0.0  ;;  %v1258_v12 = vadd.f32 %v1257_v8, %v1256_v2  ;;  %v1306_v13 = vadd.f32 %v1305_v9, %v1304_v3 }
 0x111   : > { %v1259_v14 = vpop.f32.mrf.mxu0  ;;  %v1307_v15 = vpop.f32.mrf.mxu1 }
 0x112   : > { %v1139_v16 = vpack.c.bf16 %v723_v10, %v722_v6  ;;  %v1179_v17 = vpack.c.bf16 %v739_v11, %v738_v7  ;;  %v622_v18 = vadd.f32 %v1258_v12, %v1585_v52  ;;  %v686_v19 = vadd.f32 %v1306_v13, %v1585_v52 }
 0x113   : > { %v1260_v20 = vpop.f32.mrf.mxu0  ;;  %v1308_v21 = vpop.f32.mrf.mxu1 }
 0x114   : > { %1203 = vst [vmem:[%s1595_s8 + $0x18] sm:$0xff] %v1139_v16   ;;  %1211 = vst [vmem:[%s1595_s8 + $0x58] sm:$0xff] %v1179_v17   ;;  %v1261_v22 = vadd.f32 %v1260_v20, %v1259_v14  ;;  %v1309_v23 = vadd.f32 %v1308_v21, %v1307_v15  ;;  %v724_v28 = vmax.f32 %v622_v18, 0.0  ;;  %v740_v29 = vmax.f32 %v686_v19, 0.0 }
 0x115   : > { %v1262_v24 = vpop.f32.mrf.mxu0  ;;  %v1310_v25 = vpop.f32.mrf.mxu1 }
 0x116   : > { %v625_v26 = vadd.f32 %v1261_v22, %v1585_v52  ;;  %v689_v27 = vadd.f32 %v1309_v23, %v1585_v52 }
 0x117   : > { %v1263_v30 = vpop.f32.mrf.mxu0  ;;  %v1311_v31 = vpop.f32.mrf.mxu1 }
 0x118   : > { %v725_v32 = vmax.f32 %v625_v26, 0.0  ;;  %v741_v33 = vmax.f32 %v689_v27, 0.0  ;;  %v1264_v34 = vadd.f32 %v1263_v30, %v1262_v24  ;;  %v1312_v35 = vadd.f32 %v1311_v31, %v1310_v25 }
 0x119   : > { %v1265_v36 = vpop.f32.mrf.mxu0  ;;  %v1313_v37 = vpop.f32.mrf.mxu1 }
 0x11a   : > { %v1144_v38 = vpack.c.bf16 %v725_v32, %v724_v28  ;;  %v1184_v39 = vpack.c.bf16 %v741_v33, %v740_v29  ;;  %v630_v40 = vadd.f32 %v1264_v34, %v1585_v52  ;;  %v694_v41 = vadd.f32 %v1312_v35, %v1585_v52 }
 0x11b   : > { %v1266_v42 = vpop.f32.mrf.mxu0  ;;  %v1314_v43 = vpop.f32.mrf.mxu1 }
 0x11c   : > { %1204 = vst [vmem:[%s1595_s8 + $0x20] sm:$0xff] %v1144_v38   ;;  %1212 = vst [vmem:[%s1595_s8 + $0x60] sm:$0xff] %v1184_v39   ;;  %v1267_v44 = vadd.f32 %v1266_v42, %v1265_v36  ;;  %v1315_v45 = vadd.f32 %v1314_v43, %v1313_v37  ;;  %v726_v50 = vmax.f32 %v630_v40, 0.0  ;;  %v742_v51 = vmax.f32 %v694_v41, 0.0 }
 0x11d   : > { %v1268_v46 = vpop.f32.mrf.mxu0  ;;  %v1316_v47 = vpop.f32.mrf.mxu1 }
 0x11e   : > { %v633_v48 = vadd.f32 %v1267_v44, %v1585_v52  ;;  %v697_v49 = vadd.f32 %v1315_v45, %v1585_v52 }
 0x11f   : > { %v1269_v53 = vpop.f32.mrf.mxu0  ;;  %v1317_v54 = vpop.f32.mrf.mxu1 }
 0x120   : > { %v727_v55 = vmax.f32 %v633_v48, 0.0  ;;  %v743_v56 = vmax.f32 %v697_v49, 0.0  ;;  %v1270_v57 = vadd.f32 %v1269_v53, %v1268_v46  ;;  %v1318_v58 = vadd.f32 %v1317_v54, %v1316_v47 }
 0x121   : > { %v1271_v59 = vpop.f32.mrf.mxu0  ;;  %v1319_v60 = vpop.f32.mrf.mxu1 }
 0x122   : > { %v1149_v61 = vpack.c.bf16 %v727_v55, %v726_v50  ;;  %v1189_v62 = vpack.c.bf16 %v743_v56, %v742_v51  ;;  %v638_v63 = vadd.f32 %v1270_v57, %v1585_v52  ;;  %v702_v0 = vadd.f32 %v1318_v58, %v1585_v52 }
 0x123   : > { %v1272_v1 = vpop.f32.mrf.mxu0  ;;  %v1320_v2 = vpop.f32.mrf.mxu1 }
 0x124   : > { %1205 = vst [vmem:[%s1595_s8 + $0x28] sm:$0xff] %v1149_v61   ;;  %1213 = vst [vmem:[%s1595_s8 + $0x68] sm:$0xff] %v1189_v62   ;;  %v1273_v3 = vadd.f32 %v1272_v1, %v1271_v59  ;;  %v1321_v4 = vadd.f32 %v1320_v2, %v1319_v60  ;;  %v728_v9 = vmax.f32 %v638_v63, 0.0  ;;  %v744_v10 = vmax.f32 %v702_v0, 0.0 }
 0x125   : > { %v1274_v5 = vpop.f32.mrf.mxu0  ;;  %v1322_v6 = vpop.f32.mrf.mxu1 }
 0x126   : > { %v641_v7 = vadd.f32 %v1273_v3, %v1585_v52  ;;  %v705_v8 = vadd.f32 %v1321_v4, %v1585_v52 }
 0x127   : > { %v1275_v11 = vpop.f32.mrf.mxu0  ;;  %v1323_v12 = vpop.f32.mrf.mxu1 }
 0x128   : > { %v729_v13 = vmax.f32 %v641_v7, 0.0  ;;  %v745_v14 = vmax.f32 %v705_v8, 0.0  ;;  %v1276_v15 = vadd.f32 %v1275_v11, %v1274_v5  ;;  %v1324_v16 = vadd.f32 %v1323_v12, %v1322_v6 }
 0x129   : > { %v1277_v17 = vpop.f32.mrf.mxu0  ;;  %v1325_v18 = vpop.f32.mrf.mxu1 }
 0x12a   : > { %v1154_v19 = vpack.c.bf16 %v729_v13, %v728_v9  ;;  %v1194_v20 = vpack.c.bf16 %v745_v14, %v744_v10  ;;  %v646_v23 = vadd.f32 %v1276_v15, %v1585_v52  ;;  %v710_v24 = vadd.f32 %v1324_v16, %v1585_v52 }
 0x12b   : > { %v1278_v21 = vpop.f32.mrf.mxu0  ;;  %v1326_v22 = vpop.f32.mrf.mxu1 }
 0x12c   : > { %1206 = vst [vmem:[%s1595_s8 + $0x30] sm:$0xff] %v1154_v19   ;;  %1214 = vst [vmem:[%s1595_s8 + $0x70] sm:$0xff] %v1194_v20   ;;  %v1279_v25 = vadd.f32 %v1278_v21, %v1277_v17  ;;  %v1327_v26 = vadd.f32 %v1326_v22, %v1325_v18  ;;  %v730_v29 = vmax.f32 %v646_v23, 0.0  ;;  %v746_v30 = vmax.f32 %v710_v24, 0.0 }
 0x12e   : > { %v649_v27 = vadd.f32 %v1279_v25, %v1585_v52  ;;  %v713_v28 = vadd.f32 %v1327_v26, %v1585_v52 }
 0x130   : > { %v731_v31 = vmax.f32 %v649_v27, 0.0  ;;  %v747_v32 = vmax.f32 %v713_v28, 0.0 }
 0x132   : > { %v1159_v33 = vpack.c.bf16 %v731_v31, %v730_v29  ;;  %v1199_v34 = vpack.c.bf16 %v747_v32, %v746_v30 }
 0x134   : > { %1207 = vst [vmem:[%s1595_s8 + $0x38] sm:$0xff] %v1159_v33   ;;  %1215 = vst [vmem:[%s1595_s8 + $0x78] sm:$0xff] %v1199_v34  }
 0x135 PF: > { %s13_s14 = sadd.s32 1, %s1454_s14   ;;  %s1654_s12 = smov %s1450_s13 }
 0x136   : > { %p10_p5 = scmp.ge.s32.totalorder %s13_s14, 6   ;;  %s1655_s13 = smov %s1657_s15 }
 0x138   :  { %12 = sbr.rel (!%p10_p5) target bundleno = 2 (0x2), region = 65 }

// kernel: dqn_forward.5
= control target key start
LH: loop header
LB: loop body
LE: loop exit
PB: predicated region body
PF: predicated region fallthrough
CT: control target
= control target key end

     0   :  { %s1878_s1 = inlined_call_operand.vmem [shape: bf16[512,128], index: 1, kind: input, shape index: {}]   ;;  %s1879_s0 = inlined_call_operand.vmem [shape: bf16[208,512], index: 0, kind: input, shape index: {}]   ;;  %s1880_s2 = inlined_call_operand.vmem [shape: f32[1,128], index: 2, kind: input, shape index: {}]   ;;  %s1881_s3 = inlined_call_operand.vmem [shape: bf16[208,128], index: 3, kind: output, shape index: {}]  }
   0x1   :  { %v1426_v0 = vld [vmem:[%s1878_s1 + $0x78] sm:$0xff]   ;;  %v1430_v4 = vld [vmem:[%s1878_s1 + $0x70] sm:$0xff]   ;;  %v1434_v8 = vld [vmem:[%s1878_s1 + $0x68] sm:$0xff]  }
   0x2   :  { %v1427_v1 = vld [vmem:[%s1878_s1 + $0xf8] sm:$0xff]   ;;  %1238 = vmatprep.subr.bf16.mxu0 %v1426_v0  ;;  %v1431_v5 = vld [vmem:[%s1878_s1 + $0xf0] sm:$0xff]   ;;  %v1435_v9 = vld [vmem:[%s1878_s1 + $0xe8] sm:$0xff]  }
   0x3   :  { %v1428_v2 = vld [vmem:[%s1878_s1 + $0x38] sm:$0xff]   ;;  %1332 = vmatprep.subr.bf16.mxu1 %v1427_v1  ;;  %v1432_v6 = vld [vmem:[%s1878_s1 + $0x30] sm:$0xff]   ;;  %v1436_v10 = vld [vmem:[%s1878_s1 + $0x28] sm:$0xff]  }
   0x4   :  { %v1429_v3 = vld [vmem:[%s1878_s1 + $0xb8] sm:$0xff]   ;;  %1239 = vmatpush3.bf16.msra.mxu0 %v1428_v2  ;;  %v1433_v7 = vld [vmem:[%s1878_s1 + $0xb0] sm:$0xff]   ;;  %v1437_v11 = vld [vmem:[%s1878_s1 + $0xa8] sm:$0xff]  }
   0x5   :  { %1333 = vmatpush3.bf16.msra.mxu1 %v1429_v3  ;;  %1240 = vmatprep.subr.bf16.mxu0 %v1430_v4  ;;  %v1438_v12 = vld [vmem:[%s1878_s1 + $0x60] sm:$0xff]   ;;  %v1442_v16 = vld [vmem:[%s1878_s1 + $0x58] sm:$0xff]   ;;  %v1446_v20 = vld [vmem:[%s1878_s1 + $0x50] sm:$0xff]  }
   0x6   :  { %1334 = vmatprep.subr.bf16.mxu1 %v1431_v5  ;;  %v1439_v13 = vld [vmem:[%s1878_s1 + $0xe0] sm:$0xff]   ;;  %v1443_v17 = vld [vmem:[%s1878_s1 + $0xd8] sm:$0xff]   ;;  %v1447_v21 = vld [vmem:[%s1878_s1 + $0xd0] sm:$0xff]  }
   0x7   :  { %v1440_v14 = vld [vmem:[%s1878_s1 + $0x20] sm:$0xff]   ;;  %v1444_v18 = vld [vmem:[%s1878_s1 + $0x18] sm:$0xff]   ;;  %v1448_v22 = vld [vmem:[%s1878_s1 + $0x10] sm:$0xff]  }
   0x8   :  { %1241 = vmatpush3.bf16.msra.mxu0 %v1432_v6  ;;  %v1441_v15 = vld [vmem:[%s1878_s1 + $0xa0] sm:$0xff]   ;;  %v1445_v19 = vld [vmem:[%s1878_s1 + $0x98] sm:$0xff]   ;;  %v1449_v23 = vld [vmem:[%s1878_s1 + $0x90] sm:$0xff]  }
   0x9   :  { %1335 = vmatpush3.bf16.msra.mxu1 %v1433_v7  ;;  %1242 = vmatprep.subr.bf16.mxu0 %v1434_v8  ;;  %v1450_v24 = vld [vmem:[%s1878_s1 + $0x48] sm:$0xff]   ;;  %v1454_v28 = vld [vmem:[%s1878_s1 + $0x40] sm:$0xff]  }
   0xa   :  { %1336 = vmatprep.subr.bf16.mxu1 %v1435_v9  ;;  %v1451_v25 = vld [vmem:[%s1878_s1 + $0xc8] sm:$0xff]   ;;  %v1455_v29 = vld [vmem:[%s1878_s1 + $0xc0] sm:$0xff]  }
   0xb   :  { %v1452_v26 = vld [vmem:[%s1878_s1 + $0x8] sm:$0xff]   ;;  %v1456_v30 = vld [vmem:[%s1878_s1] sm:$0xff]  }
   0xc   :  { %1243 = vmatpush3.bf16.msra.mxu0 %v1436_v10  ;;  %v1453_v27 = vld [vmem:[%s1878_s1 + $0x88] sm:$0xff]   ;;  %v1457_v31 = vld [vmem:[%s1878_s1 + $0x80] sm:$0xff]  }
   0xd   :  { %1337 = vmatpush3.bf16.msra.mxu1 %v1437_v11  ;;  %1244 = vmatprep.subr.bf16.mxu0 %v1438_v12  ;;  %v1458_v32 = vld [vmem:[%s1879_s0] ss:$16 sps:$4 sm:$0xff]   ;;  %v1460_v33 = vld [vmem:[%s1879_s0 + $0x4] ss:$16 sps:$4 sm:$0xff]   ;;  %v1461_v34 = vld [vmem:[%s1879_s0 + $0x8] ss:$16 sps:$4 sm:$0xff]  }
   0xe   :  { %1338 = vmatprep.subr.bf16.mxu1 %v1439_v13  ;;  %v1463_v35 = vld [vmem:[%s1879_s0 + $0xc] ss:$16 sps:$4 sm:$0xff]   ;;  %622 = vmatprep.mubr.bf16.mxu0 %v1460_v33  ;;  %v1464_v36 = vld [vmem:[%s1879_s0 + $0x24] ss:$16 sps:$4 sm:$0xff]   ;;  %v1468_v38 = vld [vmem:[%s1879_s0 + $0x20] ss:$16 sps:$4 sm:$0xff]  }
   0xf   :  { %759 = vmatprep.mubr.bf16.mxu1 %v1463_v35  ;;  %v1466_v37 = vld [vmem:[%s1879_s0 + $0x2c] ss:$16 sps:$4 sm:$0xff]   ;;  %v1469_v39 = vld [vmem:[%s1879_s0 + $0x28] ss:$16 sps:$4 sm:$0xff]   ;;  %v1470_v40 = vld [vmem:[%s1879_s0 + $0x44] ss:$16 sps:$4 sm:$0xff]  }
  0x10   :  { %1245 = vmatpush3.bf16.msra.mxu0 %v1440_v14  ;;  %v1472_v41 = vld [vmem:[%s1879_s0 + $0x4c] ss:$16 sps:$4 sm:$0xff]   ;;  %v1474_v42 = vld [vmem:[%s1879_s0 + $0x40] ss:$16 sps:$4 sm:$0xff]   ;;  %v1475_v43 = vld [vmem:[%s1879_s0 + $0x48] ss:$16 sps:$4 sm:$0xff]  }
  0x11   :  { %1339 = vmatpush3.bf16.msra.mxu1 %v1441_v15  ;;  %1246 = vmatprep.subr.bf16.mxu0 %v1442_v16  ;;  %v1476_v44 = vld [vmem:[%s1879_s0 + $0x64] ss:$16 sps:$4 sm:$0xff]   ;;  %v1478_v45 = vld [vmem:[%s1879_s0 + $0x6c] ss:$16 sps:$4 sm:$0xff]   ;;  %v1480_v46 = vld [vmem:[%s1879_s0 + $0x60] ss:$16 sps:$4 sm:$0xff]  }
  0x12   :  { %1340 = vmatprep.subr.bf16.mxu1 %v1443_v17  ;;  %v1481_v47 = vld [vmem:[%s1879_s0 + $0x68] ss:$16 sps:$4 sm:$0xff]   ;;  %v1482_v48 = vld [vmem:[%s1879_s0 + $0x84] ss:$16 sps:$4 sm:$0xff]   ;;  %v1484_v49 = vld [vmem:[%s1879_s0 + $0x8c] ss:$16 sps:$4 sm:$0xff]  }
  0x13   :  { %v1486_v50 = vld [vmem:[%s1879_s0 + $0x80] ss:$16 sps:$4 sm:$0xff]   ;;  %v1487_v51 = vld [vmem:[%s1879_s0 + $0x88] ss:$16 sps:$4 sm:$0xff]   ;;  %v1488_v52 = vld [vmem:[%s1879_s0 + $0xa4] ss:$16 sps:$4 sm:$0xff]  }
  0x14   :  { %1247 = vmatpush3.bf16.msra.mxu0 %v1444_v18  ;;  %v1490_v53 = vld [vmem:[%s1879_s0 + $0xac] ss:$16 sps:$4 sm:$0xff]   ;;  %v1492_v54 = vld [vmem:[%s1879_s0 + $0xa0] ss:$16 sps:$4 sm:$0xff]   ;;  %v1493_v55 = vld [vmem:[%s1879_s0 + $0xa8] ss:$16 sps:$4 sm:$0xff]  }
  0x15   :  { %1341 = vmatpush3.bf16.msra.mxu1 %v1445_v19  ;;  %1248 = vmatprep.subr.bf16.mxu0 %v1446_v20  ;;  %v1494_v56 = vld [vmem:[%s1879_s0 + $0xc4] ss:$16 sps:$4 sm:$0xff]   ;;  %v1496_v57 = vld [vmem:[%s1879_s0 + $0xcc] ss:$16 sps:$4 sm:$0xff]   ;;  %v1498_v58 = vld [vmem:[%s1879_s0 + $0xc0] ss:$16 sps:$4 sm:$0xff]  }
  0x16   :  { %1342 = vmatprep.subr.bf16.mxu1 %v1447_v21  ;;  %v1499_v59 = vld [vmem:[%s1879_s0 + $0xc8] ss:$16 sps:$4 sm:$0xff]   ;;  %v1500_v60 = vld [vmem:[%s1879_s0 + $0xe4] ss:$16 sps:$4 sm:$0xff]   ;;  %v1502_v61 = vld [vmem:[%s1879_s0 + $0xec] ss:$16 sps:$4 sm:$0xff]  }
  0x17   :  { %v1504_v62 = vld [vmem:[%s1879_s0 + $0xe0] ss:$16 sps:$4 sm:$0xff]   ;;  %v1505_v63 = vld [vmem:[%s1879_s0 + $0xe8] ss:$16 sps:$4 sm:$0xff]   ;;  %v1506_v0 = vld [vmem:[%s1879_s0 + $0x104] ss:$16 sps:$4 sm:$0xff]  }
  0x18   :  { %1249 = vmatpush3.bf16.msra.mxu0 %v1448_v22  ;;  %v1508_v1 = vld [vmem:[%s1879_s0 + $0x10c] ss:$16 sps:$4 sm:$0xff]   ;;  %v1510_v2 = vld [vmem:[%s1879_s0 + $0x100] ss:$16 sps:$4 sm:$0xff]   ;;  %v1511_v3 = vld [vmem:[%s1879_s0 + $0x108] ss:$16 sps:$4 sm:$0xff]  }
  0x19   :  { %1343 = vmatpush3.bf16.msra.mxu1 %v1449_v23  ;;  %1250 = vmatprep.subr.bf16.mxu0 %v1450_v24  ;;  %v1512_v4 = vld [vmem:[%s1879_s0 + $0x124] ss:$16 sps:$4 sm:$0xff]   ;;  %v1514_v5 = vld [vmem:[%s1879_s0 + $0x12c] ss:$16 sps:$4 sm:$0xff]   ;;  %v1516_v6 = vld [vmem:[%s1879_s0 + $0x120] ss:$16 sps:$4 sm:$0xff]  }
  0x1a   :  { %1344 = vmatprep.subr.bf16.mxu1 %v1451_v25  ;;  %v1517_v7 = vld [vmem:[%s1879_s0 + $0x128] ss:$16 sps:$4 sm:$0xff]   ;;  %v1518_v8 = vld [vmem:[%s1879_s0 + $0x144] ss:$16 sps:$4 sm:$0xff]   ;;  %v1520_v9 = vld [vmem:[%s1879_s0 + $0x14c] ss:$16 sps:$4 sm:$0xff]  }
  0x1b   :  { %v1522_v10 = vld [vmem:[%s1879_s0 + $0x140] ss:$16 sps:$4 sm:$0xff]   ;;  %v1523_v11 = vld [vmem:[%s1879_s0 + $0x148] ss:$16 sps:$4 sm:$0xff]   ;;  %v1524_v12 = vld [vmem:[%s1879_s0 + $0x164] ss:$16 sps:$4 sm:$0xff]  }
  0x1c   :  { %1251 = vmatpush3.bf16.msra.mxu0 %v1452_v26  ;;  %v1526_v13 = vld [vmem:[%s1879_s0 + $0x16c] ss:$16 sps:$4 sm:$0xff]   ;;  %v1528_v14 = vld [vmem:[%s1879_s0 + $0x160] ss:$16 sps:$4 sm:$0xff]   ;;  %v1529_v15 = vld [vmem:[%s1879_s0 + $0x168] ss:$16 sps:$4 sm:$0xff]  }
  0x1d   :  { %1345 = vmatpush3.bf16.msra.mxu1 %v1453_v27  ;;  %1252 = vmatprep.subr.bf16.mxu0 %v1454_v28  ;;  %v1530_v16 = vld [vmem:[%s1879_s0 + $0x184] ss:$16 sps:$4 sm:$0xff]   ;;  %v1532_v17 = vld [vmem:[%s1879_s0 + $0x18c] ss:$16 sps:$4 sm:$0xff]   ;;  %v1534_v18 = vld [vmem:[%s1879_s0 + $0x180] ss:$16 sps:$4 sm:$0xff]  }
  0x1e   :  { %1346 = vmatprep.subr.bf16.mxu1 %v1455_v29  ;;  %v1535_v19 = vld [vmem:[%s1879_s0 + $0x188] ss:$16 sps:$4 sm:$0xff]   ;;  %v1811_v22 = vld [vmem:[%s1880_s2] ss:$0 sm:$0xff] }
  0x20   :  { %1253 = vmatpush3.bf16.msra.mxu0 %v1456_v30 }
  0x21   :  { %1347 = vmatpush3.bf16.msra.mxu1 %v1457_v31 }
  0x23   :  { %623 = vmatmul.mubr.bf16.vlgmr.msra.gmra.mxu0 %v1458_v32 }
  0x24   :  { %760 = vmatmul.mubr.bf16.vlgmr.msra.gmra.mxu1 %v1461_v34  ;;  %630 = vmatprep.mubr.bf16.mxu0 %v1464_v36 }
  0x25   :  { %767 = vmatprep.mubr.bf16.mxu1 %v1466_v37 }
  0x2b   :  { %631 = vmatmul.mubr.bf16.gmra.mxu0 %v1468_v38 }
  0x2c   :  { %768 = vmatmul.mubr.bf16.gmra.mxu1 %v1469_v39  ;;  %638 = vmatprep.mubr.bf16.mxu0 %v1470_v40 }
  0x2d   :  { %775 = vmatprep.mubr.bf16.mxu1 %v1472_v41 }
  0x33   :  { %639 = vmatmul.mubr.bf16.gmra.mxu0 %v1474_v42 }
  0x34   :  { %776 = vmatmul.mubr.bf16.gmra.mxu1 %v1475_v43  ;;  %646 = vmatprep.mubr.bf16.mxu0 %v1476_v44 }
  0x35   :  { %783 = vmatprep.mubr.bf16.mxu1 %v1478_v45 }
  0x3b   :  { %647 = vmatmul.mubr.bf16.gmra.mxu0 %v1480_v46 }
  0x3c   :  { %784 = vmatmul.mubr.bf16.gmra.mxu1 %v1481_v47  ;;  %654 = vmatprep.mubr.bf16.mxu0 %v1482_v48 }
  0x3d   :  { %791 = vmatprep.mubr.bf16.mxu1 %v1484_v49 }
  0x43   :  { %655 = vmatmul.mubr.bf16.gmra.mxu0 %v1486_v50 }
  0x44   :  { %792 = vmatmul.mubr.bf16.gmra.mxu1 %v1487_v51  ;;  %662 = vmatprep.mubr.bf16.mxu0 %v1488_v52 }
  0x45   :  { %799 = vmatprep.mubr.bf16.mxu1 %v1490_v53 }
  0x4b   :  { %663 = vmatmul.mubr.bf16.gmra.mxu0 %v1492_v54 }
  0x4c   :  { %800 = vmatmul.mubr.bf16.gmra.mxu1 %v1493_v55  ;;  %670 = vmatprep.mubr.bf16.mxu0 %v1494_v56 }
  0x4d   :  { %807 = vmatprep.mubr.bf16.mxu1 %v1496_v57 }
  0x53   :  { %671 = vmatmul.mubr.bf16.gmra.mxu0 %v1498_v58 }
  0x54   :  { %808 = vmatmul.mubr.bf16.gmra.mxu1 %v1499_v59  ;;  %678 = vmatprep.mubr.bf16.mxu0 %v1500_v60 }
  0x55   :  { %815 = vmatprep.mubr.bf16.mxu1 %v1502_v61 }
  0x5b   :  { %679 = vmatmul.mubr.bf16.gmra.mxu0 %v1504_v62 }
  0x5c   :  { %816 = vmatmul.mubr.bf16.gmra.mxu1 %v1505_v63  ;;  %686 = vmatprep.mubr.bf16.mxu0 %v1506_v0 }
  0x5d   :  { %823 = vmatprep.mubr.bf16.mxu1 %v1508_v1 }
  0x63   :  { %687 = vmatmul.mubr.bf16.gmra.mxu0 %v1510_v2 }
  0x64   :  { %824 = vmatmul.mubr.bf16.gmra.mxu1 %v1511_v3  ;;  %694 = vmatprep.mubr.bf16.mxu0 %v1512_v4 }
  0x65   :  { %831 = vmatprep.mubr.bf16.mxu1 %v1514_v5 }
  0x6b   :  { %695 = vmatmul.mubr.bf16.gmra.mxu0 %v1516_v6 }
  0x6c   :  { %832 = vmatmul.mubr.bf16.gmra.mxu1 %v1517_v7  ;;  %702 = vmatprep.mubr.bf16.mxu0 %v1518_v8 }
  0x6d   :  { %839 = vmatprep.mubr.bf16.mxu1 %v1520_v9 }
  0x73   :  { %703 = vmatmul.mubr.bf16.gmra.mxu0 %v1522_v10 }
  0x74   :  { %840 = vmatmul.mubr.bf16.gmra.mxu1 %v1523_v11  ;;  %710 = vmatprep.mubr.bf16.mxu0 %v1524_v12 }
  0x75   :  { %847 = vmatprep.mubr.bf16.mxu1 %v1526_v13 }
  0x7b   :  { %711 = vmatmul.mubr.bf16.gmra.mxu0 %v1528_v14 }
  0x7c   :  { %848 = vmatmul.mubr.bf16.gmra.mxu1 %v1529_v15  ;;  %718 = vmatprep.mubr.bf16.mxu0 %v1530_v16 }
  0x7d   :  { %855 = vmatprep.mubr.bf16.mxu1 %v1532_v17 }
  0x83   :  { %719 = vmatmul.mubr.bf16.gmra.mxu0 %v1534_v18 }
  0x84   :  { %856 = vmatmul.mubr.bf16.gmra.mxu1 %v1535_v19 }
  0xe3   :  { %v1254_v20 = vpop.f32.mrf.mxu0 }
  0xe4   :  { %v1348_v21 = vpop.f32.mrf.mxu1 }
  0xe5   :  { %v1255_v23 = vpop.f32.mrf.mxu0 }
  0xe6   :  { %v1256_v24 = vadd.f32 %v1255_v23, %v1254_v20  ;;  %v1349_v25 = vpop.f32.mrf.mxu1 }
  0xe7   :  { %v1257_v26 = vpop.f32.mrf.mxu0  ;;  %v1350_v30 = vadd.f32 %v1349_v25, %v1348_v21 }
  0xe8   :  { %v625_v27 = vadd.f32 %v1256_v24, %v1811_v22  ;;  %v1351_v28 = vpop.f32.mrf.mxu1 }
  0xe9   :  { %v1258_v29 = vpop.f32.mrf.mxu0 }
  0xea   :  { %v1259_v31 = vadd.f32 %v1258_v29, %v1257_v26  ;;  %v1352_v32 = vpop.f32.mrf.mxu1  ;;  %v762_v34 = vadd.f32 %v1350_v30, %v625_v27 }
  0xeb   :  { %v1260_v33 = vpop.f32.mrf.mxu0  ;;  %v1353_v36 = vadd.f32 %v1352_v32, %v1351_v28 }
  0xec   :  { %v628_v35 = vadd.f32 %v1259_v31, %v1811_v22  ;;  %v1354_v37 = vpop.f32.mrf.mxu1  ;;  %v864_v43 = vmax.f32 %v762_v34, 0.0 }
  0xed   :  { %v1261_v38 = vpop.f32.mrf.mxu0 }
  0xee   :  { %v765_v39 = vadd.f32 %v1353_v36, %v628_v35  ;;  %v1262_v40 = vadd.f32 %v1261_v38, %v1260_v33  ;;  %v1355_v41 = vpop.f32.mrf.mxu1 }
  0xef   :  { %v1263_v42 = vpop.f32.mrf.mxu0  ;;  %v1356_v49 = vadd.f32 %v1355_v41, %v1354_v37 }
  0xf0   :  { %v865_v44 = vmax.f32 %v765_v39, 0.0  ;;  %v633_v45 = vadd.f32 %v1262_v40, %v1811_v22  ;;  %v1357_v46 = vpop.f32.mrf.mxu1 }
  0xf1   :  { %v1264_v47 = vpop.f32.mrf.mxu0 }
  0xf2   :  { %v1164_v48 = vpack.c.bf16 %v865_v44, %v864_v43  ;;  %v1265_v50 = vadd.f32 %v1264_v47, %v1263_v42  ;;  %v1358_v51 = vpop.f32.mrf.mxu1  ;;  %v770_v53 = vadd.f32 %v1356_v49, %v633_v45 }
  0xf3   :  { %v1266_v52 = vpop.f32.mrf.mxu0  ;;  %v1359_v55 = vadd.f32 %v1358_v51, %v1357_v46 }
  0xf4   :  { %1165 = vst [vmem:[%s1881_s3] sm:$0xff] %v1164_v48   ;;  %v636_v54 = vadd.f32 %v1265_v50, %v1811_v22  ;;  %v1360_v56 = vpop.f32.mrf.mxu1  ;;  %v866_v62 = vmax.f32 %v770_v53, 0.0 }
  0xf5   :  { %v1267_v57 = vpop.f32.mrf.mxu0 }
  0xf6   :  { %v773_v58 = vadd.f32 %v1359_v55, %v636_v54  ;;  %v1268_v59 = vadd.f32 %v1267_v57, %v1266_v52  ;;  %v1361_v60 = vpop.f32.mrf.mxu1 }
  0xf7   :  { %v1269_v61 = vpop.f32.mrf.mxu0  ;;  %v1362_v4 = vadd.f32 %v1361_v60, %v1360_v56 }
  0xf8   :  { %v867_v63 = vmax.f32 %v773_v58, 0.0  ;;  %v641_v0 = vadd.f32 %v1268_v59, %v1811_v22  ;;  %v1363_v1 = vpop.f32.mrf.mxu1 }
  0xf9   :  { %v1270_v2 = vpop.f32.mrf.mxu0 }
  0xfa   :  { %v1169_v3 = vpack.c.bf16 %v867_v63, %v866_v62  ;;  %v1271_v5 = vadd.f32 %v1270_v2, %v1269_v61  ;;  %v1364_v6 = vpop.f32.mrf.mxu1  ;;  %v778_v8 = vadd.f32 %v1362_v4, %v641_v0 }
  0xfb   :  { %v1272_v7 = vpop.f32.mrf.mxu0  ;;  %v1365_v10 = vadd.f32 %v1364_v6, %v1363_v1 }
  0xfc   :  { %1226 = vst [vmem:[%s1881_s3 + $0x8] sm:$0xff] %v1169_v3   ;;  %v644_v9 = vadd.f32 %v1271_v5, %v1811_v22  ;;  %v1366_v11 = vpop.f32.mrf.mxu1  ;;  %v868_v17 = vmax.f32 %v778_v8, 0.0 }
  0xfd   :  { %v1273_v12 = vpop.f32.mrf.mxu0 }
  0xfe   :  { %v781_v13 = vadd.f32 %v1365_v10, %v644_v9  ;;  %v1274_v14 = vadd.f32 %v1273_v12, %v1272_v7  ;;  %v1367_v15 = vpop.f32.mrf.mxu1 }
  0xff   :  { %v1275_v16 = vpop.f32.mrf.mxu0  ;;  %v1368_v24 = vadd.f32 %v1367_v15, %v1366_v11 }
 0x100   :  { %v869_v18 = vmax.f32 %v781_v13, 0.0  ;;  %v649_v19 = vadd.f32 %v1274_v14, %v1811_v22  ;;  %v1369_v20 = vpop.f32.mrf.mxu1 }
 0x101   :  { %v1276_v21 = vpop.f32.mrf.mxu0 }
 0x102   :  { %v1174_v23 = vpack.c.bf16 %v869_v18, %v868_v17  ;;  %v1277_v25 = vadd.f32 %v1276_v21, %v1275_v16  ;;  %v1370_v26 = vpop.f32.mrf.mxu1  ;;  %v786_v28 = vadd.f32 %v1368_v24, %v649_v19 }
 0x103   :  { %v1278_v27 = vpop.f32.mrf.mxu0  ;;  %v1371_v30 = vadd.f32 %v1370_v26, %v1369_v20 }
 0x104   :  { %1227 = vst [vmem:[%s1881_s3 + $0x10] sm:$0xff] %v1174_v23   ;;  %v652_v29 = vadd.f32 %v1277_v25, %v1811_v22  ;;  %v1372_v31 = vpop.f32.mrf.mxu1  ;;  %v870_v37 = vmax.f32 %v786_v28, 0.0 }
 0x105   :  { %v1279_v32 = vpop.f32.mrf.mxu0 }
 0x106   :  { %v789_v33 = vadd.f32 %v1371_v30, %v652_v29  ;;  %v1280_v34 = vadd.f32 %v1279_v32, %v1278_v27  ;;  %v1373_v35 = vpop.f32.mrf.mxu1 }
 0x107   :  { %v1281_v36 = vpop.f32.mrf.mxu0  ;;  %v1374_v43 = vadd.f32 %v1373_v35, %v1372_v31 }
 0x108   :  { %v871_v38 = vmax.f32 %v789_v33, 0.0  ;;  %v657_v39 = vadd.f32 %v1280_v34, %v1811_v22  ;;  %v1375_v40 = vpop.f32.mrf.mxu1 }
 0x109   :  { %v1282_v41 = vpop.f32.mrf.mxu0 }
 0x10a   :  { %v1179_v42 = vpack.c.bf16 %v871_v38, %v870_v37  ;;  %v1283_v44 = vadd.f32 %v1282_v41, %v1281_v36  ;;  %v1376_v45 = vpop.f32.mrf.mxu1  ;;  %v794_v47 = vadd.f32 %v1374_v43, %v657_v39 }
 0x10b   :  { %v1284_v46 = vpop.f32.mrf.mxu0  ;;  %v1377_v49 = vadd.f32 %v1376_v45, %v1375_v40 }
 0x10c   :  { %1228 = vst [vmem:[%s1881_s3 + $0x18] sm:$0xff] %v1179_v42   ;;  %v660_v48 = vadd.f32 %v1283_v44, %v1811_v22  ;;  %v1378_v50 = vpop.f32.mrf.mxu1  ;;  %v872_v56 = vmax.f32 %v794_v47, 0.0 }
 0x10d   :  { %v1285_v51 = vpop.f32.mrf.mxu0 }
 0x10e   :  { %v797_v52 = vadd.f32 %v1377_v49, %v660_v48  ;;  %v1286_v53 = vadd.f32 %v1285_v51, %v1284_v46  ;;  %v1379_v54 = vpop.f32.mrf.mxu1 }
 0x10f   :  { %v1287_v55 = vpop.f32.mrf.mxu0  ;;  %v1380_v62 = vadd.f32 %v1379_v54, %v1378_v50 }
 0x110   :  { %v873_v57 = vmax.f32 %v797_v52, 0.0  ;;  %v665_v58 = vadd.f32 %v1286_v53, %v1811_v22  ;;  %v1381_v59 = vpop.f32.mrf.mxu1 }
 0x111   :  { %v1288_v60 = vpop.f32.mrf.mxu0 }
 0x112   :  { %v1184_v61 = vpack.c.bf16 %v873_v57, %v872_v56  ;;  %v1289_v63 = vadd.f32 %v1288_v60, %v1287_v55  ;;  %v1382_v0 = vpop.f32.mrf.mxu1  ;;  %v802_v2 = vadd.f32 %v1380_v62, %v665_v58 }
 0x113   :  { %v1290_v1 = vpop.f32.mrf.mxu0  ;;  %v1383_v4 = vadd.f32 %v1382_v0, %v1381_v59 }
 0x114   :  { %1229 = vst [vmem:[%s1881_s3 + $0x20] sm:$0xff] %v1184_v61   ;;  %v668_v3 = vadd.f32 %v1289_v63, %v1811_v22  ;;  %v1384_v5 = vpop.f32.mrf.mxu1  ;;  %v874_v11 = vmax.f32 %v802_v2, 0.0 }
 0x115   :  { %v1291_v6 = vpop.f32.mrf.mxu0 }
 0x116   :  { %v805_v7 = vadd.f32 %v1383_v4, %v668_v3  ;;  %v1292_v8 = vadd.f32 %v1291_v6, %v1290_v1  ;;  %v1385_v9 = vpop.f32.mrf.mxu1 }
 0x117   :  { %v1293_v10 = vpop.f32.mrf.mxu0  ;;  %v1386_v17 = vadd.f32 %v1385_v9, %v1384_v5 }
 0x118   :  { %v875_v12 = vmax.f32 %v805_v7, 0.0  ;;  %v673_v13 = vadd.f32 %v1292_v8, %v1811_v22  ;;  %v1387_v14 = vpop.f32.mrf.mxu1 }
 0x119   :  { %v1294_v15 = vpop.f32.mrf.mxu0 }
 0x11a   :  { %v1189_v16 = vpack.c.bf16 %v875_v12, %v874_v11  ;;  %v1295_v18 = vadd.f32 %v1294_v15, %v1293_v10  ;;  %v1388_v19 = vpop.f32.mrf.mxu1  ;;  %v810_v21 = vadd.f32 %v1386_v17, %v673_v13 }
 0x11b   :  { %v1296_v20 = vpop.f32.mrf.mxu0  ;;  %v1389_v24 = vadd.f32 %v1388_v19, %v1387_v14 }
 0x11c   :  { %1230 = vst [vmem:[%s1881_s3 + $0x28] sm:$0xff] %v1189_v16   ;;  %v676_v23 = vadd.f32 %v1295_v18, %v1811_v22  ;;  %v1390_v25 = vpop.f32.mrf.mxu1  ;;  %v876_v31 = vmax.f32 %v810_v21, 0.0 }
 0x11d   :  { %v1297_v26 = vpop.f32.mrf.mxu0 }
 0x11e   :  { %v813_v27 = vadd.f32 %v1389_v24, %v676_v23  ;;  %v1298_v28 = vadd.f32 %v1297_v26, %v1296_v20  ;;  %v1391_v29 = vpop.f32.mrf.mxu1 }
 0x11f   :  { %v1299_v30 = vpop.f32.mrf.mxu0  ;;  %v1392_v37 = vadd.f32 %v1391_v29, %v1390_v25 }
 0x120   :  { %v877_v32 = vmax.f32 %v813_v27, 0.0  ;;  %v681_v33 = vadd.f32 %v1298_v28, %v1811_v22  ;;  %v1393_v34 = vpop.f32.mrf.mxu1 }
 0x121   :  { %v1300_v35 = vpop.f32.mrf.mxu0 }
 0x122   :  { %v1194_v36 = vpack.c.bf16 %v877_v32, %v876_v31  ;;  %v1301_v38 = vadd.f32 %v1300_v35, %v1299_v30  ;;  %v1394_v39 = vpop.f32.mrf.mxu1  ;;  %v818_v41 = vadd.f32 %v1392_v37, %v681_v33 }
 0x123   :  { %v1302_v40 = vpop.f32.mrf.mxu0  ;;  %v1395_v43 = vadd.f32 %v1394_v39, %v1393_v34 }
 0x124   :  { %1231 = vst [vmem:[%s1881_s3 + $0x30] sm:$0xff] %v1194_v36   ;;  %v684_v42 = vadd.f32 %v1301_v38, %v1811_v22  ;;  %v1396_v44 = vpop.f32.mrf.mxu1  ;;  %v878_v50 = vmax.f32 %v818_v41, 0.0 }
 0x125   :  { %v1303_v45 = vpop.f32.mrf.mxu0 }
 0x126   :  { %v821_v46 = vadd.f32 %v1395_v43, %v684_v42  ;;  %v1304_v47 = vadd.f32 %v1303_v45, %v1302_v40  ;;  %v1397_v48 = vpop.f32.mrf.mxu1 }
 0x127   :  { %v1305_v49 = vpop.f32.mrf.mxu0  ;;  %v1398_v56 = vadd.f32 %v1397_v48, %v1396_v44 }
 0x128   :  { %v879_v51 = vmax.f32 %v821_v46, 0.0  ;;  %v689_v52 = vadd.f32 %v1304_v47, %v1811_v22  ;;  %v1399_v53 = vpop.f32.mrf.mxu1 }
 0x129   :  { %v1306_v54 = vpop.f32.mrf.mxu0 }
 0x12a   :  { %v1199_v55 = vpack.c.bf16 %v879_v51, %v878_v50  ;;  %v1307_v57 = vadd.f32 %v1306_v54, %v1305_v49  ;;  %v1400_v58 = vpop.f32.mrf.mxu1  ;;  %v826_v60 = vadd.f32 %v1398_v56, %v689_v52 }
 0x12b   :  { %v1308_v59 = vpop.f32.mrf.mxu0  ;;  %v1401_v62 = vadd.f32 %v1400_v58, %v1399_v53 }
 0x12c   :  { %1232 = vst [vmem:[%s1881_s3 + $0x38] sm:$0xff] %v1199_v55   ;;  %v692_v61 = vadd.f32 %v1307_v57, %v1811_v22  ;;  %v1402_v63 = vpop.f32.mrf.mxu1  ;;  %v880_v5 = vmax.f32 %v826_v60, 0.0 }
 0x12d   :  { %v1309_v0 = vpop.f32.mrf.mxu0 }
 0x12e   :  { %v829_v1 = vadd.f32 %v1401_v62, %v692_v61  ;;  %v1310_v2 = vadd.f32 %v1309_v0, %v1308_v59  ;;  %v1403_v3 = vpop.f32.mrf.mxu1 }
 0x12f   :  { %v1311_v4 = vpop.f32.mrf.mxu0  ;;  %v1404_v11 = vadd.f32 %v1403_v3, %v1402_v63 }
 0x130   :  { %v881_v6 = vmax.f32 %v829_v1, 0.0  ;;  %v697_v7 = vadd.f32 %v1310_v2, %v1811_v22  ;;  %v1405_v8 = vpop.f32.mrf.mxu1 }
 0x131   :  { %v1312_v9 = vpop.f32.mrf.mxu0 }
 0x132   :  { %v1204_v10 = vpack.c.bf16 %v881_v6, %v880_v5  ;;  %v1313_v12 = vadd.f32 %v1312_v9, %v1311_v4  ;;  %v1406_v13 = vpop.f32.mrf.mxu1  ;;  %v834_v15 = vadd.f32 %v1404_v11, %v697_v7 }
 0x133   :  { %v1314_v14 = vpop.f32.mrf.mxu0  ;;  %v1407_v17 = vadd.f32 %v1406_v13, %v1405_v8 }
 0x134   :  { %1233 = vst [vmem:[%s1881_s3 + $0x40] sm:$0xff] %v1204_v10   ;;  %v700_v16 = vadd.f32 %v1313_v12, %v1811_v22  ;;  %v1408_v18 = vpop.f32.mrf.mxu1  ;;  %v882_v25 = vmax.f32 %v834_v15, 0.0 }
 0x135   :  { %v1315_v19 = vpop.f32.mrf.mxu0 }
 0x136   :  { %v837_v20 = vadd.f32 %v1407_v17, %v700_v16  ;;  %v1316_v21 = vadd.f32 %v1315_v19, %v1314_v14  ;;  %v1409_v23 = vpop.f32.mrf.mxu1 }
 0x137   :  { %v1317_v24 = vpop.f32.mrf.mxu0  ;;  %v1410_v31 = vadd.f32 %v1409_v23, %v1408_v18 }
 0x138   :  { %v883_v26 = vmax.f32 %v837_v20, 0.0  ;;  %v705_v27 = vadd.f32 %v1316_v21, %v1811_v22  ;;  %v1411_v28 = vpop.f32.mrf.mxu1 }
 0x139   :  { %v1318_v29 = vpop.f32.mrf.mxu0 }
 0x13a   :  { %v1209_v30 = vpack.c.bf16 %v883_v26, %v882_v25  ;;  %v1319_v32 = vadd.f32 %v1318_v29, %v1317_v24  ;;  %v1412_v33 = vpop.f32.mrf.mxu1  ;;  %v842_v35 = vadd.f32 %v1410_v31, %v705_v27 }
 0x13b   :  { %v1320_v34 = vpop.f32.mrf.mxu0  ;;  %v1413_v37 = vadd.f32 %v1412_v33, %v1411_v28 }
 0x13c   :  { %1234 = vst [vmem:[%s1881_s3 + $0x48] sm:$0xff] %v1209_v30   ;;  %v708_v36 = vadd.f32 %v1319_v32, %v1811_v22  ;;  %v1414_v38 = vpop.f32.mrf.mxu1  ;;  %v884_v44 = vmax.f32 %v842_v35, 0.0 }
 0x13d   :  { %v1321_v39 = vpop.f32.mrf.mxu0 }
 0x13e   :  { %v845_v40 = vadd.f32 %v1413_v37, %v708_v36  ;;  %v1322_v41 = vadd.f32 %v1321_v39, %v1320_v34  ;;  %v1415_v42 = vpop.f32.mrf.mxu1 }
 0x13f   :  { %v1323_v43 = vpop.f32.mrf.mxu0  ;;  %v1416_v50 = vadd.f32 %v1415_v42, %v1414_v38 }
 0x140   :  { %v885_v45 = vmax.f32 %v845_v40, 0.0  ;;  %v713_v46 = vadd.f32 %v1322_v41, %v1811_v22  ;;  %v1417_v47 = vpop.f32.mrf.mxu1 }
 0x141   :  { %v1324_v48 = vpop.f32.mrf.mxu0 }
 0x142   :  { %v1214_v49 = vpack.c.bf16 %v885_v45, %v884_v44  ;;  %v1325_v51 = vadd.f32 %v1324_v48, %v1323_v43  ;;  %v1418_v52 = vpop.f32.mrf.mxu1  ;;  %v850_v54 = vadd.f32 %v1416_v50, %v713_v46 }
 0x143   :  { %v1326_v53 = vpop.f32.mrf.mxu0  ;;  %v1419_v56 = vadd.f32 %v1418_v52, %v1417_v47 }
 0x144   :  { %1235 = vst [vmem:[%s1881_s3 + $0x50] sm:$0xff] %v1214_v49   ;;  %v716_v55 = vadd.f32 %v1325_v51, %v1811_v22  ;;  %v1420_v57 = vpop.f32.mrf.mxu1  ;;  %v886_v63 = vmax.f32 %v850_v54, 0.0 }
 0x145   :  { %v1327_v58 = vpop.f32.mrf.mxu0 }
 0x146   :  { %v853_v59 = vadd.f32 %v1419_v56, %v716_v55  ;;  %v1328_v60 = vadd.f32 %v1327_v58, %v1326_v53  ;;  %v1421_v61 = vpop.f32.mrf.mxu1 }
 0x147   :  { %v1329_v62 = vpop.f32.mrf.mxu0  ;;  %v1422_v5 = vadd.f32 %v1421_v61, %v1420_v57 }
 0x148   :  { %v887_v0 = vmax.f32 %v853_v59, 0.0  ;;  %v721_v1 = vadd.f32 %v1328_v60, %v1811_v22  ;;  %v1423_v2 = vpop.f32.mrf.mxu1 }
 0x149   :  { %v1330_v3 = vpop.f32.mrf.mxu0 }
 0x14a   :  { %v1219_v4 = vpack.c.bf16 %v887_v0, %v886_v63  ;;  %v1331_v6 = vadd.f32 %v1330_v3, %v1329_v62  ;;  %v1424_v7 = vpop.f32.mrf.mxu1  ;;  %v858_v8 = vadd.f32 %v1422_v5, %v721_v1 }
 0x14b   :  { %v1425_v10 = vadd.f32 %v1424_v7, %v1423_v2 }
 0x14c   :  { %1236 = vst [vmem:[%s1881_s3 + $0x58] sm:$0xff] %v1219_v4   ;;  %v724_v9 = vadd.f32 %v1331_v6, %v1811_v22  ;;  %v888_v12 = vmax.f32 %v858_v8, 0.0 }
 0x14e   :  { %v861_v11 = vadd.f32 %v1425_v10, %v724_v9 }
 0x150   :  { %v889_v13 = vmax.f32 %v861_v11, 0.0 }
 0x152   :  { %v1224_v14 = vpack.c.bf16 %v889_v13, %v888_v12 }
 0x154   :  { %1237 = vst [vmem:[%s1881_s3 + $0x60] sm:$0xff] %v1224_v14  }

// kernel: dqn_forward.6
= control target key start
LH: loop header
LB: loop body
LE: loop exit
PB: predicated region body
PF: predicated region fallthrough
CT: control target
= control target key end

     0   :  { %v1990_v23 = vmov 0.0   ;;  %vm1991_vm0 = vmmov 0   ;;  %s2551_s1 = inlined_call_operand.vmem [shape: bf16[640,128], index: 1, kind: input, shape index: {}]   ;;  %s2552_s0 = inlined_call_operand.vmem [shape: bf16[208,640], index: 0, kind: input, shape index: {}]   ;;  %s2553_s2 = inlined_call_operand.vmem [shape: f32[1,128], index: 2, kind: input, shape index: {}]   ;;  %s2554_s3 = inlined_call_operand.vmem [shape: bf16[208,128], index: 3, kind: output, shape index: {}]  }
   0x1   :  { %v1859_v0 = vld [vmem:[%s2551_s1 + $0x78] sm:$0xff]   ;;  %v1861_v2 = vld [vmem:[%s2551_s1 + $0x70] sm:$0xff]   ;;  %v1863_v4 = vld [vmem:[%s2551_s1 + $0x68] sm:$0xff]  }
   0x2   :  { %v1860_v1 = vld [vmem:[%s2551_s1 + $0x38] sm:$0xff]   ;;  %1564 = vmatprep.subr.bf16.mxu0 %v1859_v0  ;;  %1841 = vmatprep.subr.bf16.mxu1 %v1859_v0  ;;  %v1862_v3 = vld [vmem:[%s2551_s1 + $0x30] sm:$0xff]   ;;  %v1864_v5 = vld [vmem:[%s2551_s1 + $0x28] sm:$0xff]  }
   0x3   :  { %1565 = vmatpush3.bf16.msra.mxu0 %v1860_v1  ;;  %1849 = vmatpush3.bf16.msra.mxu1 %v1860_v1  ;;  %v1865_v6 = vld [vmem:[%s2551_s1 + $0x60] sm:$0xff]   ;;  %v1867_v8 = vld [vmem:[%s2551_s1 + $0x58] sm:$0xff]   ;;  %v1869_v10 = vld [vmem:[%s2551_s1 + $0x50] sm:$0xff]  }
   0x4   :  { %1566 = vmatprep.subr.bf16.mxu0 %v1861_v2  ;;  %1842 = vmatprep.subr.bf16.mxu1 %v1861_v2  ;;  %v1866_v7 = vld [vmem:[%s2551_s1 + $0x20] sm:$0xff]   ;;  %v1868_v9 = vld [vmem:[%s2551_s1 + $0x18] sm:$0xff]   ;;  %v1870_v13 = vld [vmem:[%s2551_s1 + $0x10] sm:$0xff]  }
   0x5   :  { %v1877_v11 = vld [vmem:[%s2552_s0 + $0x4] ss:$20 sps:$4 sm:$0xff]   ;;  %v1880_v12 = vld [vmem:[%s2552_s0 + $0x11c] ss:$20 sps:$4 sm:$0xff]   ;;  %v1871_v14 = vld [vmem:[%s2551_s1 + $0x48] sm:$0xff]  }
   0x6   :  { %790 = vmatprep.mubr.bf16.mxu0 %v1877_v11  ;;  %846 = vmatprep.mubr.bf16.mxu1 %v1880_v12  ;;  %v1872_v15 = vld [vmem:[%s2551_s1 + $0x8] sm:$0xff]   ;;  %v1873_v16 = vld [vmem:[%s2551_s1 + $0x40] sm:$0xff]   ;;  %v1882_v19 = vld [vmem:[%s2551_s1 + $0xf8] sm:$0xff]  }
   0x7   :  { %1567 = vmatpush3.bf16.msra.mxu0 %v1862_v3  ;;  %1850 = vmatpush3.bf16.msra.mxu1 %v1862_v3  ;;  %v1874_v17 = vld [vmem:[%s2551_s1] sm:$0xff]   ;;  %v1878_v20 = vld [vmem:[%s2552_s0 + $0x118] ss:$20 sps:$4 sm:$0xff]   ;;  %v1890_v26 = vld [vmem:[%s2551_s1 + $0xf0] sm:$0xff]  }
   0x8   :  { %1568 = vmatprep.subr.bf16.mxu0 %v1863_v4  ;;  %1843 = vmatprep.subr.bf16.mxu1 %v1863_v4  ;;  %v1875_v18 = vld [vmem:[%s2552_s0] ss:$20 sps:$4 sm:$0xff]   ;;  %v1881_v21 = vld [vmem:[%s2551_s1 + $0x138] sm:$0xff]   ;;  %v1893_v30 = vld [vmem:[%s2551_s1 + $0xe8] sm:$0xff]  }
   0x9   :  { %v1883_v22 = vld [vmem:[%s2551_s1 + $0xb8] sm:$0xff]   ;;  %v1884_v24 = vld [vmem:[%s2552_s0 + $0x2c] ss:$20 sps:$4 sm:$0xff]   ;;  %v1891_v27 = vld [vmem:[%s2551_s1 + $0x130] sm:$0xff]  }
   0xa   :  { %v1886_v25 = vld [vmem:[%s2552_s0 + $0x144] ss:$20 sps:$4 sm:$0xff]   ;;  %v1892_v28 = vld [vmem:[%s2551_s1 + $0xb0] sm:$0xff]   ;;  %v1888_v29 = vld [vmem:[%s2552_s0 + $0x28] ss:$20 sps:$4 sm:$0xff]  }
   0xb   :  { %1569 = vmatpush3.bf16.msra.mxu0 %v1864_v5  ;;  %1851 = vmatpush3.bf16.msra.mxu1 %v1864_v5  ;;  %v1889_v31 = vld [vmem:[%s2552_s0 + $0x140] ss:$20 sps:$4 sm:$0xff]   ;;  %v1898_v34 = vld [vmem:[%s2551_s1 + $0xa8] sm:$0xff]   ;;  %v1900_v38 = vld [vmem:[%s2552_s0 + $0x50] ss:$20 sps:$4 sm:$0xff]  }
   0xc   :  { %1570 = vmatprep.subr.bf16.mxu0 %v1865_v6  ;;  %1844 = vmatprep.subr.bf16.mxu1 %v1865_v6  ;;  %v1894_v32 = vld [vmem:[%s2552_s0 + $0x54] ss:$20 sps:$4 sm:$0xff]   ;;  %v1896_v33 = vld [vmem:[%s2552_s0 + $0x16c] ss:$20 sps:$4 sm:$0xff]   ;;  %v1905_v41 = vld [vmem:[%s2552_s0 + $0x7c] ss:$20 sps:$4 sm:$0xff]  }
   0xd   :  { %v1899_v35 = vld [vmem:[%s2551_s1 + $0x128] sm:$0xff]   ;;  %v1902_v36 = vld [vmem:[%s2551_s1 + $0xe0] sm:$0xff]   ;;  %v1911_v42 = vld [vmem:[%s2551_s1 + $0xd8] sm:$0xff]  }
   0xe   :  { %v1903_v37 = vld [vmem:[%s2551_s1 + $0xa0] sm:$0xff]   ;;  %v1901_v39 = vld [vmem:[%s2552_s0 + $0x168] ss:$20 sps:$4 sm:$0xff]   ;;  %v1920_v46 = vld [vmem:[%s2551_s1 + $0xd0] sm:$0xff]  }
   0xf   :  { %1571 = vmatpush3.bf16.msra.mxu0 %v1866_v7  ;;  %1852 = vmatpush3.bf16.msra.mxu1 %v1866_v7  ;;  %v1904_v40 = vld [vmem:[%s2551_s1 + $0x120] sm:$0xff]   ;;  %v1907_v43 = vld [vmem:[%s2552_s0 + $0x194] ss:$20 sps:$4 sm:$0xff]   ;;  %v1912_v44 = vld [vmem:[%s2551_s1 + $0x98] sm:$0xff]  }
  0x10   :  { %1572 = vmatprep.subr.bf16.mxu0 %v1867_v8  ;;  %1845 = vmatprep.subr.bf16.mxu1 %v1867_v8  ;;  %v1913_v45 = vld [vmem:[%s2551_s1 + $0x118] sm:$0xff]   ;;  %v1921_v47 = vld [vmem:[%s2551_s1 + $0x90] sm:$0xff]   ;;  %v1923_v52 = vld [vmem:[%s2551_s1 + $0xc8] sm:$0xff]  }
  0x11   :  { %v1909_v48 = vld [vmem:[%s2552_s0 + $0x78] ss:$20 sps:$4 sm:$0xff]   ;;  %v1910_v49 = vld [vmem:[%s2552_s0 + $0x190] ss:$20 sps:$4 sm:$0xff]   ;;  %v1918_v58 = vld [vmem:[%s2552_s0 + $0xa0] ss:$20 sps:$4 sm:$0xff]  }
  0x12   :  { %v1922_v50 = vld [vmem:[%s2551_s1 + $0x110] sm:$0xff]   ;;  %v1914_v51 = vld [vmem:[%s2552_s0 + $0xa4] ss:$20 sps:$4 sm:$0xff]   ;;  %v1928_v54 = vld [vmem:[%s2551_s1 + $0x88] sm:$0xff]  }
  0x13   :  { %1573 = vmatpush3.bf16.msra.mxu0 %v1868_v9  ;;  %1853 = vmatpush3.bf16.msra.mxu1 %v1868_v9  ;;  %v1916_v53 = vld [vmem:[%s2552_s0 + $0x1bc] ss:$20 sps:$4 sm:$0xff]   ;;  %v1931_v55 = vld [vmem:[%s2551_s1 + $0x108] sm:$0xff]   ;;  %v1932_v56 = vld [vmem:[%s2551_s1 + $0xc0] sm:$0xff]  }
  0x14   :  { %1574 = vmatprep.subr.bf16.mxu0 %v1869_v10  ;;  %1846 = vmatprep.subr.bf16.mxu1 %v1869_v10  ;;  %v1933_v57 = vld [vmem:[%s2551_s1 + $0x80] sm:$0xff]   ;;  %v1919_v60 = vld [vmem:[%s2552_s0 + $0x1b8] ss:$20 sps:$4 sm:$0xff]   ;;  %v1929_v63 = vld [vmem:[%s2552_s0 + $0xc8] ss:$20 sps:$4 sm:$0xff]  }
  0x15   :  { %v1940_v59 = vld [vmem:[%s2551_s1 + $0x100] sm:$0xff]   ;;  %v1934_v1 = vld [vmem:[%s2552_s0 + $0xf4] ss:$20 sps:$4 sm:$0xff]   ;;  %v1945_v8 = vld [vmem:[%s2552_s0 + $0x5c] ss:$20 sps:$4 sm:$0xff]  }
  0x16   :  { %v1924_v61 = vld [vmem:[%s2552_s0 + $0xcc] ss:$20 sps:$4 sm:$0xff]   ;;  %v1926_v62 = vld [vmem:[%s2552_s0 + $0x1e4] ss:$20 sps:$4 sm:$0xff]   ;;  %v1936_v3 = vld [vmem:[%s2552_s0 + $0x8] ss:$20 sps:$4 sm:$0xff]  }
  0x17   :  { %1575 = vmatpush3.bf16.msra.mxu0 %v1870_v13  ;;  %1854 = vmatpush3.bf16.msra.mxu1 %v1870_v13  ;;  %v1930_v0 = vld [vmem:[%s2552_s0 + $0x1e0] ss:$20 sps:$4 sm:$0xff]   ;;  %v1939_v4 = vld [vmem:[%s2552_s0 + $0xf0] ss:$20 sps:$4 sm:$0xff]   ;;  %v1947_v9 = vld [vmem:[%s2552_s0 + $0x58] ss:$20 sps:$4 sm:$0xff]  }
  0x18   :  { %1576 = vmatprep.subr.bf16.mxu0 %v1871_v14  ;;  %1847 = vmatprep.subr.bf16.mxu1 %v1871_v14  ;;  %v1938_v2 = vld [vmem:[%s2552_s0 + $0xc] ss:$20 sps:$4 sm:$0xff]   ;;  %v1941_v5 = vld [vmem:[%s2552_s0 + $0x34] ss:$20 sps:$4 sm:$0xff]   ;;  %v1943_v6 = vld [vmem:[%s2552_s0 + $0x30] ss:$20 sps:$4 sm:$0xff]  }
  0x19   :  { %v1944_v7 = vld [vmem:[%s2552_s0 + $0x10] ss:$20 sps:$4 sm:$0xff]   ;;  %v1948_v10 = vld [vmem:[%s2552_s0 + $0x38] ss:$20 sps:$4 sm:$0xff]   ;;  %v1951_v12 = vld [vmem:[%s2552_s0 + $0x80] ss:$20 sps:$4 sm:$0xff]  }
  0x1a   :  { %v1949_v11 = vld [vmem:[%s2552_s0 + $0x84] ss:$20 sps:$4 sm:$0xff]   ;;  %v1952_v13 = vld [vmem:[%s2552_s0 + $0x60] ss:$20 sps:$4 sm:$0xff]  }
  0x1b   :  { %1577 = vmatpush3.bf16.msra.mxu0 %v1872_v15  ;;  %1855 = vmatpush3.bf16.msra.mxu1 %v1872_v15  ;;  %v1953_v14 = vld [vmem:[%s2552_s0 + $0xac] ss:$20 sps:$4 sm:$0xff]   ;;  %v1955_v15 = vld [vmem:[%s2552_s0 + $0xa8] ss:$20 sps:$4 sm:$0xff]  }
  0x1c   :  { %1578 = vmatprep.subr.bf16.mxu0 %v1873_v16  ;;  %1848 = vmatprep.subr.bf16.mxu1 %v1873_v16  ;;  %v1956_v16 = vld [vmem:[%s2552_s0 + $0x88] ss:$20 sps:$4 sm:$0xff]  }
  0x1f   :  { %1579 = vmatpush3.bf16.msra.mxu0 %v1874_v17  ;;  %1856 = vmatpush3.bf16.msra.mxu1 %v1874_v17  ;;  %v1957_v17 = vld [vmem:[%s2552_s0 + $0xd4] ss:$20 sps:$4 sm:$0xff]  }
  0x20   :  { %1773 = vmatprep.subr.bf16.mxu0 %v1990_v23  ;;  %1658 = vmatprep.subr.bf16.mxu1 %v1882_v19  ;;  %v1960_v19 = vld [vmem:[%s2552_s0 + $0xb0] ss:$20 sps:$4 sm:$0xff]  }
  0x22   :  { %791 = vmatmul.mubr.bf16.vlgmr.msra.gmra.mxu0 %v1875_v18  ;;  %847 = vmatmul.mubr.bf16.vlgmr.msra.gmra.mxu1 %v1878_v20  ;;  %v1959_v18 = vld [vmem:[%s2552_s0 + $0xd0] ss:$20 sps:$4 sm:$0xff]  }
  0x23   :  { %1774 = vmatpush3.bf16.msra.mxu0 %v1881_v21  ;;  %1659 = vmatpush3.bf16.msra.mxu1 %v1883_v22  ;;  %v1961_v20 = vld [vmem:[%s2552_s0 + $0xfc] ss:$20 sps:$4 sm:$0xff]   ;;  %v1963_v21 = vld [vmem:[%s2552_s0 + $0xf8] ss:$20 sps:$4 sm:$0xff]  }
  0x24   :  { %798 = vmatprep.mubr.bf16.mxu0 %v1884_v24  ;;  %854 = vmatprep.mubr.bf16.mxu1 %v1886_v25  ;;  %v1964_v22 = vld [vmem:[%s2552_s0 + $0xd8] ss:$20 sps:$4 sm:$0xff]   ;;  %v1967_v25 = vld [vmem:[%s2552_s0 + $0x120] ss:$20 sps:$4 sm:$0xff]  }
  0x25   :  { %1775 = vmatprep.subr.bf16.mxu0 %v1990_v23  ;;  %1660 = vmatprep.subr.bf16.mxu1 %v1890_v26  ;;  %v1965_v24 = vld [vmem:[%s2552_s0 + $0x124] ss:$20 sps:$4 sm:$0xff]   ;;  %v1968_v26 = vld [vmem:[%s2552_s0 + $0x100] ss:$20 sps:$4 sm:$0xff]  }
  0x27   :  { %1776 = vmatpush3.bf16.msra.mxu0 %v1891_v27  ;;  %1661 = vmatpush3.bf16.msra.mxu1 %v1892_v28  ;;  %v1969_v27 = vld [vmem:[%s2552_s0 + $0x14c] ss:$20 sps:$4 sm:$0xff]   ;;  %v1971_v28 = vld [vmem:[%s2552_s0 + $0x148] ss:$20 sps:$4 sm:$0xff]  }
  0x28   :  { %1662 = vmatprep.subr.bf16.mxu1 %v1893_v30  ;;  %1777 = vmatprep.subr.bf16.mxu0 %v1990_v23  ;;  %v1973_v30 = vld [vmem:[%s2552_s0 + $0x174] ss:$20 sps:$4 sm:$0xff]  }
  0x2a   :  { %799 = vmatmul.mubr.bf16.gmra.mxu0 %v1888_v29  ;;  %855 = vmatmul.mubr.bf16.gmra.mxu1 %v1889_v31  ;;  %v1972_v29 = vld [vmem:[%s2552_s0 + $0x128] ss:$20 sps:$4 sm:$0xff]   ;;  %v1975_v31 = vld [vmem:[%s2552_s0 + $0x170] ss:$20 sps:$4 sm:$0xff]  }
  0x2b   :  { %806 = vmatprep.mubr.bf16.mxu0 %v1894_v32  ;;  %862 = vmatprep.mubr.bf16.mxu1 %v1896_v33  ;;  %v1976_v32 = vld [vmem:[%s2552_s0 + $0x150] ss:$20 sps:$4 sm:$0xff]  }
  0x2c   :  { %1663 = vmatpush3.bf16.msra.mxu1 %v1898_v34  ;;  %1778 = vmatpush3.bf16.msra.mxu0 %v1899_v35  ;;  %v1977_v33 = vld [vmem:[%s2552_s0 + $0x19c] ss:$20 sps:$4 sm:$0xff]   ;;  %v1979_v34 = vld [vmem:[%s2552_s0 + $0x198] ss:$20 sps:$4 sm:$0xff]  }
  0x2d   :  { %1664 = vmatprep.subr.bf16.mxu1 %v1902_v36  ;;  %1779 = vmatprep.subr.bf16.mxu0 %v1990_v23  ;;  %v1980_v35 = vld [vmem:[%s2552_s0 + $0x178] ss:$20 sps:$4 sm:$0xff]  }
  0x2e   :  { %v1981_v36 = vld [vmem:[%s2552_s0 + $0x1c4] ss:$20 sps:$4 sm:$0xff]  }
  0x30   :  { %1665 = vmatpush3.bf16.msra.mxu1 %v1903_v37  ;;  %1780 = vmatpush3.bf16.msra.mxu0 %v1904_v40  ;;  %v1983_v37 = vld [vmem:[%s2552_s0 + $0x1c0] ss:$20 sps:$4 sm:$0xff]   ;;  %v1987_v40 = vld [vmem:[%s2552_s0 + $0x1e8] ss:$20 sps:$4 sm:$0xff]  }
  0x31   :  { %1666 = vmatprep.subr.bf16.mxu1 %v1911_v42  ;;  %1781 = vmatprep.subr.bf16.mxu0 %v1990_v23  ;;  %v1989_v42 = vld [vmem:[%s2552_s0 + $0x1f0] ss:$20 sps:$4 sm:$0xff]  }
  0x32   :  { %807 = vmatmul.mubr.bf16.gmra.mxu0 %v1900_v38  ;;  %863 = vmatmul.mubr.bf16.gmra.mxu1 %v1901_v39  ;;  %v1984_v38 = vld [vmem:[%s2552_s0 + $0x1a0] ss:$20 sps:$4 sm:$0xff]  }
  0x33   :  { %814 = vmatprep.mubr.bf16.mxu0 %v1905_v41  ;;  %870 = vmatprep.mubr.bf16.mxu1 %v1907_v43  ;;  %v1985_v39 = vld [vmem:[%s2552_s0 + $0x1ec] ss:$20 sps:$4 sm:$0xff]   ;;  %v1988_v41 = vld [vmem:[%s2552_s0 + $0x1c8] ss:$20 sps:$4 sm:$0xff]  }
  0x34   :  { %1667 = vmatpush3.bf16.msra.mxu1 %v1912_v44  ;;  %1782 = vmatpush3.bf16.msra.mxu0 %v1913_v45 }
  0x35   :  { %1668 = vmatprep.subr.bf16.mxu1 %v1920_v46  ;;  %1783 = vmatprep.subr.bf16.mxu0 %v1990_v23 }
  0x38   :  { %1669 = vmatpush3.bf16.msra.mxu1 %v1921_v47  ;;  %1784 = vmatpush3.bf16.msra.mxu0 %v1922_v50 }
  0x39   :  { %1670 = vmatprep.subr.bf16.mxu1 %v1923_v52  ;;  %1785 = vmatprep.subr.bf16.mxu0 %v1990_v23 }
  0x3a   :  { %815 = vmatmul.mubr.bf16.gmra.mxu0 %v1909_v48  ;;  %871 = vmatmul.mubr.bf16.gmra.mxu1 %v1910_v49 }
  0x3b   :  { %822 = vmatprep.mubr.bf16.mxu0 %v1914_v51  ;;  %878 = vmatprep.mubr.bf16.mxu1 %v1916_v53 }
  0x3c   :  { %1671 = vmatpush3.bf16.msra.mxu1 %v1928_v54  ;;  %1786 = vmatpush3.bf16.msra.mxu0 %v1931_v55 }
  0x3d   :  { %1672 = vmatprep.subr.bf16.mxu1 %v1932_v56  ;;  %1787 = vmatprep.subr.bf16.mxu0 %v1990_v23 }
  0x40   :  { %1673 = vmatpush3.bf16.msra.mxu1 %v1933_v57  ;;  %1788 = vmatpush3.bf16.msra.mxu0 %v1940_v59  ;;  %v2380_v57 = vld [vmem:[%s2553_s2] ss:$0 sm:$0xff] }
  0x42   :  { %823 = vmatmul.mubr.bf16.gmra.mxu0 %v1918_v58  ;;  %879 = vmatmul.mubr.bf16.gmra.mxu1 %v1919_v60 }
  0x43   :  { %830 = vmatprep.mubr.bf16.mxu0 %v1924_v61  ;;  %886 = vmatprep.mubr.bf16.mxu1 %v1926_v62 }
  0x4a   :  { %831 = vmatmul.mubr.bf16.gmra.mxu0 %v1929_v63  ;;  %887 = vmatmul.mubr.bf16.gmra.mxu1 %v1930_v0 }
  0x4b   :  { %838 = vmatprep.mubr.bf16.mxu0 %v1934_v1  ;;  %927 = vmatprep.mubr.bf16.mxu1 %v1938_v2 }
  0x52   :  { %839 = vmatmul.mubr.bf16.gmra.mxu0 %v1939_v4  ;;  %928 = vmatmul.mubr.bf16.vlgmr.msra.gmra.mxu1 %v1936_v3 }
  0x53   :  { %935 = vmatprep.mubr.bf16.mxu1 %v1941_v5  ;;  %1789 = vmatprep.mubr.msk.bf16.mxu0 %vm1991_vm0, %v1990_v23 }
  0x5a   :  { %936 = vmatmul.mubr.bf16.gmra.mxu1 %v1943_v6  ;;  %1790 = vmatmul.mubr.bf16.vlgmr.msra.gmra.mxu0 %v1944_v7 }
  0x5b   :  { %943 = vmatprep.mubr.bf16.mxu1 %v1945_v8  ;;  %1793 = vmatprep.mubr.msk.bf16.mxu0 %vm1991_vm0, %v1990_v23 }
  0x62   :  { %944 = vmatmul.mubr.bf16.gmra.mxu1 %v1947_v9  ;;  %1794 = vmatmul.mubr.bf16.gmra.mxu0 %v1948_v10 }
  0x63   :  { %951 = vmatprep.mubr.bf16.mxu1 %v1949_v11  ;;  %1797 = vmatprep.mubr.msk.bf16.mxu0 %vm1991_vm0, %v1990_v23 }
  0x6a   :  { %952 = vmatmul.mubr.bf16.gmra.mxu1 %v1951_v12  ;;  %1798 = vmatmul.mubr.bf16.gmra.mxu0 %v1952_v13 }
  0x6b   :  { %959 = vmatprep.mubr.bf16.mxu1 %v1953_v14  ;;  %1801 = vmatprep.mubr.msk.bf16.mxu0 %vm1991_vm0, %v1990_v23 }
  0x72   :  { %960 = vmatmul.mubr.bf16.gmra.mxu1 %v1955_v15  ;;  %1802 = vmatmul.mubr.bf16.gmra.mxu0 %v1956_v16 }
  0x73   :  { %967 = vmatprep.mubr.bf16.mxu1 %v1957_v17  ;;  %1805 = vmatprep.mubr.msk.bf16.mxu0 %vm1991_vm0, %v1990_v23 }
  0x7a   :  { %968 = vmatmul.mubr.bf16.gmra.mxu1 %v1959_v18  ;;  %1806 = vmatmul.mubr.bf16.gmra.mxu0 %v1960_v19 }
  0x7b   :  { %975 = vmatprep.mubr.bf16.mxu1 %v1961_v20  ;;  %1809 = vmatprep.mubr.msk.bf16.mxu0 %vm1991_vm0, %v1990_v23 }
  0x82   :  { %976 = vmatmul.mubr.bf16.gmra.mxu1 %v1963_v21  ;;  %1810 = vmatmul.mubr.bf16.gmra.mxu0 %v1964_v22 }
  0x83   :  { %983 = vmatprep.mubr.bf16.mxu1 %v1965_v24  ;;  %1813 = vmatprep.mubr.msk.bf16.mxu0 %vm1991_vm0, %v1990_v23 }
  0x8a   :  { %984 = vmatmul.mubr.bf16.gmra.mxu1 %v1967_v25  ;;  %1814 = vmatmul.mubr.bf16.gmra.mxu0 %v1968_v26 }
  0x8b   :  { %991 = vmatprep.mubr.bf16.mxu1 %v1969_v27  ;;  %1817 = vmatprep.mubr.msk.bf16.mxu0 %vm1991_vm0, %v1990_v23 }
  0x92   :  { %992 = vmatmul.mubr.bf16.gmra.mxu1 %v1971_v28  ;;  %1818 = vmatmul.mubr.bf16.gmra.mxu0 %v1972_v29 }
  0x93   :  { %999 = vmatprep.mubr.bf16.mxu1 %v1973_v30  ;;  %1821 = vmatprep.mubr.msk.bf16.mxu0 %vm1991_vm0, %v1990_v23 }
  0x9a   :  { %1000 = vmatmul.mubr.bf16.gmra.mxu1 %v1975_v31  ;;  %1822 = vmatmul.mubr.bf16.gmra.mxu0 %v1976_v32 }
  0x9b   :  { %1007 = vmatprep.mubr.bf16.mxu1 %v1977_v33  ;;  %1825 = vmatprep.mubr.msk.bf16.mxu0 %vm1991_vm0, %v1990_v23 }
  0xa2   :  { %1008 = vmatmul.mubr.bf16.gmra.mxu1 %v1979_v34  ;;  %1826 = vmatmul.mubr.bf16.gmra.mxu0 %v1980_v35 }
  0xa3   :  { %1015 = vmatprep.mubr.bf16.mxu1 %v1981_v36  ;;  %1829 = vmatprep.mubr.msk.bf16.mxu0 %vm1991_vm0, %v1990_v23 }
  0xaa   :  { %1016 = vmatmul.mubr.bf16.gmra.mxu1 %v1983_v37  ;;  %1830 = vmatmul.mubr.bf16.gmra.mxu0 %v1984_v38 }
  0xab   :  { %1023 = vmatprep.mubr.bf16.mxu1 %v1985_v39  ;;  %1833 = vmatprep.mubr.msk.bf16.mxu0 %vm1991_vm0, %v1990_v23 }
  0xb2   :  { %1024 = vmatmul.mubr.bf16.gmra.mxu1 %v1987_v40  ;;  %1834 = vmatmul.mubr.bf16.gmra.mxu0 %v1988_v41 }
  0xb3   :  { %1837 = vmatprep.mubr.msk.bf16.mxu0 %vm1991_vm0, %v1990_v23 }
  0xba   :  { %1838 = vmatmul.mubr.bf16.gmra.mxu0 %v1989_v42 }
  0xe2   :  { %v2361_v43 = vpop.f32.mrf.mxu0  ;;  %v1622_v44 = vpop.f32.mrf.mxu1 }
  0xe4   :  { %v2363_v45 = vpop.f32.mrf.mxu0  ;;  %v1623_v46 = vpop.f32.mrf.mxu1 }
  0xe5   :  { %v2365_v47 = vadd.f32 %v1623_v46, %v1622_v44 }
  0xe6   :  { %v2367_v48 = vpop.f32.mrf.mxu0  ;;  %v1625_v49 = vpop.f32.mrf.mxu1 }
  0xe8   :  { %v2369_v50 = vpop.f32.mrf.mxu0  ;;  %v1626_v51 = vpop.f32.mrf.mxu1 }
  0xe9   :  { %v2371_v23 = vadd.f32 %v1626_v51, %v1625_v49 }
  0xea   :  { %v2373_v52 = vpop.f32.mrf.mxu0  ;;  %v1628_v53 = vpop.f32.mrf.mxu1 }
  0xec   :  { %v2375_v54 = vpop.f32.mrf.mxu0  ;;  %v1629_v55 = vpop.f32.mrf.mxu1 }
  0xed   :  { %v1630_v56 = vadd.f32 %v1629_v55, %v1628_v53 }
  0xee   :  { %v2382_v58 = vpop.f32.mrf.mxu0  ;;  %v1631_v59 = vpop.f32.mrf.mxu1 }
  0xef   :  { %v2385_v60 = vadd.f32 %v1630_v56, %v2380_v57 }
  0xf0   :  { %v2387_v61 = vpop.f32.mrf.mxu0  ;;  %v1632_v62 = vpop.f32.mrf.mxu1 }
  0xf1   :  { %v1633_v63 = vadd.f32 %v1632_v62, %v1631_v59 }
  0xf2   :  { %v2389_v0 = vpop.f32.mrf.mxu0  ;;  %v1634_v1 = vpop.f32.mrf.mxu1 }
  0xf3   :  { %v2392_v2 = vadd.f32 %v1633_v63, %v2380_v57 }
  0xf4   :  { %v2394_v3 = vpop.f32.mrf.mxu0  ;;  %v1635_v4 = vpop.f32.mrf.mxu1 }
  0xf5   :  { %v1636_v5 = vadd.f32 %v1635_v4, %v1634_v1  ;;  %v1582_v4 = vadd.f32 %v2363_v45, %v2361_v43  ;;  %v1588_v45 = vadd.f32 %v2375_v54, %v2373_v52 }
  0xf6   :  { %v2396_v6 = vpop.f32.mrf.mxu0  ;;  %v1637_v7 = vpop.f32.mrf.mxu1 }
  0xf7   :  { %v2399_v8 = vadd.f32 %v1636_v5, %v2380_v57 }
  0xf8   :  { %v2401_v9 = vpop.f32.mrf.mxu0  ;;  %v1638_v10 = vpop.f32.mrf.mxu1 }
  0xf9   :  { %v1639_v11 = vadd.f32 %v1638_v10, %v1637_v7  ;;  %v1585_v10 = vadd.f32 %v2369_v50, %v2367_v48 }
  0xfa   :  { %v2403_v12 = vpop.f32.mrf.mxu0  ;;  %v1640_v13 = vpop.f32.mrf.mxu1 }
  0xfb   :  { %v2406_v14 = vadd.f32 %v1639_v11, %v2380_v57 }
  0xfc   :  { %v2408_v15 = vpop.f32.mrf.mxu0  ;;  %v1641_v16 = vpop.f32.mrf.mxu1 }
  0xfd   :  { %v1642_v17 = vadd.f32 %v1641_v16, %v1640_v13 }
  0xfe   :  { %v2410_v18 = vpop.f32.mrf.mxu0  ;;  %v1643_v19 = vpop.f32.mrf.mxu1 }
  0xff   :  { %v2413_v20 = vadd.f32 %v1642_v17, %v2380_v57  ;;  %v793_v17 = vadd.f32 %v1582_v4, %v2380_v57 }
 0x100   :  { %v2415_v21 = vpop.f32.mrf.mxu0  ;;  %v1644_v22 = vpop.f32.mrf.mxu1 }
 0x101   :  { %v1645_v24 = vadd.f32 %v1644_v22, %v1643_v19 }
 0x102   :  { %v2417_v25 = vpop.f32.mrf.mxu0  ;;  %v1646_v26 = vpop.f32.mrf.mxu1 }
 0x103   :  { %v2420_v27 = vadd.f32 %v1645_v24, %v2380_v57 }
 0x104   :  { %v2422_v28 = vpop.f32.mrf.mxu0  ;;  %v1647_v29 = vpop.f32.mrf.mxu1 }
 0x105   :  { %v1648_v30 = vadd.f32 %v1647_v29, %v1646_v26  ;;  %v796_v26 = vadd.f32 %v1585_v10, %v2380_v57 }
 0x106   :  { %v2424_v31 = vpop.f32.mrf.mxu0  ;;  %v1649_v32 = vpop.f32.mrf.mxu1 }
 0x107   :  { %v2427_v33 = vadd.f32 %v1648_v30, %v2380_v57 }
 0x108   :  { %v2429_v34 = vpop.f32.mrf.mxu0  ;;  %v1650_v35 = vpop.f32.mrf.mxu1 }
 0x109   :  { %v1651_v36 = vadd.f32 %v1650_v35, %v1649_v32 }
 0x10a   :  { %v2431_v37 = vpop.f32.mrf.mxu0  ;;  %v1652_v38 = vpop.f32.mrf.mxu1 }
 0x10b   :  { %v2434_v39 = vadd.f32 %v1651_v36, %v2380_v57  ;;  %v1591_v36 = vadd.f32 %v2387_v61, %v2382_v58  ;;  %v1594_v58 = vadd.f32 %v2394_v3, %v2389_v0 }
 0x10c   :  { %v2436_v40 = vpop.f32.mrf.mxu0  ;;  %v1653_v41 = vpop.f32.mrf.mxu1 }
 0x10d   :  { %v1654_v42 = vadd.f32 %v1653_v41, %v1652_v38  ;;  %v804_v52 = vadd.f32 %v1591_v36, %v2380_v57 }
 0x10e   :  { %v2438_v44 = vpop.f32.mrf.mxu0  ;;  %v1655_v46 = vpop.f32.mrf.mxu1 }
 0x10f   :  { %v2441_v49 = vadd.f32 %v1654_v42, %v2380_v57 }
 0x110   :  { %v2443_v51 = vpop.f32.mrf.mxu0  ;;  %v1656_v53 = vpop.f32.mrf.mxu1 }
 0x111   :  { %v1657_v55 = vadd.f32 %v1656_v53, %v1655_v46  ;;  %v801_v53 = vadd.f32 %v1588_v45, %v2380_v57  ;;  %v809_v45 = vadd.f32 %v1594_v58, %v2380_v57 }
 0x112   :  { %v2445_v56 = vpop.f32.mrf.mxu0  ;;  %v1674_v59 = vpop.f32.mrf.mxu1 }
 0x113   :  { %v2448_v62 = vadd.f32 %v1657_v55, %v2380_v57 }
 0x114   :  { %v2450_v63 = vpop.f32.mrf.mxu0  ;;  %v1675_v1 = vpop.f32.mrf.mxu1 }
 0x115   :  { %v1676_v11 = vadd.f32 %v1675_v1, %v1674_v59 }
 0x116   :  { %v2454_v5 = vpop.f32.mrf.mxu0  ;;  %v1677_v7 = vpop.f32.mrf.mxu1 }
 0x117   :  { %v930_v29 = vadd.f32 %v1676_v11, %v793_v17 }
 0x118   :  { %v2458_v13 = vpop.f32.mrf.mxu0  ;;  %v1678_v16 = vpop.f32.mrf.mxu1 }
 0x119   :  { %v1679_v19 = vadd.f32 %v1678_v16, %v1677_v7 }
 0x11a   :  { %v1680_v22 = vpop.f32.mrf.mxu1  ;;  %v1066_v24 = vpop.f32.mrf.mxu0 }
 0x11b   :  { %v1067_v32 = vadd.f32 %v1066_v24, %v930_v29  ;;  %v933_v35 = vadd.f32 %v1679_v19, %v796_v26  ;;  %v1597_v24 = vadd.f32 %v2401_v9, %v2396_v6  ;;  %v1600_v6 = vadd.f32 %v2408_v15, %v2403_v12 }
 0x11c   :  { %v1681_v30 = vpop.f32.mrf.mxu1  ;;  %v1791_v43 = vpop.f32.mrf.mxu0 }
 0x11d   :  { %v1682_v38 = vadd.f32 %v1681_v30, %v1680_v22  ;;  %v1169_v55 = vmax.f32 %v1067_v32, 0.0 }
 0x11e   :  { %v1683_v48 = vpop.f32.mrf.mxu1  ;;  %v1069_v50 = vpop.f32.mrf.mxu0 }
 0x11f   :  { %v1070_v41 = vadd.f32 %v1069_v50, %v933_v35  ;;  %v938_v10 = vadd.f32 %v1682_v38, %v801_v53  ;;  %v812_v50 = vadd.f32 %v1597_v24, %v2380_v57 }
 0x120   :  { %v1684_v42 = vpop.f32.mrf.mxu1  ;;  %v1792_v46 = vpop.f32.mrf.mxu0 }
 0x121   :  { %v1170_v59 = vmax.f32 %v1070_v41, 0.0  ;;  %v1685_v1 = vadd.f32 %v1684_v42, %v1683_v48 }
 0x122   :  { %v1686_v4 = vpop.f32.mrf.mxu1  ;;  %v1074_v7 = vpop.f32.mrf.mxu0 }
 0x123   :  { %v1490_v54 = vpack.c.bf16 %v1170_v59, %v1169_v55  ;;  %v1075_v61 = vadd.f32 %v1074_v7, %v938_v10  ;;  %v941_v17 = vadd.f32 %v1685_v1, %v804_v52  ;;  %v1603_v59 = vadd.f32 %v2415_v21, %v2410_v18 }
 0x124   :  { %v1687_v11 = vpop.f32.mrf.mxu1  ;;  %v1795_v16 = vpop.f32.mrf.mxu0  ;;  %v1606_v18 = vadd.f32 %v2422_v28, %v2417_v25 }
 0x125   :  { %1491 = vst [vmem:[%s2554_s3] sm:$0xff] %v1490_v54   ;;  %v1688_v26 = vadd.f32 %v1687_v11, %v1686_v4  ;;  %v1171_v32 = vmax.f32 %v1075_v61, 0.0  ;;  %v817_v54 = vadd.f32 %v1600_v6, %v2380_v57  ;;  %v820_v58 = vadd.f32 %v1603_v59, %v2380_v57 }
 0x126   :  { %v1689_v19 = vpop.f32.mrf.mxu1  ;;  %v1077_v22 = vpop.f32.mrf.mxu0 }
 0x127   :  { %v1078_v29 = vadd.f32 %v1077_v22, %v941_v17  ;;  %v946_v38 = vadd.f32 %v1688_v26, %v809_v45 }
 0x128   :  { %v1690_v30 = vpop.f32.mrf.mxu1  ;;  %v1796_v43 = vpop.f32.mrf.mxu0 }
 0x129   :  { %v1172_v35 = vmax.f32 %v1078_v29, 0.0  ;;  %v1691_v0 = vadd.f32 %v1690_v30, %v1689_v19  ;;  %v1609_v30 = vadd.f32 %v2429_v34, %v2424_v31  ;;  %v1612_v31 = vadd.f32 %v2436_v40, %v2431_v37 }
 0x12a   :  { %v1692_v3 = vpop.f32.mrf.mxu1  ;;  %v1082_v48 = vpop.f32.mrf.mxu0 }
 0x12b   :  { %v1495_v36 = vpack.c.bf16 %v1172_v35, %v1171_v32  ;;  %v1083_v9 = vadd.f32 %v1082_v48, %v946_v38  ;;  %v949_v46 = vadd.f32 %v1691_v0, %v812_v50  ;;  %v825_v0 = vadd.f32 %v1606_v18, %v2380_v57 }
 0x12c   :  { %v1693_v41 = vpop.f32.mrf.mxu1  ;;  %v1799_v42 = vpop.f32.mrf.mxu0  ;;  %v1621_v18 = vadd.f32 %v2458_v13, %v2454_v5 }
 0x12d   :  { %1552 = vst [vmem:[%s2554_s3 + $0x8] sm:$0xff] %v1495_v36   ;;  %v1694_v1 = vadd.f32 %v1693_v41, %v1692_v3  ;;  %v1173_v10 = vmax.f32 %v1083_v9, 0.0  ;;  %v828_v36 = vadd.f32 %v1609_v30, %v2380_v57 }
 0x12e   :  { %v1695_v53 = vpop.f32.mrf.mxu1  ;;  %v1085_v55 = vpop.f32.mrf.mxu0 }
 0x12f   :  { %v1086_v4 = vadd.f32 %v1085_v55, %v949_v46  ;;  %v954_v17 = vadd.f32 %v1694_v1, %v817_v54  ;;  %v1615_v55 = vadd.f32 %v2443_v51, %v2438_v44  ;;  %v1618_v44 = vadd.f32 %v2450_v63, %v2445_v56 }
 0x130   :  { %v1696_v7 = vpop.f32.mrf.mxu1  ;;  %v1800_v52 = vpop.f32.mrf.mxu0 }
 0x131   :  { %v1174_v11 = vmax.f32 %v1086_v4, 0.0  ;;  %v1697_v12 = vadd.f32 %v1696_v7, %v1695_v53  ;;  %v833_v52 = vadd.f32 %v1612_v31, %v2380_v57  ;;  %v841_v30 = vadd.f32 %v1618_v44, %v2380_v57 }
 0x132   :  { %v1698_v15 = vpop.f32.mrf.mxu1  ;;  %v1090_v16 = vpop.f32.mrf.mxu0 }
 0x133   :  { %v1500_v61 = vpack.c.bf16 %v1174_v11, %v1173_v10  ;;  %v1091_v21 = vadd.f32 %v1090_v16, %v954_v17  ;;  %v957_v24 = vadd.f32 %v1697_v12, %v820_v58  ;;  %v836_v12 = vadd.f32 %v1615_v55, %v2380_v57 }
 0x134   :  { %v1699_v19 = vpop.f32.mrf.mxu1  ;;  %v1803_v22 = vpop.f32.mrf.mxu0  ;;  %v852_v55 = vadd.f32 %v2371_v23, %v2380_v57 }
 0x135   :  { %1553 = vst [vmem:[%s2554_s3 + $0x10] sm:$0xff] %v1500_v61   ;;  %v1700_v43 = vadd.f32 %v1699_v19, %v1698_v15  ;;  %v1175_v3 = vmax.f32 %v1091_v21, 0.0 }
 0x136   :  { %v1701_v26 = vpop.f32.mrf.mxu1  ;;  %v1093_v29 = vpop.f32.mrf.mxu0 }
 0x137   :  { %v1094_v45 = vadd.f32 %v1093_v29, %v957_v24  ;;  %v962_v41 = vadd.f32 %v1700_v43, %v825_v0 }
 0x138   :  { %v1702_v32 = vpop.f32.mrf.mxu1  ;;  %v1804_v35 = vpop.f32.mrf.mxu0 }
 0x139   :  { %v1176_v48 = vmax.f32 %v1094_v45, 0.0  ;;  %v1703_v25 = vadd.f32 %v1702_v32, %v1701_v26  ;;  %v844_v35 = vadd.f32 %v1621_v18, %v2380_v57 }
 0x13a   :  { %v1704_v28 = vpop.f32.mrf.mxu1  ;;  %v1098_v50 = vpop.f32.mrf.mxu0 }
 0x13b   :  { %v1505_v38 = vpack.c.bf16 %v1176_v48, %v1175_v3  ;;  %v1099_v34 = vadd.f32 %v1098_v50, %v962_v41  ;;  %v965_v9 = vadd.f32 %v1703_v25, %v828_v36 }
 0x13c   :  { %v1705_v42 = vpop.f32.mrf.mxu1  ;;  %v1807_v6 = vpop.f32.mrf.mxu0 }
 0x13d   :  { %1554 = vst [vmem:[%s2554_s3 + $0x18] sm:$0xff] %v1505_v38   ;;  %v1706_v59 = vadd.f32 %v1705_v42, %v1704_v28  ;;  %v1177_v54 = vmax.f32 %v1099_v34, 0.0  ;;  %v849_v6 = vadd.f32 %v2365_v47, %v2380_v57 }
 0x13e   :  { %v1707_v46 = vpop.f32.mrf.mxu1  ;;  %v1101_v53 = vpop.f32.mrf.mxu0 }
 0x13f   :  { %v1102_v1 = vadd.f32 %v1101_v53, %v965_v9  ;;  %v970_v16 = vadd.f32 %v1706_v59, %v833_v52 }
 0x140   :  { %v1708_v4 = vpop.f32.mrf.mxu1  ;;  %v1808_v7 = vpop.f32.mrf.mxu0 }
 0x141   :  { %v1178_v10 = vmax.f32 %v1102_v1, 0.0  ;;  %v1709_v37 = vadd.f32 %v1708_v4, %v1707_v46 }
 0x142   :  { %v1710_v40 = vpop.f32.mrf.mxu1  ;;  %v1106_v11 = vpop.f32.mrf.mxu0 }
 0x143   :  { %v1510_v15 = vpack.c.bf16 %v1178_v10, %v1177_v54  ;;  %v1107_v51 = vadd.f32 %v1106_v11, %v970_v16  ;;  %v973_v17 = vadd.f32 %v1709_v37, %v836_v12 }
 0x144   :  { %v1711_v58 = vpop.f32.mrf.mxu1  ;;  %v1811_v61 = vpop.f32.mrf.mxu0 }
 0x145   :  { %1555 = vst [vmem:[%s2554_s3 + $0x20] sm:$0xff] %v1510_v15   ;;  %v1712_v21 = vadd.f32 %v1711_v58, %v1710_v40  ;;  %v1179_v43 = vmax.f32 %v1107_v51, 0.0 }
 0x146   :  { %v1713_v19 = vpop.f32.mrf.mxu1  ;;  %v1109_v22 = vpop.f32.mrf.mxu0 }
 0x147   :  { %v1110_v24 = vadd.f32 %v1109_v22, %v973_v17  ;;  %v978_v3 = vadd.f32 %v1712_v21, %v841_v30 }
 0x148   :  { %v1714_v26 = vpop.f32.mrf.mxu1  ;;  %v1812_v29 = vpop.f32.mrf.mxu0 }
 0x149   :  { %v1180_v45 = vmax.f32 %v1110_v24, 0.0  ;;  %v1715_v56 = vadd.f32 %v1714_v26, %v1713_v19 }
 0x14a   :  { %v1716_v63 = vpop.f32.mrf.mxu1  ;;  %v1114_v32 = vpop.f32.mrf.mxu0 }
 0x14b   :  { %v1515_v0 = vpack.c.bf16 %v1180_v45, %v1179_v43  ;;  %v1115_v5 = vadd.f32 %v1114_v32, %v978_v3  ;;  %v981_v13 = vadd.f32 %v1715_v56, %v844_v35 }
 0x14c   :  { %v1717_v48 = vpop.f32.mrf.mxu1  ;;  %v1815_v25 = vpop.f32.mrf.mxu0 }
 0x14d   :  { %1556 = vst [vmem:[%s2554_s3 + $0x28] sm:$0xff] %v1515_v0   ;;  %v1718_v36 = vadd.f32 %v1717_v48, %v1716_v63  ;;  %v1181_v31 = vmax.f32 %v1115_v5, 0.0 }
 0x14e   :  { %v1719_v28 = vpop.f32.mrf.mxu1  ;;  %v1117_v50 = vpop.f32.mrf.mxu0 }
 0x14f   :  { %v1118_v38 = vadd.f32 %v1117_v50, %v981_v13  ;;  %v986_v1 = vadd.f32 %v1718_v36, %v849_v6 }
 0x150   :  { %v1720_v41 = vpop.f32.mrf.mxu1  ;;  %v1816_v42 = vpop.f32.mrf.mxu0 }
 0x151   :  { %v1182_v34 = vmax.f32 %v1118_v38, 0.0  ;;  %v1721_v9 = vadd.f32 %v1720_v41, %v1719_v28 }
 0x152   :  { %v1722_v46 = vpop.f32.mrf.mxu1  ;;  %v1122_v53 = vpop.f32.mrf.mxu0 }
 0x153   :  { %v1520_v59 = vpack.c.bf16 %v1182_v34, %v1181_v31  ;;  %v1123_v52 = vadd.f32 %v1122_v53, %v986_v1  ;;  %v989_v54 = vadd.f32 %v1721_v9, %v852_v55 }
 0x154   :  { %v1723_v4 = vpop.f32.mrf.mxu1  ;;  %v1819_v7 = vpop.f32.mrf.mxu0 }
 0x155   :  { %1557 = vst [vmem:[%s2554_s3 + $0x30] sm:$0xff] %v1520_v59   ;;  %v1724_v37 = vadd.f32 %v1723_v4, %v1722_v46  ;;  %v1183_v15 = vmax.f32 %v1123_v52, 0.0 }
 0x156   :  { %v1725_v10 = vpop.f32.mrf.mxu1  ;;  %v1125_v47 = vpop.f32.mrf.mxu0 }
 0x157   :  { %v1126_v40 = vadd.f32 %v1125_v47, %v989_v54  ;;  %v994_v44 = vadd.f32 %v1724_v37, %v2385_v60 }
 0x158   :  { %v1726_v11 = vpop.f32.mrf.mxu1  ;;  %v1820_v12 = vpop.f32.mrf.mxu0 }
 0x159   :  { %v1184_v16 = vmax.f32 %v1126_v40, 0.0  ;;  %v1727_v58 = vadd.f32 %v1726_v11, %v1725_v10 }
 0x15a   :  { %v1728_v23 = vpop.f32.mrf.mxu1  ;;  %v1130_v57 = vpop.f32.mrf.mxu0 }
 0x15b   :  { %v1525_v61 = vpack.c.bf16 %v1184_v16, %v1183_v15  ;;  %v1131_v19 = vadd.f32 %v1130_v57, %v994_v44  ;;  %v997_v22 = vadd.f32 %v1727_v58, %v2392_v2 }
 0x15c   :  { %v1729_v51 = vpop.f32.mrf.mxu1  ;;  %v1823_v17 = vpop.f32.mrf.mxu0 }
 0x15d   :  { %1558 = vst [vmem:[%s2554_s3 + $0x38] sm:$0xff] %v1525_v61   ;;  %v1730_v24 = vadd.f32 %v1729_v51, %v1728_v23  ;;  %v1185_v43 = vmax.f32 %v1131_v19, 0.0 }
 0x15e   :  { %v1731_v18 = vpop.f32.mrf.mxu1  ;;  %v1133_v21 = vpop.f32.mrf.mxu0 }
 0x15f   :  { %v1134_v26 = vadd.f32 %v1133_v21, %v997_v22  ;;  %v1002_v35 = vadd.f32 %v1730_v24, %v2399_v8 }
 0x160   :  { %v1732_v29 = vpop.f32.mrf.mxu1  ;;  %v1824_v30 = vpop.f32.mrf.mxu0 }
 0x161   :  { %v1186_v45 = vmax.f32 %v1134_v26, 0.0  ;;  %v1733_v56 = vadd.f32 %v1732_v29, %v1731_v18 }
 0x162   :  { %v1734_v63 = vpop.f32.mrf.mxu1  ;;  %v1138_v60 = vpop.f32.mrf.mxu0 }
 0x163   :  { %v1530_v32 = vpack.c.bf16 %v1186_v45, %v1185_v43  ;;  %v1139_v2 = vadd.f32 %v1138_v60, %v1002_v35  ;;  %v1005_v48 = vadd.f32 %v1733_v56, %v2406_v14 }
 0x164   :  { %v1735_v0 = vpop.f32.mrf.mxu1  ;;  %v1827_v3 = vpop.f32.mrf.mxu0 }
 0x165   :  { %1559 = vst [vmem:[%s2554_s3 + $0x40] sm:$0xff] %v1530_v32   ;;  %v1736_v13 = vadd.f32 %v1735_v0, %v1734_v63  ;;  %v1187_v38 = vmax.f32 %v1139_v2, 0.0 }
 0x166   :  { %v1737_v25 = vpop.f32.mrf.mxu1  ;;  %v1141_v5 = vpop.f32.mrf.mxu0 }
 0x167   :  { %v1142_v28 = vadd.f32 %v1141_v5, %v1005_v48  ;;  %v1010_v34 = vadd.f32 %v1736_v13, %v2413_v20 }
 0x168   :  { %v1738_v50 = vpop.f32.mrf.mxu1  ;;  %v1828_v36 = vpop.f32.mrf.mxu0 }
 0x169   :  { %v1188_v41 = vmax.f32 %v1142_v28, 0.0  ;;  %v1739_v42 = vadd.f32 %v1738_v50, %v1737_v25 }
 0x16a   :  { %v1740_v6 = vpop.f32.mrf.mxu1  ;;  %v1146_v8 = vpop.f32.mrf.mxu0 }
 0x16b   :  { %v1535_v31 = vpack.c.bf16 %v1188_v41, %v1187_v38  ;;  %v1147_v14 = vadd.f32 %v1146_v8, %v1010_v34  ;;  %v1013_v53 = vadd.f32 %v1739_v42, %v2420_v27 }
 0x16c   :  { %v1741_v9 = vpop.f32.mrf.mxu1  ;;  %v1831_v46 = vpop.f32.mrf.mxu0 }
 0x16d   :  { %1560 = vst [vmem:[%s2554_s3 + $0x48] sm:$0xff] %v1535_v31   ;;  %v1742_v1 = vadd.f32 %v1741_v9, %v1740_v6  ;;  %v1189_v54 = vmax.f32 %v1147_v14, 0.0 }
 0x16e   :  { %v1743_v55 = vpop.f32.mrf.mxu1  ;;  %v1149_v59 = vpop.f32.mrf.mxu0 }
 0x16f   :  { %v1150_v4 = vadd.f32 %v1149_v59, %v1013_v53  ;;  %v1018_v11 = vadd.f32 %v1742_v1, %v2427_v33 }
 0x170   :  { %v1744_v7 = vpop.f32.mrf.mxu1  ;;  %v1832_v52 = vpop.f32.mrf.mxu0 }
 0x171   :  { %v1190_v10 = vmax.f32 %v1150_v4, 0.0  ;;  %v1745_v47 = vadd.f32 %v1744_v7, %v1743_v55 }
 0x172   :  { %v1746_v37 = vpop.f32.mrf.mxu1  ;;  %v1154_v20 = vpop.f32.mrf.mxu0 }
 0x173   :  { %v1540_v40 = vpack.c.bf16 %v1190_v10, %v1189_v54  ;;  %v1155_v27 = vadd.f32 %v1154_v20, %v1018_v11  ;;  %v1021_v16 = vadd.f32 %v1745_v47, %v2434_v39 }
 0x174   :  { %v1747_v12 = vpop.f32.mrf.mxu1  ;;  %v1835_v15 = vpop.f32.mrf.mxu0 }
 0x175   :  { %1561 = vst [vmem:[%s2554_s3 + $0x50] sm:$0xff] %v1540_v40   ;;  %v1748_v57 = vadd.f32 %v1747_v12, %v1746_v37  ;;  %v1191_v17 = vmax.f32 %v1155_v27, 0.0 }
 0x176   :  { %v1749_v58 = vpop.f32.mrf.mxu1  ;;  %v1157_v23 = vpop.f32.mrf.mxu0 }
 0x177   :  { %v1158_v61 = vadd.f32 %v1157_v23, %v1021_v16  ;;  %v1026_v21 = vadd.f32 %v1748_v57, %v2441_v49 }
 0x178   :  { %v1750_v44 = vpop.f32.mrf.mxu1  ;;  %v1836_v51 = vpop.f32.mrf.mxu0 }
 0x179   :  { %v1192_v19 = vmax.f32 %v1158_v61, 0.0  ;;  %v1751_v22 = vadd.f32 %v1750_v44, %v1749_v58 }
 0x17a   :  { %v1162_v18 = vpop.f32.mrf.mxu0 }
 0x17b   :  { %v1545_v33 = vpack.c.bf16 %v1192_v19, %v1191_v17  ;;  %v1163_v26 = vadd.f32 %v1162_v18, %v1026_v21  ;;  %v1029_v39 = vadd.f32 %v1751_v22, %v2448_v62 }
 0x17c   :  { %v1839_v24 = vpop.f32.mrf.mxu0 }
 0x17d   :  { %1562 = vst [vmem:[%s2554_s3 + $0x58] sm:$0xff] %v1545_v33   ;;  %v1193_v45 = vmax.f32 %v1163_v26, 0.0 }
 0x17e   :  { %v1165_v29 = vpop.f32.mrf.mxu0 }
 0x17f   :  { %v1166_v30 = vadd.f32 %v1165_v29, %v1029_v39 }
 0x180   :  { %v1840_v43 = vpop.f32.mrf.mxu0 }
 0x181   :  { %v1194_v56 = vmax.f32 %v1166_v30, 0.0 }
 0x183   :  { %v1550_v63 = vpack.c.bf16 %v1194_v56, %v1193_v45 }
 0x185   :  { %1563 = vst [vmem:[%s2554_s3 + $0x60] sm:$0xff] %v1550_v63  }

// kernel: dqn_forward.7
= control target key start
LH: loop header
LB: loop body
LE: loop exit
PB: predicated region body
PF: predicated region fallthrough
CT: control target
= control target key end

     0   :  { %s4306_s18 = smov 0   ;;  %s4308_s19 = smov 0   ;;  %s4843_s0 = inlined_call_operand.vmem [shape: bf16[16,6400], index: 0, kind: input, shape index: {}]   ;;  %s4844_s1 = inlined_call_operand.vmem [shape: bf16[6400,512], index: 1, kind: input, shape index: {}]   ;;  %s4845_s2 = inlined_call_operand.vmem [shape: f32[1,512], index: 2, kind: input, shape index: {}]   ;;  %s4846_s3 = inlined_call_operand.vmem [shape: bf16[512,128], index: 3, kind: input, shape index: {}]   ;;  %s4847_s4 = inlined_call_operand.vmem [shape: f32[1,128], index: 4, kind: input, shape index: {}]   ;;  %s4848_s5 = inlined_call_operand.vmem [shape: f32[16,128], index: 5, kind: output, shape index: {}]  }
   0x1   :  { %s4310_s20 = smov 0   ;;  %s4312_s21 = smov 0  }
   0x2   :  { %s4314_s22 = smov 0  }
   0x3 LB: > { %s24_s23 = sadd.s32 1, %s4269_s21  ;;  %p43_p1 = scmp.ne.s32.totalorder %s4261_s19, %s4257_s18  ;;  %s4273_s22 = sphi %s4314_s22, %s15_s22   ;;  %s4269_s21 = sphi %s4312_s21, %s4852_s21   ;;  %s4265_s20 = sphi %s4310_s20, %s4851_s20   ;;  %s4261_s19 = sphi %s4308_s19, %s4850_s19   ;;  %s4257_s18 = sphi %s4306_s18, %s4849_s18  }
   0x4   : > { %p25_p0 = scmp.ge.s32.totalorder %s24_s23, 5  ;;  %p44_p2 = scmp.eq.s32.totalorder %s4273_s22, 0 }
   0x5   : > { %s36_s25 = sadd.s32 1, %s4261_s19  ;;  %p3241_p5 = scmp.ge.s32.totalorder %s4273_s22, 5 }
   0x6   : > { %s4854_s23 = smov (%p25_p0, %s24_s23), 0  ;;  %p45_p3 = por %p44_p2, %p43_p1 }
   0x7   : > { %s32_s24 = ssub.s32 %s4269_s21, %s4854_s23  ;;  %193 = sbr.rel (%p3241_p5) target bundleno = 22 (0x16), region = 28 }
   0x8   : > { %p34_p4 = scmp.eq.s32.totalorder %s32_s24, 0 }
   0xa   : > { %s4341_s26 = scalar_select %p34_p4, %s4261_s19, %s36_s25  }
   0xc   : > { %196 = sbr.rel (!%p45_p3) target bundleno = 22 (0x16), region = 32  ;;  %s198_s27 = sand.u32 (%p45_p3), 1, %s4261_s19  }
   0xd   : > { %s3615_s28 = smul.u32 (%p45_p3), 40, %s4269_s21 }
   0xe   : > { %s3661_s29 = smul.u32 (%p45_p3), 80, %s198_s27 }
   0xf   : > { %s206_s7 = scalar_lea.vmem (%p45_p3), %s4843_s0, %s3615_s28 }
  0x10   : > { %v219_v0 = vld [vmem:[%s206_s7] sm:$0xff] (%p45_p3)  ;;  %v221_v1 = vld [vmem:[%s206_s7 + $0x8] sm:$0xff] (%p45_p3)  ;;  %v223_v2 = vld [vmem:[%s206_s7 + $0x10] sm:$0xff] (%p45_p3)  ;;  %s200_s8 = scalar_lea.vmem (%p45_p3), [#allocation3], %s3661_s29 }
  0x11   : > { %220 = vst [vmem:[%s200_s8] sm:$0xff] %v219_v0  ;;  %222 = vst [vmem:[%s200_s8 + $0x8] sm:$0xff] %v221_v1  ;;  %v225_v3 = vld [vmem:[%s206_s7 + $0x18] sm:$0xff]  ;;  %v227_v4 = vld [vmem:[%s206_s7 + $0x20] sm:$0xff] }
  0x12   : > { %224 = vst [vmem:[%s200_s8 + $0x10] sm:$0xff] %v223_v2  ;;  %v229_v5 = vld [vmem:[%s206_s7 + $0xc8] sm:$0xff]  ;;  %226 = vst [vmem:[%s200_s8 + $0x18] sm:$0xff] %v225_v3  ;;  %v231_v6 = vld [vmem:[%s206_s7 + $0xd0] sm:$0xff] }
  0x13   : > { %228 = vst [vmem:[%s200_s8 + $0x20] sm:$0xff] %v227_v4  ;;  %230 = vst [vmem:[%s200_s8 + $0x28] sm:$0xff] %v229_v5  ;;  %v233_v7 = vld [vmem:[%s206_s7 + $0xd8] sm:$0xff]  ;;  %v235_v8 = vld [vmem:[%s206_s7 + $0xe0] sm:$0xff] }
  0x14   : > { %232 = vst [vmem:[%s200_s8 + $0x30] sm:$0xff] %v231_v6  ;;  %234 = vst [vmem:[%s200_s8 + $0x38] sm:$0xff] %v233_v7  ;;  %v237_v9 = vld [vmem:[%s206_s7 + $0xe8] sm:$0xff] }
  0x15   : > { %236 = vst [vmem:[%s200_s8 + $0x40] sm:$0xff] %v235_v8  ;;  %238 = vst [vmem:[%s200_s8 + $0x48] sm:$0xff] %v237_v9 }
  0x16 PF: > { %p3243_p6 = scmp.ge.s32.totalorder %s4273_s22, 1  ;;  %p253_p7 = scmp.lt.s32.totalorder %s4273_s22, 6 }
  0x18   : > { %p254_p8 = pnand %p3243_p6, %p253_p7 }
  0x19   : > { %s260_s9 = sand.u32 (!%p254_p8), 1, %s4257_s18   ;;  %s295_s10 = smul.u32 (!%p254_p8), 160, %s4265_s20 }
  0x1a   : > { %257 = sbr.rel (%p254_p8) target bundleno = 808 (0x328), region = 59  ;;  %p3246_p10 = scmp.ne.s32.totalorder (!%p254_p8), %s4265_s20, 0 }
  0x1b   : > { %s3662_s11 = smul.u32 (!%p254_p8), 80, %s260_s9  ;;  %p296_p9 = scmp.lt.s32.totalorder (!%p254_p8), %s295_s10, 799 }
  0x1d   : > { %s4358_s16 = scalar_lea.vmem (!%p254_p8), [#allocation3], %s3662_s11 }
  0x1f   : > { %s4856_s10 = smov (!%p296_p9, %s295_s10), 799  ;;  %312 = sbr.rel (%p3246_p10) target bundleno = 41 (0x29), region = 67 }
  0x20   : > { %s3616_s12 = sshll.u32 %s4856_s10, 4 }
  0x21   : > { %s4356_s15 = scalar_lea.vmem %s4844_s1, %s3616_s12 }
  0x24   : > { %v4275_v10 = vmov 0.0  }
  0x25   : > { %313 = vst [vmem:[#allocation2 + $0x30] sm:$0xff] %v4275_v10  ;;  %314 = vst [vmem:[#allocation2] sm:$0xff] %v4275_v10 }
  0x26   : > { %315 = vst [vmem:[#allocation2 + $0x18] sm:$0xff] %v4275_v10  ;;  %316 = vst [vmem:[#allocation2 + $0x10] sm:$0xff] %v4275_v10 }
  0x27   : > { %317 = vst [vmem:[#allocation2 + $0x8] sm:$0xff] %v4275_v10  ;;  %318 = vst [vmem:[#allocation2 + $0x20] sm:$0xff] %v4275_v10 }
  0x28   : > { %319 = vst [vmem:[#allocation2 + $0x28] sm:$0xff] %v4275_v10  ;;  %320 = vst [vmem:[#allocation2 + $0x38] sm:$0xff] %v4275_v10 }
  0x29 PF: > { %v3704_v11 = vld [vmem:[%s4356_s15 + $0xe4] ss:$16 sps:$4 sm:$0xff]   ;;  %v3708_v13 = vld [vmem:[%s4356_s15 + $0xe0] ss:$16 sps:$4 sm:$0xff]   ;;  %p3577_p11 = scmp.ne.s32.totalorder %s4265_s20, 4 }
  0x2a   : > { %v3706_v12 = vld [vmem:[%s4356_s15 + $0x2e4] ss:$16 sps:$4 sm:$0xff]   ;;  %2309 = vmatprep.subr.bf16.mxu0 %v3704_v11  ;;  %v3709_v14 = vld [vmem:[%s4356_s15 + $0x2e0] ss:$16 sps:$4 sm:$0xff]  }
  0x2b   : > { %2352 = vmatprep.subr.bf16.mxu1 %v3706_v12  ;;  %v3710_v15 = vld [vmem:[%s4356_s15 + $0xc4] ss:$16 sps:$4 sm:$0xff]   ;;  %2310 = vmatpush1.bf16.msra.mxu0 %v3708_v13  ;;  %v3714_v17 = vld [vmem:[%s4356_s15 + $0xc0] ss:$16 sps:$4 sm:$0xff]  }
  0x2c   : > { %2353 = vmatpush1.bf16.msra.mxu1 %v3709_v14  ;;  %v3712_v16 = vld [vmem:[%s4356_s15 + $0x2c4] ss:$16 sps:$4 sm:$0xff]   ;;  %2311 = vmatprep.subr.bf16.mxu0 %v3710_v15  ;;  %v3715_v18 = vld [vmem:[%s4356_s15 + $0x2c0] ss:$16 sps:$4 sm:$0xff]  }
  0x2d   : > { %2354 = vmatprep.subr.bf16.mxu1 %v3712_v16  ;;  %v3716_v19 = vld [vmem:[%s4356_s15 + $0xa4] ss:$16 sps:$4 sm:$0xff]   ;;  %v3720_v21 = vld [vmem:[%s4356_s15 + $0xa0] ss:$16 sps:$4 sm:$0xff]  }
  0x2e   : > { %v3718_v20 = vld [vmem:[%s4356_s15 + $0x2a4] ss:$16 sps:$4 sm:$0xff]   ;;  %v3721_v22 = vld [vmem:[%s4356_s15 + $0x2a0] ss:$16 sps:$4 sm:$0xff]  }
  0x2f   : > { %2312 = vmatpush1.bf16.msra.mxu0 %v3714_v17  ;;  %v3722_v23 = vld [vmem:[%s4356_s15 + $0x84] ss:$16 sps:$4 sm:$0xff]   ;;  %v3726_v25 = vld [vmem:[%s4356_s15 + $0x80] ss:$16 sps:$4 sm:$0xff]  }
  0x30   : > { %2355 = vmatpush1.bf16.msra.mxu1 %v3715_v18  ;;  %2313 = vmatprep.subr.bf16.mxu0 %v3716_v19  ;;  %v3724_v24 = vld [vmem:[%s4356_s15 + $0x284] ss:$16 sps:$4 sm:$0xff]   ;;  %v3727_v26 = vld [vmem:[%s4356_s15 + $0x280] ss:$16 sps:$4 sm:$0xff]  }
  0x31   : > { %2356 = vmatprep.subr.bf16.mxu1 %v3718_v20  ;;  %v3728_v27 = vld [vmem:[%s4356_s15 + $0x64] ss:$16 sps:$4 sm:$0xff]   ;;  %v3732_v29 = vld [vmem:[%s4356_s15 + $0x60] ss:$16 sps:$4 sm:$0xff]  }
  0x32   : > { %v3730_v28 = vld [vmem:[%s4356_s15 + $0x264] ss:$16 sps:$4 sm:$0xff]   ;;  %v3733_v30 = vld [vmem:[%s4356_s15 + $0x260] ss:$16 sps:$4 sm:$0xff]  }
  0x33   : > { %2314 = vmatpush1.bf16.msra.mxu0 %v3720_v21  ;;  %v3734_v31 = vld [vmem:[%s4356_s15 + $0x44] ss:$16 sps:$4 sm:$0xff]   ;;  %v3738_v33 = vld [vmem:[%s4356_s15 + $0x40] ss:$16 sps:$4 sm:$0xff]  }
  0x34   : > { %2357 = vmatpush1.bf16.msra.mxu1 %v3721_v22  ;;  %2315 = vmatprep.subr.bf16.mxu0 %v3722_v23  ;;  %v3736_v32 = vld [vmem:[%s4356_s15 + $0x244] ss:$16 sps:$4 sm:$0xff]   ;;  %v3739_v34 = vld [vmem:[%s4356_s15 + $0x240] ss:$16 sps:$4 sm:$0xff]  }
  0x35   : > { %2358 = vmatprep.subr.bf16.mxu1 %v3724_v24  ;;  %v3740_v35 = vld [vmem:[%s4356_s15 + $0x24] ss:$16 sps:$4 sm:$0xff]   ;;  %v3744_v37 = vld [vmem:[%s4356_s15 + $0x20] ss:$16 sps:$4 sm:$0xff]  }
  0x36   : > { %v3742_v36 = vld [vmem:[%s4356_s15 + $0x224] ss:$16 sps:$4 sm:$0xff]   ;;  %v3745_v38 = vld [vmem:[%s4356_s15 + $0x220] ss:$16 sps:$4 sm:$0xff]  }
  0x37   : > { %2316 = vmatpush1.bf16.msra.mxu0 %v3726_v25  ;;  %v3746_v39 = vld [vmem:[%s4356_s15 + $0x4] ss:$16 sps:$4 sm:$0xff]   ;;  %v3750_v41 = vld [vmem:[%s4356_s15] ss:$16 sps:$4 sm:$0xff]  }
  0x38   : > { %2359 = vmatpush1.bf16.msra.mxu1 %v3727_v26  ;;  %2317 = vmatprep.subr.bf16.mxu0 %v3728_v27  ;;  %v3748_v40 = vld [vmem:[%s4356_s15 + $0x204] ss:$16 sps:$4 sm:$0xff]   ;;  %v3751_v42 = vld [vmem:[%s4356_s15 + $0x200] ss:$16 sps:$4 sm:$0xff]  }
  0x39   : > { %2360 = vmatprep.subr.bf16.mxu1 %v3730_v28  ;;  %v3752_v43 = vld [vmem:[%s4356_s15 + $0x1e4] ss:$16 sps:$4 sm:$0xff]   ;;  %v3756_v45 = vld [vmem:[%s4356_s15 + $0x1e0] ss:$16 sps:$4 sm:$0xff]  }
  0x3a   : > { %v3754_v44 = vld [vmem:[%s4356_s15 + $0x3e4] ss:$16 sps:$4 sm:$0xff]   ;;  %v3757_v46 = vld [vmem:[%s4356_s15 + $0x3e0] ss:$16 sps:$4 sm:$0xff]  }
  0x3b   : > { %2318 = vmatpush1.bf16.msra.mxu0 %v3732_v29  ;;  %v3758_v47 = vld [vmem:[%s4356_s15 + $0x1c4] ss:$16 sps:$4 sm:$0xff]   ;;  %v3762_v49 = vld [vmem:[%s4356_s15 + $0x1c0] ss:$16 sps:$4 sm:$0xff]  }
  0x3c   : > { %2361 = vmatpush1.bf16.msra.mxu1 %v3733_v30  ;;  %2319 = vmatprep.subr.bf16.mxu0 %v3734_v31  ;;  %v3760_v48 = vld [vmem:[%s4356_s15 + $0x3c4] ss:$16 sps:$4 sm:$0xff]   ;;  %v3763_v50 = vld [vmem:[%s4356_s15 + $0x3c0] ss:$16 sps:$4 sm:$0xff]  }
  0x3d   : > { %2362 = vmatprep.subr.bf16.mxu1 %v3736_v32  ;;  %v3764_v51 = vld [vmem:[%s4356_s15 + $0x1a4] ss:$16 sps:$4 sm:$0xff]   ;;  %v3768_v53 = vld [vmem:[%s4356_s15 + $0x1a0] ss:$16 sps:$4 sm:$0xff]  }
  0x3e   : > { %v3766_v52 = vld [vmem:[%s4356_s15 + $0x3a4] ss:$16 sps:$4 sm:$0xff]   ;;  %v3769_v54 = vld [vmem:[%s4356_s15 + $0x3a0] ss:$16 sps:$4 sm:$0xff]  }
  0x3f   : > { %2320 = vmatpush1.bf16.msra.mxu0 %v3738_v33  ;;  %v3770_v55 = vld [vmem:[%s4356_s15 + $0x184] ss:$16 sps:$4 sm:$0xff]   ;;  %v3774_v57 = vld [vmem:[%s4356_s15 + $0x180] ss:$16 sps:$4 sm:$0xff]  }
  0x40   : > { %2363 = vmatpush1.bf16.msra.mxu1 %v3739_v34  ;;  %2321 = vmatprep.subr.bf16.mxu0 %v3740_v35  ;;  %v3772_v56 = vld [vmem:[%s4356_s15 + $0x384] ss:$16 sps:$4 sm:$0xff]   ;;  %v3775_v58 = vld [vmem:[%s4356_s15 + $0x380] ss:$16 sps:$4 sm:$0xff]  }
  0x41   : > { %2364 = vmatprep.subr.bf16.mxu1 %v3742_v36  ;;  %v3776_v59 = vld [vmem:[%s4356_s15 + $0x164] ss:$16 sps:$4 sm:$0xff]   ;;  %v3780_v63 = vld [vmem:[%s4356_s15 + $0x160] ss:$16 sps:$4 sm:$0xff]  }
  0x42   : > { %v4411_v60 = vld [vmem:[%s4358_s16 + $0x4] ss:$40 sps:$4 sm:$0xff]   ;;  %v3781_v0 = vld [vmem:[%s4356_s15 + $0x360] ss:$16 sps:$4 sm:$0xff]  }
  0x43   : > { %2322 = vmatpush1.bf16.msra.mxu0 %v3744_v37  ;;  %v3778_v61 = vld [vmem:[%s4356_s15 + $0x364] ss:$16 sps:$4 sm:$0xff]   ;;  %2341 = vmatprep.mubr.bf16.mxu0 %v4411_v60  ;;  %v3786_v3 = vld [vmem:[%s4356_s15 + $0x140] ss:$16 sps:$4 sm:$0xff]  }
  0x44   : > { %2365 = vmatpush1.bf16.msra.mxu1 %v3745_v38  ;;  %2323 = vmatprep.subr.bf16.mxu0 %v3746_v39  ;;  %v3805_v62 = vld [vmem:[%s4358_s16 + $0xc] ss:$40 sps:$4 sm:$0xff]   ;;  %v3787_v4 = vld [vmem:[%s4356_s15 + $0x340] ss:$16 sps:$4 sm:$0xff]  }
  0x45   : > { %2366 = vmatprep.subr.bf16.mxu1 %v3748_v40  ;;  %2384 = vmatprep.mubr.bf16.mxu1 %v3805_v62  ;;  %v3782_v1 = vld [vmem:[%s4356_s15 + $0x144] ss:$16 sps:$4 sm:$0xff]   ;;  %v3792_v7 = vld [vmem:[%s4356_s15 + $0x120] ss:$16 sps:$4 sm:$0xff]  }
  0x46   : > { %v3784_v2 = vld [vmem:[%s4356_s15 + $0x344] ss:$16 sps:$4 sm:$0xff]   ;;  %v3793_v8 = vld [vmem:[%s4356_s15 + $0x320] ss:$16 sps:$4 sm:$0xff]  }
  0x47   : > { %2324 = vmatpush1.bf16.msra.mxu0 %v3750_v41  ;;  %v3788_v5 = vld [vmem:[%s4356_s15 + $0x124] ss:$16 sps:$4 sm:$0xff]   ;;  %v3798_v11 = vld [vmem:[%s4356_s15 + $0x100] ss:$16 sps:$4 sm:$0xff]  }
  0x48   : > { %2367 = vmatpush1.bf16.msra.mxu1 %v3751_v42  ;;  %2325 = vmatprep.subr.bf16.mxu0 %v3752_v43  ;;  %v3790_v6 = vld [vmem:[%s4356_s15 + $0x324] ss:$16 sps:$4 sm:$0xff]   ;;  %v3799_v12 = vld [vmem:[%s4356_s15 + $0x300] ss:$16 sps:$4 sm:$0xff]  }
  0x49   : > { %2368 = vmatprep.subr.bf16.mxu1 %v3754_v44  ;;  %v3794_v9 = vld [vmem:[%s4356_s15 + $0x104] ss:$16 sps:$4 sm:$0xff]   ;;  %v4433_v15 = vld [vmem:[%s4358_s16] ss:$40 sps:$4 sm:$0xff]  }
  0x4a   : > { %v3796_v10 = vld [vmem:[%s4356_s15 + $0x304] ss:$16 sps:$4 sm:$0xff]   ;;  %v3803_v16 = vld [vmem:[%s4358_s16 + $0x8] ss:$40 sps:$4 sm:$0xff]  }
  0x4b   : > { %2326 = vmatpush2.bf16.msra.mxu0 %v3756_v45  ;;  %v3808_v13 = vld [vmem:[%s4356_s15 + $0x4e4] ss:$16 sps:$4 sm:$0xff]   ;;  %v3806_v17 = vld [vmem:[%s4356_s15 + $0x4e0] ss:$16 sps:$4 sm:$0xff]  }
  0x4c   : > { %2369 = vmatpush2.bf16.msra.mxu1 %v3757_v46  ;;  %2327 = vmatprep.subr.bf16.mxu0 %v3758_v47  ;;  %v3811_v14 = vld [vmem:[%s4356_s15 + $0x6e4] ss:$16 sps:$4 sm:$0xff]   ;;  %v3809_v18 = vld [vmem:[%s4356_s15 + $0x6e0] ss:$16 sps:$4 sm:$0xff]  }
  0x4d   : > { %2370 = vmatprep.subr.bf16.mxu1 %v3760_v48  ;;  %v3814_v19 = vld [vmem:[%s4356_s15 + $0x4c4] ss:$16 sps:$4 sm:$0xff]   ;;  %v3812_v21 = vld [vmem:[%s4356_s15 + $0x4c0] ss:$16 sps:$4 sm:$0xff]  }
  0x4e   : > { %v3817_v20 = vld [vmem:[%s4356_s15 + $0x6c4] ss:$16 sps:$4 sm:$0xff]   ;;  %v3815_v22 = vld [vmem:[%s4356_s15 + $0x6c0] ss:$16 sps:$4 sm:$0xff]  }
  0x4f   : > { %2328 = vmatpush2.bf16.msra.mxu0 %v3762_v49  ;;  %v3820_v23 = vld [vmem:[%s4356_s15 + $0x4a4] ss:$16 sps:$4 sm:$0xff]   ;;  %v3818_v25 = vld [vmem:[%s4356_s15 + $0x4a0] ss:$16 sps:$4 sm:$0xff]  }
  0x50   : > { %2371 = vmatpush2.bf16.msra.mxu1 %v3763_v50  ;;  %2329 = vmatprep.subr.bf16.mxu0 %v3764_v51  ;;  %v3823_v24 = vld [vmem:[%s4356_s15 + $0x6a4] ss:$16 sps:$4 sm:$0xff]   ;;  %v3821_v26 = vld [vmem:[%s4356_s15 + $0x6a0] ss:$16 sps:$4 sm:$0xff]  }
  0x51   : > { %2372 = vmatprep.subr.bf16.mxu1 %v3766_v52  ;;  %v3826_v27 = vld [vmem:[%s4356_s15 + $0x484] ss:$16 sps:$4 sm:$0xff]   ;;  %v3824_v29 = vld [vmem:[%s4356_s15 + $0x480] ss:$16 sps:$4 sm:$0xff]  }
  0x52   : > { %v3829_v28 = vld [vmem:[%s4356_s15 + $0x684] ss:$16 sps:$4 sm:$0xff]   ;;  %v3827_v30 = vld [vmem:[%s4356_s15 + $0x680] ss:$16 sps:$4 sm:$0xff]  }
  0x53   : > { %2330 = vmatpush2.bf16.msra.mxu0 %v3768_v53  ;;  %v3832_v31 = vld [vmem:[%s4356_s15 + $0x464] ss:$16 sps:$4 sm:$0xff]   ;;  %v3830_v33 = vld [vmem:[%s4356_s15 + $0x460] ss:$16 sps:$4 sm:$0xff]  }
  0x54   : > { %2373 = vmatpush2.bf16.msra.mxu1 %v3769_v54  ;;  %2331 = vmatprep.subr.bf16.mxu0 %v3770_v55  ;;  %v3835_v32 = vld [vmem:[%s4356_s15 + $0x664] ss:$16 sps:$4 sm:$0xff]   ;;  %v3833_v34 = vld [vmem:[%s4356_s15 + $0x660] ss:$16 sps:$4 sm:$0xff]  }
  0x55   : > { %2374 = vmatprep.subr.bf16.mxu1 %v3772_v56  ;;  %v3838_v35 = vld [vmem:[%s4356_s15 + $0x444] ss:$16 sps:$4 sm:$0xff]   ;;  %v3836_v37 = vld [vmem:[%s4356_s15 + $0x440] ss:$16 sps:$4 sm:$0xff]  }
  0x56   : > { %v3841_v36 = vld [vmem:[%s4356_s15 + $0x644] ss:$16 sps:$4 sm:$0xff]   ;;  %v3839_v38 = vld [vmem:[%s4356_s15 + $0x640] ss:$16 sps:$4 sm:$0xff]  }
  0x57   : > { %2332 = vmatpush2.bf16.msra.mxu0 %v3774_v57  ;;  %v3844_v39 = vld [vmem:[%s4356_s15 + $0x424] ss:$16 sps:$4 sm:$0xff]   ;;  %v3842_v41 = vld [vmem:[%s4356_s15 + $0x420] ss:$16 sps:$4 sm:$0xff]  }
  0x58   : > { %2375 = vmatpush2.bf16.msra.mxu1 %v3775_v58  ;;  %2333 = vmatprep.subr.bf16.mxu0 %v3776_v59  ;;  %v3847_v40 = vld [vmem:[%s4356_s15 + $0x624] ss:$16 sps:$4 sm:$0xff]   ;;  %v3845_v42 = vld [vmem:[%s4356_s15 + $0x620] ss:$16 sps:$4 sm:$0xff]  }
  0x59   : > { %2376 = vmatprep.subr.bf16.mxu1 %v3778_v61  ;;  %v3850_v43 = vld [vmem:[%s4356_s15 + $0x404] ss:$16 sps:$4 sm:$0xff]   ;;  %v3848_v47 = vld [vmem:[%s4356_s15 + $0x400] ss:$16 sps:$4 sm:$0xff]  }
  0x5a   : > { %v3853_v44 = vld [vmem:[%s4356_s15 + $0x604] ss:$16 sps:$4 sm:$0xff]   ;;  %v3851_v48 = vld [vmem:[%s4356_s15 + $0x600] ss:$16 sps:$4 sm:$0xff]  }
  0x5b   : > { %2334 = vmatpush2.bf16.msra.mxu0 %v3780_v63  ;;  %v4466_v45 = vld [vmem:[%s4358_s16 + $0x14] ss:$40 sps:$4 sm:$0xff]   ;;  %v3854_v51 = vld [vmem:[%s4356_s15 + $0x5e0] ss:$16 sps:$4 sm:$0xff]  }
  0x5c   : > { %2377 = vmatpush2.bf16.msra.mxu1 %v3781_v0  ;;  %2335 = vmatprep.subr.bf16.mxu0 %v3782_v1  ;;  %v3907_v46 = vld [vmem:[%s4358_s16 + $0x1c] ss:$40 sps:$4 sm:$0xff]   ;;  %v3857_v52 = vld [vmem:[%s4356_s15 + $0x7e0] ss:$16 sps:$4 sm:$0xff]  }
  0x5d   : > { %2378 = vmatprep.subr.bf16.mxu1 %v3784_v2  ;;  %v3856_v49 = vld [vmem:[%s4356_s15 + $0x5e4] ss:$16 sps:$4 sm:$0xff]   ;;  %v3860_v55 = vld [vmem:[%s4356_s15 + $0x5c0] ss:$16 sps:$4 sm:$0xff]  }
  0x5e   : > { %v3859_v50 = vld [vmem:[%s4356_s15 + $0x7e4] ss:$16 sps:$4 sm:$0xff]   ;;  %v3863_v56 = vld [vmem:[%s4356_s15 + $0x7c0] ss:$16 sps:$4 sm:$0xff]  }
  0x5f   : > { %2336 = vmatpush2.bf16.msra.mxu0 %v3786_v3  ;;  %v3862_v53 = vld [vmem:[%s4356_s15 + $0x5c4] ss:$16 sps:$4 sm:$0xff]   ;;  %v3866_v59 = vld [vmem:[%s4356_s15 + $0x5a0] ss:$16 sps:$4 sm:$0xff]  }
  0x60   : > { %2379 = vmatpush2.bf16.msra.mxu1 %v3787_v4  ;;  %2337 = vmatprep.subr.bf16.mxu0 %v3788_v5  ;;  %v3865_v54 = vld [vmem:[%s4356_s15 + $0x7c4] ss:$16 sps:$4 sm:$0xff]   ;;  %v3869_v61 = vld [vmem:[%s4356_s15 + $0x7a0] ss:$16 sps:$4 sm:$0xff]  }
  0x61   : > { %2380 = vmatprep.subr.bf16.mxu1 %v3790_v6  ;;  %v3868_v57 = vld [vmem:[%s4356_s15 + $0x5a4] ss:$16 sps:$4 sm:$0xff]   ;;  %v3872_v0 = vld [vmem:[%s4356_s15 + $0x580] ss:$16 sps:$4 sm:$0xff]  }
  0x62   : > { %v3871_v58 = vld [vmem:[%s4356_s15 + $0x7a4] ss:$16 sps:$4 sm:$0xff]   ;;  %v3875_v1 = vld [vmem:[%s4356_s15 + $0x780] ss:$16 sps:$4 sm:$0xff]  }
  0x63   : > { %2338 = vmatpush2.bf16.msra.mxu0 %v3792_v7  ;;  %v3874_v62 = vld [vmem:[%s4356_s15 + $0x584] ss:$16 sps:$4 sm:$0xff]   ;;  %v3878_v4 = vld [vmem:[%s4356_s15 + $0x560] ss:$16 sps:$4 sm:$0xff]  }
  0x64   : > { %2381 = vmatpush2.bf16.msra.mxu1 %v3793_v8  ;;  %2339 = vmatprep.subr.bf16.mxu0 %v3794_v9  ;;  %v3877_v63 = vld [vmem:[%s4356_s15 + $0x784] ss:$16 sps:$4 sm:$0xff]   ;;  %v3881_v5 = vld [vmem:[%s4356_s15 + $0x760] ss:$16 sps:$4 sm:$0xff]  }
  0x65   : > { %2382 = vmatprep.subr.bf16.mxu1 %v3796_v10  ;;  %v3880_v2 = vld [vmem:[%s4356_s15 + $0x564] ss:$16 sps:$4 sm:$0xff]   ;;  %v3884_v8 = vld [vmem:[%s4356_s15 + $0x540] ss:$16 sps:$4 sm:$0xff]  }
  0x66   : > { %v3883_v3 = vld [vmem:[%s4356_s15 + $0x764] ss:$16 sps:$4 sm:$0xff]   ;;  %v3887_v9 = vld [vmem:[%s4356_s15 + $0x740] ss:$16 sps:$4 sm:$0xff]  }
  0x67   : > { %2340 = vmatpush2.bf16.msra.mxu0 %v3798_v11  ;;  %v3886_v6 = vld [vmem:[%s4356_s15 + $0x544] ss:$16 sps:$4 sm:$0xff]  }
  0x68   : > { %2383 = vmatpush2.bf16.msra.mxu1 %v3799_v12  ;;  %2395 = vmatprep.subr.bf16.mxu0 %v3808_v13  ;;  %v3889_v7 = vld [vmem:[%s4356_s15 + $0x744] ss:$16 sps:$4 sm:$0xff]   ;;  %v3890_v12 = vld [vmem:[%s4356_s15 + $0x520] ss:$16 sps:$4 sm:$0xff]  }
  0x69   : > { %2438 = vmatprep.subr.bf16.mxu1 %v3811_v14  ;;  %v3892_v10 = vld [vmem:[%s4356_s15 + $0x524] ss:$16 sps:$4 sm:$0xff]   ;;  %v3893_v13 = vld [vmem:[%s4356_s15 + $0x720] ss:$16 sps:$4 sm:$0xff]  }
  0x6a   : > { %2342 = vmatmul.mubr.bf16.vlgmr.msra.gmra.mxu0 %v4433_v15  ;;  %v3895_v11 = vld [vmem:[%s4356_s15 + $0x724] ss:$16 sps:$4 sm:$0xff]  }
  0x6b   : > { %2385 = vmatmul.mubr.bf16.vlgmr.msra.gmra.mxu1 %v3803_v16  ;;  %2396 = vmatpush1.bf16.msra.mxu0 %v3806_v17  ;;  %v3898_v14 = vld [vmem:[%s4356_s15 + $0x504] ss:$16 sps:$4 sm:$0xff]   ;;  %v3896_v17 = vld [vmem:[%s4356_s15 + $0x500] ss:$16 sps:$4 sm:$0xff]  }
  0x6c   : > { %2439 = vmatpush1.bf16.msra.mxu1 %v3809_v18  ;;  %2397 = vmatprep.subr.bf16.mxu0 %v3814_v19  ;;  %v3901_v16 = vld [vmem:[%s4356_s15 + $0x704] ss:$16 sps:$4 sm:$0xff]   ;;  %v3899_v18 = vld [vmem:[%s4356_s15 + $0x700] ss:$16 sps:$4 sm:$0xff]  }
  0x6d   : > { %2440 = vmatprep.subr.bf16.mxu1 %v3817_v20  ;;  %2427 = vmatprep.mubr.bf16.mxu0 %v4466_v45  ;;  %v3910_v19 = vld [vmem:[%s4356_s15 + $0x8e4] ss:$16 sps:$4 sm:$0xff]   ;;  %v3913_v20 = vld [vmem:[%s4356_s15 + $0xec] ss:$16 sps:$4 sm:$0xff]  }
  0x6e   : > { %2470 = vmatprep.mubr.bf16.mxu1 %v3907_v46  ;;  %v3946_v46 = vld [vmem:[%s4356_s15 + $0x824] ss:$16 sps:$4 sm:$0xff]  }
  0x6f   : > { %2398 = vmatpush1.bf16.msra.mxu0 %v3812_v21  ;;  %v4507_v21 = vld [vmem:[%s4358_s16 + $0x10] ss:$40 sps:$4 sm:$0xff]  }
  0x70   : > { %2441 = vmatpush1.bf16.msra.mxu1 %v3815_v22  ;;  %2399 = vmatprep.subr.bf16.mxu0 %v3820_v23  ;;  %v3905_v22 = vld [vmem:[%s4358_s16 + $0x18] ss:$40 sps:$4 sm:$0xff]  }
  0x71   : > { %2442 = vmatprep.subr.bf16.mxu1 %v3823_v24  ;;  %v3908_v23 = vld [vmem:[%s4356_s15 + $0x8e0] ss:$16 sps:$4 sm:$0xff]   ;;  %v3911_v24 = vld [vmem:[%s4356_s15 + $0xe8] ss:$16 sps:$4 sm:$0xff]  }
  0x73   : > { %2400 = vmatpush1.bf16.msra.mxu0 %v3818_v25  ;;  %v3916_v25 = vld [vmem:[%s4356_s15 + $0x8c4] ss:$16 sps:$4 sm:$0xff]  }
  0x74   : > { %2443 = vmatpush1.bf16.msra.mxu1 %v3821_v26  ;;  %2401 = vmatprep.subr.bf16.mxu0 %v3826_v27  ;;  %v3919_v26 = vld [vmem:[%s4356_s15 + $0xcc] ss:$16 sps:$4 sm:$0xff]   ;;  %v3914_v27 = vld [vmem:[%s4356_s15 + $0x8c0] ss:$16 sps:$4 sm:$0xff]  }
  0x75   : > { %2444 = vmatprep.subr.bf16.mxu1 %v3829_v28  ;;  %v3917_v28 = vld [vmem:[%s4356_s15 + $0xc8] ss:$16 sps:$4 sm:$0xff]  }
  0x77   : > { %2402 = vmatpush1.bf16.msra.mxu0 %v3824_v29  ;;  %v3922_v29 = vld [vmem:[%s4356_s15 + $0x8a4] ss:$16 sps:$4 sm:$0xff]  }
  0x78   : > { %2445 = vmatpush1.bf16.msra.mxu1 %v3827_v30  ;;  %2403 = vmatprep.subr.bf16.mxu0 %v3832_v31  ;;  %v3925_v30 = vld [vmem:[%s4356_s15 + $0xac] ss:$16 sps:$4 sm:$0xff]  }
  0x79   : > { %2446 = vmatprep.subr.bf16.mxu1 %v3835_v32  ;;  %v4520_v31 = vld [vmem:[%s4358_s16 + $0x24] ss:$40 sps:$4 sm:$0xff]   ;;  %v3920_v32 = vld [vmem:[%s4356_s15 + $0x8a0] ss:$16 sps:$4 sm:$0xff]  }
  0x7b   : > { %2404 = vmatpush1.bf16.msra.mxu0 %v3830_v33  ;;  %v3923_v33 = vld [vmem:[%s4356_s15 + $0xa8] ss:$16 sps:$4 sm:$0xff]  }
  0x7c   : > { %2447 = vmatpush1.bf16.msra.mxu1 %v3833_v34  ;;  %2405 = vmatprep.subr.bf16.mxu0 %v3838_v35  ;;  %v3928_v34 = vld [vmem:[%s4356_s15 + $0x884] ss:$16 sps:$4 sm:$0xff]   ;;  %v3931_v35 = vld [vmem:[%s4356_s15 + $0x8c] ss:$16 sps:$4 sm:$0xff]  }
  0x7d   : > { %2448 = vmatprep.subr.bf16.mxu1 %v3841_v36  ;;  %v3926_v36 = vld [vmem:[%s4356_s15 + $0x880] ss:$16 sps:$4 sm:$0xff]  }
  0x7f   : > { %2406 = vmatpush1.bf16.msra.mxu0 %v3836_v37  ;;  %v3929_v37 = vld [vmem:[%s4356_s15 + $0x88] ss:$16 sps:$4 sm:$0xff]  }
  0x80   : > { %2449 = vmatpush1.bf16.msra.mxu1 %v3839_v38  ;;  %2407 = vmatprep.subr.bf16.mxu0 %v3844_v39  ;;  %v3937_v38 = vld [vmem:[%s4356_s15 + $0x6c] ss:$16 sps:$4 sm:$0xff]   ;;  %v3932_v39 = vld [vmem:[%s4356_s15 + $0x860] ss:$16 sps:$4 sm:$0xff]  }
  0x81   : > { %2450 = vmatprep.subr.bf16.mxu1 %v3847_v40  ;;  %v3935_v40 = vld [vmem:[%s4356_s15 + $0x68] ss:$16 sps:$4 sm:$0xff]  }
  0x83   : > { %2408 = vmatpush1.bf16.msra.mxu0 %v3842_v41  ;;  %v3940_v41 = vld [vmem:[%s4356_s15 + $0x844] ss:$16 sps:$4 sm:$0xff]  }
  0x84   : > { %2451 = vmatpush1.bf16.msra.mxu1 %v3845_v42  ;;  %2409 = vmatprep.subr.bf16.mxu0 %v3850_v43  ;;  %v3943_v42 = vld [vmem:[%s4356_s15 + $0x4c] ss:$16 sps:$4 sm:$0xff]   ;;  %v3938_v43 = vld [vmem:[%s4356_s15 + $0x840] ss:$16 sps:$4 sm:$0xff]  }
  0x85   : > { %2452 = vmatprep.subr.bf16.mxu1 %v3853_v44  ;;  %v3941_v44 = vld [vmem:[%s4356_s15 + $0x48] ss:$16 sps:$4 sm:$0xff]  }
  0x87   : > { %2410 = vmatpush1.bf16.msra.mxu0 %v3848_v47  ;;  %v3949_v47 = vld [vmem:[%s4356_s15 + $0x2c] ss:$16 sps:$4 sm:$0xff]  }
  0x88   : > { %2453 = vmatpush1.bf16.msra.mxu1 %v3851_v48  ;;  %2411 = vmatprep.subr.bf16.mxu0 %v3856_v49  ;;  %v3944_v48 = vld [vmem:[%s4356_s15 + $0x820] ss:$16 sps:$4 sm:$0xff]   ;;  %v3947_v49 = vld [vmem:[%s4356_s15 + $0x28] ss:$16 sps:$4 sm:$0xff]  }
  0x89   : > { %2454 = vmatprep.subr.bf16.mxu1 %v3859_v50  ;;  %v3952_v50 = vld [vmem:[%s4356_s15 + $0x804] ss:$16 sps:$4 sm:$0xff]  }
  0x8b   : > { %2412 = vmatpush2.bf16.msra.mxu0 %v3854_v51  ;;  %v3955_v51 = vld [vmem:[%s4356_s15 + $0xc] ss:$16 sps:$4 sm:$0xff]  }
  0x8c   : > { %2455 = vmatpush2.bf16.msra.mxu1 %v3857_v52  ;;  %2413 = vmatprep.subr.bf16.mxu0 %v3862_v53  ;;  %v3950_v52 = vld [vmem:[%s4356_s15 + $0x800] ss:$16 sps:$4 sm:$0xff]   ;;  %v3953_v53 = vld [vmem:[%s4356_s15 + $0x8] ss:$16 sps:$4 sm:$0xff]  }
  0x8d   : > { %2456 = vmatprep.subr.bf16.mxu1 %v3865_v54  ;;  %v3958_v54 = vld [vmem:[%s4356_s15 + $0x9e4] ss:$16 sps:$4 sm:$0xff]  }
  0x8f   : > { %2414 = vmatpush2.bf16.msra.mxu0 %v3860_v55  ;;  %v3961_v55 = vld [vmem:[%s4356_s15 + $0x1ec] ss:$16 sps:$4 sm:$0xff]  }
  0x90   : > { %2457 = vmatpush2.bf16.msra.mxu1 %v3863_v56  ;;  %2415 = vmatprep.subr.bf16.mxu0 %v3868_v57  ;;  %v3956_v56 = vld [vmem:[%s4356_s15 + $0x9e0] ss:$16 sps:$4 sm:$0xff]   ;;  %v3959_v57 = vld [vmem:[%s4356_s15 + $0x1e8] ss:$16 sps:$4 sm:$0xff]  }
  0x91   : > { %2458 = vmatprep.subr.bf16.mxu1 %v3871_v58  ;;  %v3964_v58 = vld [vmem:[%s4356_s15 + $0x9c4] ss:$16 sps:$4 sm:$0xff]  }
  0x93   : > { %2416 = vmatpush2.bf16.msra.mxu0 %v3866_v59  ;;  %v3967_v59 = vld [vmem:[%s4356_s15 + $0x1cc] ss:$16 sps:$4 sm:$0xff]  }
  0x94   : > { %2459 = vmatpush2.bf16.msra.mxu1 %v3869_v61  ;;  %2417 = vmatprep.subr.bf16.mxu0 %v3874_v62  ;;  %v3962_v61 = vld [vmem:[%s4356_s15 + $0x9c0] ss:$16 sps:$4 sm:$0xff]   ;;  %v3965_v62 = vld [vmem:[%s4356_s15 + $0x1c8] ss:$16 sps:$4 sm:$0xff]  }
  0x95   : > { %2460 = vmatprep.subr.bf16.mxu1 %v3877_v63  ;;  %v3970_v63 = vld [vmem:[%s4356_s15 + $0x9a4] ss:$16 sps:$4 sm:$0xff]  }
  0x97   : > { %2418 = vmatpush2.bf16.msra.mxu0 %v3872_v0  ;;  %v3973_v0 = vld [vmem:[%s4356_s15 + $0x1ac] ss:$16 sps:$4 sm:$0xff]  }
  0x98   : > { %2461 = vmatpush2.bf16.msra.mxu1 %v3875_v1  ;;  %2419 = vmatprep.subr.bf16.mxu0 %v3880_v2  ;;  %v3968_v1 = vld [vmem:[%s4356_s15 + $0x9a0] ss:$16 sps:$4 sm:$0xff]   ;;  %v3971_v2 = vld [vmem:[%s4356_s15 + $0x1a8] ss:$16 sps:$4 sm:$0xff]  }
  0x99   : > { %2462 = vmatprep.subr.bf16.mxu1 %v3883_v3  ;;  %v3976_v3 = vld [vmem:[%s4356_s15 + $0x984] ss:$16 sps:$4 sm:$0xff]  }
  0x9b   : > { %2420 = vmatpush2.bf16.msra.mxu0 %v3878_v4  ;;  %v3979_v4 = vld [vmem:[%s4356_s15 + $0x18c] ss:$16 sps:$4 sm:$0xff]  }
  0x9c   : > { %2463 = vmatpush2.bf16.msra.mxu1 %v3881_v5  ;;  %2421 = vmatprep.subr.bf16.mxu0 %v3886_v6  ;;  %v3974_v5 = vld [vmem:[%s4356_s15 + $0x980] ss:$16 sps:$4 sm:$0xff]   ;;  %v3977_v6 = vld [vmem:[%s4356_s15 + $0x188] ss:$16 sps:$4 sm:$0xff]  }
  0x9d   : > { %2464 = vmatprep.subr.bf16.mxu1 %v3889_v7  ;;  %v3982_v7 = vld [vmem:[%s4356_s15 + $0x964] ss:$16 sps:$4 sm:$0xff]  }
  0x9f   : > { %2422 = vmatpush2.bf16.msra.mxu0 %v3884_v8  ;;  %v3985_v8 = vld [vmem:[%s4356_s15 + $0x16c] ss:$16 sps:$4 sm:$0xff]  }
  0xa0   : > { %2465 = vmatpush2.bf16.msra.mxu1 %v3887_v9  ;;  %2423 = vmatprep.subr.bf16.mxu0 %v3892_v10  ;;  %v3980_v9 = vld [vmem:[%s4356_s15 + $0x960] ss:$16 sps:$4 sm:$0xff]   ;;  %v3983_v10 = vld [vmem:[%s4356_s15 + $0x168] ss:$16 sps:$4 sm:$0xff]  }
  0xa1   : > { %2466 = vmatprep.subr.bf16.mxu1 %v3895_v11  ;;  %v3988_v11 = vld [vmem:[%s4356_s15 + $0x944] ss:$16 sps:$4 sm:$0xff]  }
  0xa3   : > { %2424 = vmatpush2.bf16.msra.mxu0 %v3890_v12  ;;  %v3991_v12 = vld [vmem:[%s4356_s15 + $0x14c] ss:$16 sps:$4 sm:$0xff]  }
  0xa4   : > { %2467 = vmatpush2.bf16.msra.mxu1 %v3893_v13  ;;  %2425 = vmatprep.subr.bf16.mxu0 %v3898_v14  ;;  %v3986_v13 = vld [vmem:[%s4356_s15 + $0x940] ss:$16 sps:$4 sm:$0xff]   ;;  %v3989_v14 = vld [vmem:[%s4356_s15 + $0x148] ss:$16 sps:$4 sm:$0xff]  }
  0xa5   : > { %2468 = vmatprep.subr.bf16.mxu1 %v3901_v16  ;;  %v3994_v16 = vld [vmem:[%s4356_s15 + $0x924] ss:$16 sps:$4 sm:$0xff]  }
  0xa7   : > { %2426 = vmatpush2.bf16.msra.mxu0 %v3896_v17  ;;  %v3997_v17 = vld [vmem:[%s4356_s15 + $0x12c] ss:$16 sps:$4 sm:$0xff]  }
  0xa8   : > { %2469 = vmatpush2.bf16.msra.mxu1 %v3899_v18  ;;  %2481 = vmatprep.subr.bf16.mxu0 %v3910_v19  ;;  %v3992_v18 = vld [vmem:[%s4356_s15 + $0x920] ss:$16 sps:$4 sm:$0xff]   ;;  %v3995_v19 = vld [vmem:[%s4356_s15 + $0x128] ss:$16 sps:$4 sm:$0xff]  }
  0xa9   : > { %2524 = vmatprep.subr.bf16.mxu1 %v3913_v20  ;;  %v4000_v20 = vld [vmem:[%s4356_s15 + $0x904] ss:$16 sps:$4 sm:$0xff]  }
  0xaa   : > { %2428 = vmatmul.mubr.bf16.vlgmr.msra.gmra.mxu0 %v4507_v21 }
  0xab   : > { %2471 = vmatmul.mubr.bf16.vlgmr.msra.gmra.mxu1 %v3905_v22  ;;  %2482 = vmatpush1.bf16.msra.mxu0 %v3908_v23  ;;  %v4003_v22 = vld [vmem:[%s4356_s15 + $0x10c] ss:$16 sps:$4 sm:$0xff]   ;;  %v3998_v23 = vld [vmem:[%s4356_s15 + $0x900] ss:$16 sps:$4 sm:$0xff]  }
  0xac   : > { %2525 = vmatpush1.bf16.msra.mxu1 %v3911_v24  ;;  %2483 = vmatprep.subr.bf16.mxu0 %v3916_v25  ;;  %v4001_v24 = vld [vmem:[%s4356_s15 + $0x108] ss:$16 sps:$4 sm:$0xff]   ;;  %v4009_v25 = vld [vmem:[%s4356_s15 + $0x2ec] ss:$16 sps:$4 sm:$0xff]  }
  0xad   : > { %2526 = vmatprep.subr.bf16.mxu1 %v3919_v26  ;;  %2556 = vmatprep.mubr.bf16.mxu1 %v4411_v60  ;;  %v3934_v60 = vld [vmem:[%s4356_s15 + $0x864] ss:$16 sps:$4 sm:$0xff]   ;;  %v4012_v26 = vld [vmem:[%s4356_s15 + $0x4ec] ss:$16 sps:$4 sm:$0xff]  }
  0xae   : > { %2513 = vmatprep.mubr.bf16.mxu0 %v4520_v31 }
  0xaf   : > { %2484 = vmatpush1.bf16.msra.mxu0 %v3914_v27  ;;  %v4581_v27 = vld [vmem:[%s4358_s16 + $0x20] ss:$40 sps:$4 sm:$0xff]  }
  0xb0   : > { %2527 = vmatpush1.bf16.msra.mxu1 %v3917_v28  ;;  %2485 = vmatprep.subr.bf16.mxu0 %v3922_v29  ;;  %v4007_v28 = vld [vmem:[%s4356_s15 + $0x2e8] ss:$16 sps:$4 sm:$0xff]  }
  0xb1   : > { %2528 = vmatprep.subr.bf16.mxu1 %v3925_v30  ;;  %v4010_v29 = vld [vmem:[%s4356_s15 + $0x4e8] ss:$16 sps:$4 sm:$0xff]   ;;  %v4015_v30 = vld [vmem:[%s4356_s15 + $0x2cc] ss:$16 sps:$4 sm:$0xff]  }
  0xb3   : > { %2486 = vmatpush1.bf16.msra.mxu0 %v3920_v32  ;;  %v4018_v32 = vld [vmem:[%s4356_s15 + $0x4cc] ss:$16 sps:$4 sm:$0xff]  }
  0xb4   : > { %2529 = vmatpush1.bf16.msra.mxu1 %v3923_v33  ;;  %2487 = vmatprep.subr.bf16.mxu0 %v3928_v34  ;;  %v4013_v33 = vld [vmem:[%s4356_s15 + $0x2c8] ss:$16 sps:$4 sm:$0xff]  }
  0xb5   : > { %2530 = vmatprep.subr.bf16.mxu1 %v3931_v35  ;;  %v4016_v34 = vld [vmem:[%s4356_s15 + $0x4c8] ss:$16 sps:$4 sm:$0xff]   ;;  %v4021_v35 = vld [vmem:[%s4356_s15 + $0x2ac] ss:$16 sps:$4 sm:$0xff]  }
  0xb7   : > { %2488 = vmatpush1.bf16.msra.mxu0 %v3926_v36  ;;  %v4024_v36 = vld [vmem:[%s4356_s15 + $0x4ac] ss:$16 sps:$4 sm:$0xff]  }
  0xb8   : > { %2531 = vmatpush1.bf16.msra.mxu1 %v3929_v37  ;;  %2489 = vmatprep.subr.bf16.mxu0 %v3934_v60  ;;  %v4199_v37 = vld [vmem:[%s4358_s16 + $0xc] ss:$40 sps:$4 sm:$0xff]   ;;  %v4019_v60 = vld [vmem:[%s4356_s15 + $0x2a8] ss:$16 sps:$4 sm:$0xff]  }
  0xb9   : > { %2532 = vmatprep.subr.bf16.mxu1 %v3937_v38  ;;  %v4027_v38 = vld [vmem:[%s4356_s15 + $0x28c] ss:$16 sps:$4 sm:$0xff]  }
  0xbb   : > { %2490 = vmatpush1.bf16.msra.mxu0 %v3932_v39  ;;  %v4030_v39 = vld [vmem:[%s4356_s15 + $0x48c] ss:$16 sps:$4 sm:$0xff]  }
  0xbc   : > { %2533 = vmatpush1.bf16.msra.mxu1 %v3935_v40  ;;  %2491 = vmatprep.subr.bf16.mxu0 %v3940_v41  ;;  %v4025_v40 = vld [vmem:[%s4356_s15 + $0x288] ss:$16 sps:$4 sm:$0xff]  }
  0xbd   : > { %2534 = vmatprep.subr.bf16.mxu1 %v3943_v42  ;;  %v4028_v41 = vld [vmem:[%s4356_s15 + $0x488] ss:$16 sps:$4 sm:$0xff]   ;;  %v4036_v42 = vld [vmem:[%s4356_s15 + $0x46c] ss:$16 sps:$4 sm:$0xff]  }
  0xbf   : > { %2492 = vmatpush1.bf16.msra.mxu0 %v3938_v43  ;;  %v4031_v43 = vld [vmem:[%s4356_s15 + $0x268] ss:$16 sps:$4 sm:$0xff]  }
  0xc0   : > { %2535 = vmatpush1.bf16.msra.mxu1 %v3941_v44  ;;  %2493 = vmatprep.subr.bf16.mxu0 %v3946_v46  ;;  %v4034_v44 = vld [vmem:[%s4356_s15 + $0x468] ss:$16 sps:$4 sm:$0xff]   ;;  %v4039_v46 = vld [vmem:[%s4356_s15 + $0x24c] ss:$16 sps:$4 sm:$0xff]  }
  0xc1   : > { %2536 = vmatprep.subr.bf16.mxu1 %v3949_v47  ;;  %v4042_v47 = vld [vmem:[%s4356_s15 + $0x44c] ss:$16 sps:$4 sm:$0xff]  }
  0xc3   : > { %2494 = vmatpush1.bf16.msra.mxu0 %v3944_v48  ;;  %v4037_v48 = vld [vmem:[%s4356_s15 + $0x248] ss:$16 sps:$4 sm:$0xff]  }
  0xc4   : > { %2537 = vmatpush1.bf16.msra.mxu1 %v3947_v49  ;;  %2495 = vmatprep.subr.bf16.mxu0 %v3952_v50  ;;  %v4040_v49 = vld [vmem:[%s4356_s15 + $0x448] ss:$16 sps:$4 sm:$0xff]   ;;  %v4045_v50 = vld [vmem:[%s4356_s15 + $0x22c] ss:$16 sps:$4 sm:$0xff]  }
  0xc5   : > { %2538 = vmatprep.subr.bf16.mxu1 %v3955_v51  ;;  %v4048_v51 = vld [vmem:[%s4356_s15 + $0x42c] ss:$16 sps:$4 sm:$0xff]  }
  0xc7   : > { %2496 = vmatpush1.bf16.msra.mxu0 %v3950_v52  ;;  %v4043_v52 = vld [vmem:[%s4356_s15 + $0x228] ss:$16 sps:$4 sm:$0xff]  }
  0xc8   : > { %2539 = vmatpush1.bf16.msra.mxu1 %v3953_v53  ;;  %2497 = vmatprep.subr.bf16.mxu0 %v3958_v54  ;;  %v4046_v53 = vld [vmem:[%s4356_s15 + $0x428] ss:$16 sps:$4 sm:$0xff]   ;;  %v4051_v54 = vld [vmem:[%s4356_s15 + $0x20c] ss:$16 sps:$4 sm:$0xff]  }
  0xc9   : > { %2540 = vmatprep.subr.bf16.mxu1 %v3961_v55  ;;  %v4054_v55 = vld [vmem:[%s4356_s15 + $0x40c] ss:$16 sps:$4 sm:$0xff]  }
  0xcb   : > { %2498 = vmatpush2.bf16.msra.mxu0 %v3956_v56  ;;  %v4049_v56 = vld [vmem:[%s4356_s15 + $0x208] ss:$16 sps:$4 sm:$0xff]  }
  0xcc   : > { %2541 = vmatpush2.bf16.msra.mxu1 %v3959_v57  ;;  %2499 = vmatprep.subr.bf16.mxu0 %v3964_v58  ;;  %v4052_v57 = vld [vmem:[%s4356_s15 + $0x408] ss:$16 sps:$4 sm:$0xff]   ;;  %v4057_v58 = vld [vmem:[%s4356_s15 + $0x3ec] ss:$16 sps:$4 sm:$0xff]  }
  0xcd   : > { %2542 = vmatprep.subr.bf16.mxu1 %v3967_v59  ;;  %v4060_v59 = vld [vmem:[%s4356_s15 + $0x5ec] ss:$16 sps:$4 sm:$0xff]  }
  0xcf   : > { %2500 = vmatpush2.bf16.msra.mxu0 %v3962_v61  ;;  %v4055_v61 = vld [vmem:[%s4356_s15 + $0x3e8] ss:$16 sps:$4 sm:$0xff]  }
  0xd0   : > { %2543 = vmatpush2.bf16.msra.mxu1 %v3965_v62  ;;  %2501 = vmatprep.subr.bf16.mxu0 %v3970_v63  ;;  %v4058_v62 = vld [vmem:[%s4356_s15 + $0x5e8] ss:$16 sps:$4 sm:$0xff]   ;;  %v4063_v63 = vld [vmem:[%s4356_s15 + $0x3cc] ss:$16 sps:$4 sm:$0xff]  }
  0xd1   : > { %2544 = vmatprep.subr.bf16.mxu1 %v3973_v0  ;;  %v4066_v0 = vld [vmem:[%s4356_s15 + $0x5cc] ss:$16 sps:$4 sm:$0xff]  }
  0xd3   : > { %2502 = vmatpush2.bf16.msra.mxu0 %v3968_v1  ;;  %v4061_v1 = vld [vmem:[%s4356_s15 + $0x3c8] ss:$16 sps:$4 sm:$0xff]  }
  0xd4   : > { %2545 = vmatpush2.bf16.msra.mxu1 %v3971_v2  ;;  %2503 = vmatprep.subr.bf16.mxu0 %v3976_v3  ;;  %v4064_v2 = vld [vmem:[%s4356_s15 + $0x5c8] ss:$16 sps:$4 sm:$0xff]   ;;  %v4069_v3 = vld [vmem:[%s4356_s15 + $0x3ac] ss:$16 sps:$4 sm:$0xff]  }
  0xd5   : > { %2546 = vmatprep.subr.bf16.mxu1 %v3979_v4  ;;  %v4072_v4 = vld [vmem:[%s4356_s15 + $0x5ac] ss:$16 sps:$4 sm:$0xff]  }
  0xd7   : > { %2504 = vmatpush2.bf16.msra.mxu0 %v3974_v5  ;;  %v4067_v5 = vld [vmem:[%s4356_s15 + $0x3a8] ss:$16 sps:$4 sm:$0xff]  }
  0xd8   : > { %2547 = vmatpush2.bf16.msra.mxu1 %v3977_v6  ;;  %2505 = vmatprep.subr.bf16.mxu0 %v3982_v7  ;;  %v4070_v6 = vld [vmem:[%s4356_s15 + $0x5a8] ss:$16 sps:$4 sm:$0xff]   ;;  %v4075_v7 = vld [vmem:[%s4356_s15 + $0x38c] ss:$16 sps:$4 sm:$0xff]  }
  0xd9   : > { %2548 = vmatprep.subr.bf16.mxu1 %v3985_v8  ;;  %v4078_v8 = vld [vmem:[%s4356_s15 + $0x58c] ss:$16 sps:$4 sm:$0xff]  }
  0xdb   : > { %2506 = vmatpush2.bf16.msra.mxu0 %v3980_v9  ;;  %v4073_v9 = vld [vmem:[%s4356_s15 + $0x388] ss:$16 sps:$4 sm:$0xff]  }
  0xdc   : > { %2549 = vmatpush2.bf16.msra.mxu1 %v3983_v10  ;;  %2507 = vmatprep.subr.bf16.mxu0 %v3988_v11  ;;  %v4076_v10 = vld [vmem:[%s4356_s15 + $0x588] ss:$16 sps:$4 sm:$0xff]   ;;  %v4081_v11 = vld [vmem:[%s4356_s15 + $0x36c] ss:$16 sps:$4 sm:$0xff]  }
  0xdd   : > { %2550 = vmatprep.subr.bf16.mxu1 %v3991_v12  ;;  %v4084_v12 = vld [vmem:[%s4356_s15 + $0x56c] ss:$16 sps:$4 sm:$0xff]  }
  0xdf   : > { %2508 = vmatpush2.bf16.msra.mxu0 %v3986_v13  ;;  %v4079_v13 = vld [vmem:[%s4356_s15 + $0x368] ss:$16 sps:$4 sm:$0xff]  }
  0xe0   : > { %2551 = vmatpush2.bf16.msra.mxu1 %v3989_v14  ;;  %2509 = vmatprep.subr.bf16.mxu0 %v3994_v16  ;;  %v4082_v14 = vld [vmem:[%s4356_s15 + $0x568] ss:$16 sps:$4 sm:$0xff]   ;;  %v4087_v16 = vld [vmem:[%s4356_s15 + $0x34c] ss:$16 sps:$4 sm:$0xff]  }
  0xe1   : > { %2552 = vmatprep.subr.bf16.mxu1 %v3997_v17  ;;  %v4090_v17 = vld [vmem:[%s4356_s15 + $0x54c] ss:$16 sps:$4 sm:$0xff]  }
  0xe3   : > { %2510 = vmatpush2.bf16.msra.mxu0 %v3992_v18  ;;  %v4085_v18 = vld [vmem:[%s4356_s15 + $0x348] ss:$16 sps:$4 sm:$0xff]  }
  0xe4   : > { %2553 = vmatpush2.bf16.msra.mxu1 %v3995_v19  ;;  %2511 = vmatprep.subr.bf16.mxu0 %v4000_v20  ;;  %v4088_v19 = vld [vmem:[%s4356_s15 + $0x548] ss:$16 sps:$4 sm:$0xff]   ;;  %v4093_v20 = vld [vmem:[%s4356_s15 + $0x32c] ss:$16 sps:$4 sm:$0xff]  }
  0xe5   : > { %2554 = vmatprep.subr.bf16.mxu1 %v4003_v22  ;;  %v4096_v22 = vld [vmem:[%s4356_s15 + $0x52c] ss:$16 sps:$4 sm:$0xff]  }
  0xe7   : > { %2512 = vmatpush2.bf16.msra.mxu0 %v3998_v23  ;;  %v4091_v23 = vld [vmem:[%s4356_s15 + $0x328] ss:$16 sps:$4 sm:$0xff]  }
  0xe8   : > { %2555 = vmatpush2.bf16.msra.mxu1 %v4001_v24  ;;  %2567 = vmatprep.subr.bf16.mxu0 %v4009_v25  ;;  %v4094_v24 = vld [vmem:[%s4356_s15 + $0x528] ss:$16 sps:$4 sm:$0xff]   ;;  %v4099_v25 = vld [vmem:[%s4356_s15 + $0x30c] ss:$16 sps:$4 sm:$0xff]  }
  0xe9   : > { %2610 = vmatprep.subr.bf16.mxu1 %v4012_v26  ;;  %v4102_v26 = vld [vmem:[%s4356_s15 + $0x50c] ss:$16 sps:$4 sm:$0xff]  }
  0xea   : > { %2514 = vmatmul.mubr.bf16.vlgmr.msra.gmra.mxu0 %v4581_v27 }
  0xeb   : > { %2557 = vmatmul.mubr.bf16.vlgmr.msra.gmra.mxu1 %v4433_v15  ;;  %2568 = vmatpush1.bf16.msra.mxu0 %v4007_v28  ;;  %v4022_v15 = vld [vmem:[%s4356_s15 + $0x4a8] ss:$16 sps:$4 sm:$0xff]  }
  0xec   : > { %2611 = vmatpush1.bf16.msra.mxu1 %v4010_v29  ;;  %2569 = vmatprep.subr.bf16.mxu0 %v4015_v30  ;;  %v4097_v28 = vld [vmem:[%s4356_s15 + $0x308] ss:$16 sps:$4 sm:$0xff]   ;;  %v4105_v30 = vld [vmem:[%s4356_s15 + $0x6ec] ss:$16 sps:$4 sm:$0xff]  }
  0xed   : > { %2612 = vmatprep.subr.bf16.mxu1 %v4018_v32  ;;  %2599 = vmatprep.mubr.bf16.mxu0 %v4199_v37  ;;  %v4100_v29 = vld [vmem:[%s4356_s15 + $0x508] ss:$16 sps:$4 sm:$0xff]   ;;  %v4108_v32 = vld [vmem:[%s4356_s15 + $0x8ec] ss:$16 sps:$4 sm:$0xff]  }
  0xee   : > { %2642 = vmatprep.mubr.bf16.mxu1 %v4466_v45  ;;  %v4033_v45 = vld [vmem:[%s4356_s15 + $0x26c] ss:$16 sps:$4 sm:$0xff]   ;;  %v4200_v37 = vld [vmem:[%s4358_s16 + $0x8] ss:$40 sps:$4 sm:$0xff]  }
  0xef   : > { %2570 = vmatpush1.bf16.msra.mxu0 %v4013_v33  ;;  %v4103_v33 = vld [vmem:[%s4356_s15 + $0x6e8] ss:$16 sps:$4 sm:$0xff]  }
  0xf0   : > { %2613 = vmatpush1.bf16.msra.mxu1 %v4016_v34  ;;  %2571 = vmatprep.subr.bf16.mxu0 %v4021_v35  ;;  %v4106_v34 = vld [vmem:[%s4356_s15 + $0x8e8] ss:$16 sps:$4 sm:$0xff]   ;;  %v4111_v35 = vld [vmem:[%s4356_s15 + $0x6cc] ss:$16 sps:$4 sm:$0xff]  }
  0xf1   : > { %2614 = vmatprep.subr.bf16.mxu1 %v4024_v36  ;;  %v4114_v36 = vld [vmem:[%s4356_s15 + $0x8cc] ss:$16 sps:$4 sm:$0xff]  }
  0xf3   : > { %2572 = vmatpush1.bf16.msra.mxu0 %v4019_v60  ;;  %v4109_v60 = vld [vmem:[%s4356_s15 + $0x6c8] ss:$16 sps:$4 sm:$0xff]  }
  0xf4   : > { %2615 = vmatpush1.bf16.msra.mxu1 %v4022_v15  ;;  %2573 = vmatprep.subr.bf16.mxu0 %v4027_v38  ;;  %v4112_v15 = vld [vmem:[%s4356_s15 + $0x8c8] ss:$16 sps:$4 sm:$0xff]   ;;  %v4117_v38 = vld [vmem:[%s4356_s15 + $0x6ac] ss:$16 sps:$4 sm:$0xff]  }
  0xf5   : > { %2616 = vmatprep.subr.bf16.mxu1 %v4030_v39  ;;  %v4120_v39 = vld [vmem:[%s4356_s15 + $0x8ac] ss:$16 sps:$4 sm:$0xff]  }
  0xf7   : > { %2574 = vmatpush1.bf16.msra.mxu0 %v4025_v40  ;;  %v4201_v40 = vld [vmem:[%s4358_s16 + $0x1c] ss:$40 sps:$4 sm:$0xff]  }
  0xf8   : > { %2617 = vmatpush1.bf16.msra.mxu1 %v4028_v41  ;;  %2575 = vmatprep.subr.bf16.mxu0 %v4033_v45  ;;  %v4118_v41 = vld [vmem:[%s4356_s15 + $0x8a8] ss:$16 sps:$4 sm:$0xff]   ;;  %v4123_v45 = vld [vmem:[%s4356_s15 + $0x68c] ss:$16 sps:$4 sm:$0xff]  }
  0xf9   : > { %2618 = vmatprep.subr.bf16.mxu1 %v4036_v42  ;;  %v4126_v42 = vld [vmem:[%s4356_s15 + $0x88c] ss:$16 sps:$4 sm:$0xff]  }
  0xfb   : > { %2576 = vmatpush1.bf16.msra.mxu0 %v4031_v43  ;;  %v4121_v43 = vld [vmem:[%s4356_s15 + $0x688] ss:$16 sps:$4 sm:$0xff]  }
  0xfc   : > { %2619 = vmatpush1.bf16.msra.mxu1 %v4034_v44  ;;  %2577 = vmatprep.subr.bf16.mxu0 %v4039_v46  ;;  %v4124_v44 = vld [vmem:[%s4356_s15 + $0x888] ss:$16 sps:$4 sm:$0xff]   ;;  %v4132_v46 = vld [vmem:[%s4356_s15 + $0x86c] ss:$16 sps:$4 sm:$0xff]  }
  0xfd   : > { %2620 = vmatprep.subr.bf16.mxu1 %v4042_v47  ;;  %v4127_v47 = vld [vmem:[%s4356_s15 + $0x668] ss:$16 sps:$4 sm:$0xff]  }
  0xff   : > { %2578 = vmatpush1.bf16.msra.mxu0 %v4037_v48  ;;  %v4130_v48 = vld [vmem:[%s4356_s15 + $0x868] ss:$16 sps:$4 sm:$0xff]  }
 0x100   : > { %2621 = vmatpush1.bf16.msra.mxu1 %v4040_v49  ;;  %2579 = vmatprep.subr.bf16.mxu0 %v4045_v50  ;;  %v4135_v49 = vld [vmem:[%s4356_s15 + $0x64c] ss:$16 sps:$4 sm:$0xff]  }
 0x101   : > { %2622 = vmatprep.subr.bf16.mxu1 %v4048_v51  ;;  %v4138_v50 = vld [vmem:[%s4356_s15 + $0x84c] ss:$16 sps:$4 sm:$0xff]   ;;  %v4133_v51 = vld [vmem:[%s4356_s15 + $0x648] ss:$16 sps:$4 sm:$0xff]  }
 0x103   : > { %2580 = vmatpush1.bf16.msra.mxu0 %v4043_v52  ;;  %v4136_v52 = vld [vmem:[%s4356_s15 + $0x848] ss:$16 sps:$4 sm:$0xff]  }
 0x104   : > { %2623 = vmatpush1.bf16.msra.mxu1 %v4046_v53  ;;  %2581 = vmatprep.subr.bf16.mxu0 %v4051_v54  ;;  %v4141_v53 = vld [vmem:[%s4356_s15 + $0x62c] ss:$16 sps:$4 sm:$0xff]  }
 0x105   : > { %2624 = vmatprep.subr.bf16.mxu1 %v4054_v55  ;;  %v4144_v54 = vld [vmem:[%s4356_s15 + $0x82c] ss:$16 sps:$4 sm:$0xff]   ;;  %v4139_v55 = vld [vmem:[%s4356_s15 + $0x628] ss:$16 sps:$4 sm:$0xff]  }
 0x107   : > { %2582 = vmatpush1.bf16.msra.mxu0 %v4049_v56  ;;  %v4142_v56 = vld [vmem:[%s4356_s15 + $0x828] ss:$16 sps:$4 sm:$0xff]  }
 0x108   : > { %2625 = vmatpush1.bf16.msra.mxu1 %v4052_v57  ;;  %2583 = vmatprep.subr.bf16.mxu0 %v4057_v58  ;;  %v4147_v57 = vld [vmem:[%s4356_s15 + $0x60c] ss:$16 sps:$4 sm:$0xff]  }
 0x109   : > { %2626 = vmatprep.subr.bf16.mxu1 %v4060_v59  ;;  %v4150_v58 = vld [vmem:[%s4356_s15 + $0x80c] ss:$16 sps:$4 sm:$0xff]   ;;  %v4145_v59 = vld [vmem:[%s4356_s15 + $0x608] ss:$16 sps:$4 sm:$0xff]  }
 0x10b   : > { %2584 = vmatpush2.bf16.msra.mxu0 %v4055_v61  ;;  %v4148_v61 = vld [vmem:[%s4356_s15 + $0x808] ss:$16 sps:$4 sm:$0xff]  }
 0x10c   : > { %2627 = vmatpush2.bf16.msra.mxu1 %v4058_v62  ;;  %2585 = vmatprep.subr.bf16.mxu0 %v4063_v63  ;;  %v4153_v62 = vld [vmem:[%s4356_s15 + $0x7ec] ss:$16 sps:$4 sm:$0xff]  }
 0x10d   : > { %2628 = vmatprep.subr.bf16.mxu1 %v4066_v0  ;;  %v4156_v63 = vld [vmem:[%s4356_s15 + $0x9ec] ss:$16 sps:$4 sm:$0xff]   ;;  %v4151_v0 = vld [vmem:[%s4356_s15 + $0x7e8] ss:$16 sps:$4 sm:$0xff]  }
 0x10f   : > { %2586 = vmatpush2.bf16.msra.mxu0 %v4061_v1  ;;  %v4154_v1 = vld [vmem:[%s4356_s15 + $0x9e8] ss:$16 sps:$4 sm:$0xff]  }
 0x110   : > { %2629 = vmatpush2.bf16.msra.mxu1 %v4064_v2  ;;  %2587 = vmatprep.subr.bf16.mxu0 %v4069_v3  ;;  %v4159_v2 = vld [vmem:[%s4356_s15 + $0x7cc] ss:$16 sps:$4 sm:$0xff]  }
 0x111   : > { %2630 = vmatprep.subr.bf16.mxu1 %v4072_v4  ;;  %v4162_v3 = vld [vmem:[%s4356_s15 + $0x9cc] ss:$16 sps:$4 sm:$0xff]   ;;  %v4157_v4 = vld [vmem:[%s4356_s15 + $0x7c8] ss:$16 sps:$4 sm:$0xff]  }
 0x113   : > { %2588 = vmatpush2.bf16.msra.mxu0 %v4067_v5  ;;  %v4160_v5 = vld [vmem:[%s4356_s15 + $0x9c8] ss:$16 sps:$4 sm:$0xff]  }
 0x114   : > { %2631 = vmatpush2.bf16.msra.mxu1 %v4070_v6  ;;  %2589 = vmatprep.subr.bf16.mxu0 %v4075_v7  ;;  %v4165_v6 = vld [vmem:[%s4356_s15 + $0x7ac] ss:$16 sps:$4 sm:$0xff]  }
 0x115   : > { %2632 = vmatprep.subr.bf16.mxu1 %v4078_v8  ;;  %v4168_v7 = vld [vmem:[%s4356_s15 + $0x9ac] ss:$16 sps:$4 sm:$0xff]   ;;  %v4163_v8 = vld [vmem:[%s4356_s15 + $0x7a8] ss:$16 sps:$4 sm:$0xff]  }
 0x117   : > { %2590 = vmatpush2.bf16.msra.mxu0 %v4073_v9  ;;  %v4166_v9 = vld [vmem:[%s4356_s15 + $0x9a8] ss:$16 sps:$4 sm:$0xff]  }
 0x118   : > { %2633 = vmatpush2.bf16.msra.mxu1 %v4076_v10  ;;  %2591 = vmatprep.subr.bf16.mxu0 %v4081_v11  ;;  %v4171_v10 = vld [vmem:[%s4356_s15 + $0x78c] ss:$16 sps:$4 sm:$0xff]  }
 0x119   : > { %2634 = vmatprep.subr.bf16.mxu1 %v4084_v12  ;;  %v4174_v11 = vld [vmem:[%s4356_s15 + $0x98c] ss:$16 sps:$4 sm:$0xff]   ;;  %v4169_v12 = vld [vmem:[%s4356_s15 + $0x788] ss:$16 sps:$4 sm:$0xff]  }
 0x11b   : > { %2592 = vmatpush2.bf16.msra.mxu0 %v4079_v13  ;;  %v4172_v13 = vld [vmem:[%s4356_s15 + $0x988] ss:$16 sps:$4 sm:$0xff]  }
 0x11c   : > { %2635 = vmatpush2.bf16.msra.mxu1 %v4082_v14  ;;  %2593 = vmatprep.subr.bf16.mxu0 %v4087_v16  ;;  %v4177_v14 = vld [vmem:[%s4356_s15 + $0x76c] ss:$16 sps:$4 sm:$0xff]  }
 0x11d   : > { %2636 = vmatprep.subr.bf16.mxu1 %v4090_v17  ;;  %v4180_v16 = vld [vmem:[%s4356_s15 + $0x96c] ss:$16 sps:$4 sm:$0xff]   ;;  %v4175_v17 = vld [vmem:[%s4356_s15 + $0x768] ss:$16 sps:$4 sm:$0xff]  }
 0x11f   : > { %2594 = vmatpush2.bf16.msra.mxu0 %v4085_v18  ;;  %v4178_v18 = vld [vmem:[%s4356_s15 + $0x968] ss:$16 sps:$4 sm:$0xff]  }
 0x120   : > { %2637 = vmatpush2.bf16.msra.mxu1 %v4088_v19  ;;  %2595 = vmatprep.subr.bf16.mxu0 %v4093_v20  ;;  %v4183_v19 = vld [vmem:[%s4356_s15 + $0x74c] ss:$16 sps:$4 sm:$0xff]  }
 0x121   : > { %2638 = vmatprep.subr.bf16.mxu1 %v4096_v22  ;;  %v4186_v20 = vld [vmem:[%s4356_s15 + $0x94c] ss:$16 sps:$4 sm:$0xff]   ;;  %v4181_v22 = vld [vmem:[%s4356_s15 + $0x748] ss:$16 sps:$4 sm:$0xff]  }
 0x123   : > { %2596 = vmatpush2.bf16.msra.mxu0 %v4091_v23  ;;  %v4184_v23 = vld [vmem:[%s4356_s15 + $0x948] ss:$16 sps:$4 sm:$0xff]  }
 0x124   : > { %2639 = vmatpush2.bf16.msra.mxu1 %v4094_v24  ;;  %2597 = vmatprep.subr.bf16.mxu0 %v4099_v25  ;;  %v4189_v24 = vld [vmem:[%s4356_s15 + $0x72c] ss:$16 sps:$4 sm:$0xff]  }
 0x125   : > { %2640 = vmatprep.subr.bf16.mxu1 %v4102_v26  ;;  %v4192_v25 = vld [vmem:[%s4356_s15 + $0x92c] ss:$16 sps:$4 sm:$0xff]   ;;  %v4187_v26 = vld [vmem:[%s4356_s15 + $0x728] ss:$16 sps:$4 sm:$0xff]  }
 0x127   : > { %2598 = vmatpush2.bf16.msra.mxu0 %v4097_v28  ;;  %v4190_v28 = vld [vmem:[%s4356_s15 + $0x928] ss:$16 sps:$4 sm:$0xff]  }
 0x128   : > { %2641 = vmatpush2.bf16.msra.mxu1 %v4100_v29  ;;  %2653 = vmatprep.subr.bf16.mxu0 %v4105_v30  ;;  %v4195_v29 = vld [vmem:[%s4356_s15 + $0x70c] ss:$16 sps:$4 sm:$0xff]  }
 0x129   : > { %2696 = vmatprep.subr.bf16.mxu1 %v4108_v32  ;;  %v4198_v30 = vld [vmem:[%s4356_s15 + $0x90c] ss:$16 sps:$4 sm:$0xff]   ;;  %v4193_v32 = vld [vmem:[%s4356_s15 + $0x708] ss:$16 sps:$4 sm:$0xff]  }
 0x12a   : > { %2600 = vmatmul.mubr.bf16.vlgmr.msra.gmra.mxu0 %v4200_v37 }
 0x12b   : > { %2643 = vmatmul.mubr.bf16.vlgmr.msra.gmra.mxu1 %v4507_v21  ;;  %2654 = vmatpush1.bf16.msra.mxu0 %v4103_v33  ;;  %v4115_v21 = vld [vmem:[%s4356_s15 + $0x6a8] ss:$16 sps:$4 sm:$0xff]   ;;  %v2386_v37 = vpop.f32.mrf.mxu1 }
 0x12c   : > { %2697 = vmatpush1.bf16.msra.mxu1 %v4106_v34  ;;  %2655 = vmatprep.subr.bf16.mxu0 %v4111_v35  ;;  %v4196_v33 = vld [vmem:[%s4356_s15 + $0x908] ss:$16 sps:$4 sm:$0xff]   ;;  %v2343_v35 = vpop.f32.mrf.mxu0 }
 0x12d   : > { %2698 = vmatprep.subr.bf16.mxu1 %v4114_v36  ;;  %2685 = vmatprep.mubr.bf16.mxu0 %v4201_v40  ;;  %v4202_v34 = vld [vmem:[%s4358_s16 + $0x18] ss:$40 sps:$4 sm:$0xff]  }
 0x12e   : > { %2728 = vmatprep.mubr.bf16.mxu1 %v4520_v31  ;;  %v4129_v31 = vld [vmem:[%s4356_s15 + $0x66c] ss:$16 sps:$4 sm:$0xff]   ;;  %v2345_v36 = vpop.f32.mrf.mxu0 }
 0x12f   : > { %2656 = vmatpush1.bf16.msra.mxu0 %v4109_v60 }
 0x130   : > { %2699 = vmatpush1.bf16.msra.mxu1 %v4112_v15  ;;  %2657 = vmatprep.subr.bf16.mxu0 %v4117_v38  ;;  %v2347_v60 = vpop.f32.mrf.mxu0  ;;  %v2388_v15 = vpop.f32.mrf.mxu1 }
 0x131   : > { %2700 = vmatprep.subr.bf16.mxu1 %v4120_v39 }
 0x132   : > { %v2349_v38 = vpop.f32.mrf.mxu0  ;;  %v2390_v39 = vpop.f32.mrf.mxu1 }
 0x133   : > { %2658 = vmatpush1.bf16.msra.mxu0 %v4115_v21 }
 0x134   : > { %2701 = vmatpush1.bf16.msra.mxu1 %v4118_v41  ;;  %2659 = vmatprep.subr.bf16.mxu0 %v4123_v45  ;;  %v2392_v21 = vpop.f32.mrf.mxu1 }
 0x135   : > { %2702 = vmatprep.subr.bf16.mxu1 %v4126_v42  ;;  %v2387_v42 = vadd.f32 %v2386_v37, %v2343_v35 }
 0x137   : > { %2660 = vmatpush1.bf16.msra.mxu0 %v4121_v43 }
 0x138   : > { %2703 = vmatpush1.bf16.msra.mxu1 %v4124_v44  ;;  %2661 = vmatprep.subr.bf16.mxu0 %v4129_v31  ;;  %v2389_v44 = vadd.f32 %v2388_v15, %v2345_v36  ;;  %v323_v36 = vld [vmem:[#allocation2 + $0x18] sm:$0xff] }
 0x139   : > { %2704 = vmatprep.subr.bf16.mxu1 %v4132_v46 }
 0x13b   : > { %2662 = vmatpush1.bf16.msra.mxu0 %v4127_v47  ;;  %v2391_v47 = vadd.f32 %v2390_v39, %v2347_v60 }
 0x13c   : > { %2705 = vmatpush1.bf16.msra.mxu1 %v4130_v48  ;;  %2663 = vmatprep.subr.bf16.mxu0 %v4135_v49 }
 0x13d   : > { %2706 = vmatprep.subr.bf16.mxu1 %v4138_v50 }
 0x13f   : > { %2664 = vmatpush1.bf16.msra.mxu0 %v4133_v51 }
 0x140   : > { %2707 = vmatpush1.bf16.msra.mxu1 %v4136_v52  ;;  %2665 = vmatprep.subr.bf16.mxu0 %v4141_v53  ;;  %v321_v53 = vld [vmem:[#allocation2 + $0x30] sm:$0xff] }
 0x141   : > { %2708 = vmatprep.subr.bf16.mxu1 %v4144_v54 }
 0x143   : > { %2666 = vmatpush1.bf16.msra.mxu0 %v4139_v55 }
 0x144   : > { %2709 = vmatpush1.bf16.msra.mxu1 %v4142_v56  ;;  %2667 = vmatprep.subr.bf16.mxu0 %v4147_v57 }
 0x145   : > { %2710 = vmatprep.subr.bf16.mxu1 %v4150_v58  ;;  %v322_v58 = vld [vmem:[#allocation2] sm:$0xff] }
 0x147   : > { %2668 = vmatpush1.bf16.msra.mxu0 %v4145_v59 }
 0x148   : > { %2711 = vmatpush1.bf16.msra.mxu1 %v4148_v61  ;;  %2669 = vmatprep.subr.bf16.mxu0 %v4153_v62 }
 0x149   : > { %2712 = vmatprep.subr.bf16.mxu1 %v4156_v63 }
 0x14b   : > { %2670 = vmatpush2.bf16.msra.mxu0 %v4151_v0 }
 0x14c   : > { %2713 = vmatpush2.bf16.msra.mxu1 %v4154_v1  ;;  %2671 = vmatprep.subr.bf16.mxu0 %v4159_v2  ;;  %v325_v1 = vld [vmem:[#allocation2 + $0x8] sm:$0xff] }
 0x14d   : > { %2714 = vmatprep.subr.bf16.mxu1 %v4162_v3 }
 0x14f   : > { %2672 = vmatpush2.bf16.msra.mxu0 %v4157_v4 }
 0x150   : > { %2715 = vmatpush2.bf16.msra.mxu1 %v4160_v5  ;;  %2673 = vmatprep.subr.bf16.mxu0 %v4165_v6  ;;  %v326_v6 = vld [vmem:[#allocation2 + $0x20] sm:$0xff] }
 0x151   : > { %2716 = vmatprep.subr.bf16.mxu1 %v4168_v7 }
 0x153   : > { %2674 = vmatpush2.bf16.msra.mxu0 %v4163_v8 }
 0x154   : > { %2717 = vmatpush2.bf16.msra.mxu1 %v4166_v9  ;;  %2675 = vmatprep.subr.bf16.mxu0 %v4171_v10 }
 0x155   : > { %2718 = vmatprep.subr.bf16.mxu1 %v4174_v11 }
 0x157   : > { %2676 = vmatpush2.bf16.msra.mxu0 %v4169_v12 }
 0x158   : > { %2719 = vmatpush2.bf16.msra.mxu1 %v4172_v13  ;;  %2677 = vmatprep.subr.bf16.mxu0 %v4177_v14 }
 0x159   : > { %2720 = vmatprep.subr.bf16.mxu1 %v4180_v16 }
 0x15b   : > { %2678 = vmatpush2.bf16.msra.mxu0 %v4175_v17 }
 0x15c   : > { %2721 = vmatpush2.bf16.msra.mxu1 %v4178_v18  ;;  %2679 = vmatprep.subr.bf16.mxu0 %v4183_v19 }
 0x15d   : > { %2722 = vmatprep.subr.bf16.mxu1 %v4186_v20 }
 0x15f   : > { %2680 = vmatpush2.bf16.msra.mxu0 %v4181_v22 }
 0x160   : > { %2723 = vmatpush2.bf16.msra.mxu1 %v4184_v23  ;;  %2681 = vmatprep.subr.bf16.mxu0 %v4189_v24 }
 0x161   : > { %2724 = vmatprep.subr.bf16.mxu1 %v4192_v25 }
 0x163   : > { %2682 = vmatpush2.bf16.msra.mxu0 %v4187_v26 }
 0x164   : > { %2725 = vmatpush2.bf16.msra.mxu1 %v4190_v28  ;;  %2683 = vmatprep.subr.bf16.mxu0 %v4195_v29 }
 0x165   : > { %2726 = vmatprep.subr.bf16.mxu1 %v4198_v30 }
 0x167   : > { %2684 = vmatpush2.bf16.msra.mxu0 %v4193_v32 }
 0x168   : > { %2727 = vmatpush2.bf16.msra.mxu1 %v4196_v33 }
 0x16a   : > { %2686 = vmatmul.mubr.bf16.vlgmr.msra.gmra.mxu0 %v4202_v34  ;;  %v2429_v40 = vpop.f32.mrf.mxu0 }
 0x16b   : > { %2729 = vmatmul.mubr.bf16.vlgmr.msra.gmra.mxu1 %v4581_v27  ;;  %v2472_v45 = vpop.f32.mrf.mxu1  ;;  %v2430_v31 = vadd.f32 %v2429_v40, %v2387_v42  ;;  %v2393_v27 = vadd.f32 %v2392_v21, %v2349_v38  ;;  %v324_v40 = vld [vmem:[#allocation2 + $0x10] sm:$0xff] }
 0x16c   : > { %v2431_v41 = vpop.f32.mrf.mxu0 }
 0x16d   : > { %v2474_v46 = vpop.f32.mrf.mxu1  ;;  %v2432_v48 = vadd.f32 %v2431_v41, %v2389_v44  ;;  %v2473_v50 = vadd.f32 %v2472_v45, %v2430_v31  ;;  %v327_v31 = vld [vmem:[#allocation2 + $0x28] sm:$0xff] }
 0x16e   : > { %v2433_v43 = vpop.f32.mrf.mxu0 }
 0x16f   : > { %v2434_v51 = vadd.f32 %v2433_v43, %v2391_v47  ;;  %v2476_v52 = vpop.f32.mrf.mxu1  ;;  %v2475_v55 = vadd.f32 %v2474_v46, %v2432_v48 }
 0x170   : > { %v2435_v49 = vpop.f32.mrf.mxu0 }
 0x171   : > { %v2436_v56 = vadd.f32 %v2435_v49, %v2393_v27  ;;  %v2477_v61 = vadd.f32 %v2476_v52, %v2434_v51  ;;  %v2478_v0 = vpop.f32.mrf.mxu1  ;;  %v328_v27 = vld [vmem:[#allocation2 + $0x38] sm:$0xff] }
 0x173   : > { %v2479_v3 = vadd.f32 %v2478_v0, %v2436_v56 }
 0x1aa   : > { %v2515_v54 = vpop.f32.mrf.mxu0 }
 0x1ab   : > { %v2516_v57 = vadd.f32 %v2515_v54, %v2473_v50  ;;  %v2558_v11 = vpop.f32.mrf.mxu1 }
 0x1ac   : > { %v2517_v59 = vpop.f32.mrf.mxu0 }
 0x1ad   : > { %v2739_v62 = vadd.f32 %v2516_v57, %v321_v53  ;;  %v2518_v63 = vadd.f32 %v2517_v59, %v2475_v55  ;;  %v2560_v12 = vpop.f32.mrf.mxu1 }
 0x1ae   : > { %v2519_v2 = vpop.f32.mrf.mxu0 }
 0x1af   : > { %2747 = vst [vmem:[#allocation2 + $0x30] sm:$0xff] %v2739_v62  ;;  %v2740_v4 = vadd.f32 %v2518_v63, %v322_v58  ;;  %v2520_v5 = vadd.f32 %v2519_v2, %v2477_v61  ;;  %v2562_v13 = vpop.f32.mrf.mxu1 }
 0x1b0   : > { %v2521_v7 = vpop.f32.mrf.mxu0 }
 0x1b1   : > { %2748 = vst [vmem:[#allocation2] sm:$0xff] %v2740_v4  ;;  %v2743_v8 = vadd.f32 %v2520_v5, %v325_v1  ;;  %v2522_v9 = vadd.f32 %v2521_v7, %v2479_v3  ;;  %v2564_v14 = vpop.f32.mrf.mxu1 }
 0x1b3   : > { %2751 = vst [vmem:[#allocation2 + $0x8] sm:$0xff] %v2743_v8  ;;  %v2744_v10 = vadd.f32 %v2522_v9, %v326_v6 }
 0x1b5   : > { %2752 = vst [vmem:[#allocation2 + $0x20] sm:$0xff] %v2744_v10 }
 0x1ea   : > { %v2601_v16 = vpop.f32.mrf.mxu0 }
 0x1eb   : > { %v2644_v17 = vpop.f32.mrf.mxu1  ;;  %v2602_v23 = vadd.f32 %v2601_v16, %v2558_v11 }
 0x1ec   : > { %v2603_v18 = vpop.f32.mrf.mxu0 }
 0x1ed   : > { %v2646_v19 = vpop.f32.mrf.mxu1  ;;  %v2604_v24 = vadd.f32 %v2603_v18, %v2560_v12  ;;  %v2645_v28 = vadd.f32 %v2644_v17, %v2602_v23 }
 0x1ee   : > { %v2605_v20 = vpop.f32.mrf.mxu0 }
 0x1ef   : > { %v2648_v22 = vpop.f32.mrf.mxu1  ;;  %v2606_v29 = vadd.f32 %v2605_v20, %v2562_v13  ;;  %v2647_v33 = vadd.f32 %v2646_v19, %v2604_v24 }
 0x1f0   : > { %v2607_v25 = vpop.f32.mrf.mxu0 }
 0x1f1   : > { %v2650_v26 = vpop.f32.mrf.mxu1  ;;  %v2608_v34 = vadd.f32 %v2607_v25, %v2564_v14  ;;  %v2649_v15 = vadd.f32 %v2648_v22, %v2606_v29 }
 0x1f3   : > { %v2651_v45 = vadd.f32 %v2650_v26, %v2608_v34 }
 0x22a   : > { %v2687_v30 = vpop.f32.mrf.mxu0 }
 0x22b   : > { %v2730_v32 = vpop.f32.mrf.mxu1  ;;  %v2688_v35 = vadd.f32 %v2687_v30, %v2645_v28 }
 0x22c   : > { %v2689_v37 = vpop.f32.mrf.mxu0 }
 0x22d   : > { %v2732_v60 = vpop.f32.mrf.mxu1  ;;  %v2731_v38 = vadd.f32 %v2730_v32, %v2688_v35  ;;  %v2690_v39 = vadd.f32 %v2689_v37, %v2647_v33 }
 0x22e   : > { %v2691_v21 = vpop.f32.mrf.mxu0 }
 0x22f   : > { %v2734_v41 = vpop.f32.mrf.mxu1  ;;  %v2741_v42 = vadd.f32 %v2731_v38, %v323_v36  ;;  %v2733_v43 = vadd.f32 %v2732_v60, %v2690_v39  ;;  %v2692_v44 = vadd.f32 %v2691_v21, %v2649_v15 }
 0x230   : > { %v2693_v46 = vpop.f32.mrf.mxu0 }
 0x231   : > { %2749 = vst [vmem:[#allocation2 + $0x18] sm:$0xff] %v2741_v42  ;;  %v2742_v47 = vadd.f32 %v2733_v43, %v324_v40  ;;  %v2735_v48 = vadd.f32 %v2734_v41, %v2692_v44  ;;  %v2694_v49 = vadd.f32 %v2693_v46, %v2651_v45  ;;  %v2736_v50 = vpop.f32.mrf.mxu1 }
 0x233   : > { %2750 = vst [vmem:[#allocation2 + $0x10] sm:$0xff] %v2742_v47  ;;  %v2745_v51 = vadd.f32 %v2735_v48, %v327_v31  ;;  %v2737_v52 = vadd.f32 %v2736_v50, %v2694_v49  ;;  %2758 = sbr.rel (%p3577_p11) target bundleno = 808 (0x328), region = 71 }
 0x235   : > { %2753 = vst [vmem:[#allocation2 + $0x28] sm:$0xff] %v2745_v51  ;;  %v2746_v53 = vadd.f32 %v2737_v52, %v328_v27 }
 0x237   : > { %2754 = vst [vmem:[#allocation2 + $0x38] sm:$0xff] %v2746_v53 }
 0x238   : > { %v4203_v54 = vld [vmem:[%s4846_s3 + $0x78] sm:$0xff]   ;;  %v4207_v58 = vld [vmem:[%s4846_s3 + $0x70] sm:$0xff]   ;;  %v4211_v63 = vld [vmem:[%s4846_s3 + $0x68] sm:$0xff]   ;;  %v2769_v10 = vlaneseq }
 0x239   : > { %v4204_v55 = vld [vmem:[%s4846_s3 + $0xf8] sm:$0xff]   ;;  %3617 = vmatprep.subr.bf16.mxu0 %v4203_v54  ;;  %v4208_v59 = vld [vmem:[%s4846_s3 + $0xf0] sm:$0xff]   ;;  %v4212_v0 = vld [vmem:[%s4846_s3 + $0xe8] sm:$0xff]  }
 0x23a   : > { %v4205_v56 = vld [vmem:[%s4846_s3 + $0x38] sm:$0xff]   ;;  %3639 = vmatprep.subr.bf16.mxu1 %v4204_v55  ;;  %v4209_v61 = vld [vmem:[%s4846_s3 + $0x30] sm:$0xff]   ;;  %v4213_v1 = vld [vmem:[%s4846_s3 + $0x28] sm:$0xff]   ;;  %v2770_v16 = vshrl.u32 %v2769_v10, 7 }
 0x23b   : > { %v4206_v57 = vld [vmem:[%s4846_s3 + $0xb8] sm:$0xff]   ;;  %3618 = vmatpush3.bf16.msra.mxu0 %v4205_v56  ;;  %v4210_v62 = vld [vmem:[%s4846_s3 + $0xb0] sm:$0xff]   ;;  %v4214_v2 = vld [vmem:[%s4846_s3 + $0xa8] sm:$0xff]  }
 0x23c   : > { %3640 = vmatpush3.bf16.msra.mxu1 %v4206_v57  ;;  %3619 = vmatprep.subr.bf16.mxu0 %v4207_v58  ;;  %v4215_v3 = vld [vmem:[%s4846_s3 + $0x60] sm:$0xff]   ;;  %v4219_v7 = vld [vmem:[%s4846_s3 + $0x58] sm:$0xff]   ;;  %v4223_v12 = vld [vmem:[%s4846_s3 + $0x50] sm:$0xff]   ;;  %v2775_v22 = vsub.s32 1, %v2770_v16  ;;  %v2783_v24 = vsub.s32 3, %v2770_v16  ;;  %v2771_v26 = vsub.s32 0, %v2770_v16 }
 0x23d   : > { %3641 = vmatprep.subr.bf16.mxu1 %v4208_v59  ;;  %v4216_v4 = vld [vmem:[%s4846_s3 + $0xe0] sm:$0xff]   ;;  %v4220_v8 = vld [vmem:[%s4846_s3 + $0xd8] sm:$0xff]   ;;  %v4224_v13 = vld [vmem:[%s4846_s3 + $0xd0] sm:$0xff]   ;;  %v2779_v29 = vsub.s32 2, %v2770_v16 }
 0x23e   : > { %v4217_v5 = vld [vmem:[%s4846_s3 + $0x20] sm:$0xff]   ;;  %v4221_v9 = vld [vmem:[%s4846_s3 + $0x18] sm:$0xff]   ;;  %v4225_v14 = vld [vmem:[%s4846_s3 + $0x10] sm:$0xff]  }
 0x23f   : > { %3620 = vmatpush3.bf16.msra.mxu0 %v4209_v61  ;;  %v4218_v6 = vld [vmem:[%s4846_s3 + $0xa0] sm:$0xff]   ;;  %v4222_v11 = vld [vmem:[%s4846_s3 + $0x98] sm:$0xff]   ;;  %v4226_v17 = vld [vmem:[%s4846_s3 + $0x90] sm:$0xff]  }
 0x240   : > { %3642 = vmatpush3.bf16.msra.mxu1 %v4210_v62  ;;  %3621 = vmatprep.subr.bf16.mxu0 %v4211_v63  ;;  %v4227_v18 = vld [vmem:[%s4846_s3 + $0x48] sm:$0xff]   ;;  %v4231_v25 = vld [vmem:[%s4846_s3 + $0x40] sm:$0xff]   ;;  %v2762_v37 = vld [vmem:[#allocation2 + $0x10] sm:$0xff] }
 0x241   : > { %3643 = vmatprep.subr.bf16.mxu1 %v4212_v0  ;;  %v4228_v19 = vld [vmem:[%s4846_s3 + $0xc8] sm:$0xff]   ;;  %v4232_v28 = vld [vmem:[%s4846_s3 + $0xc0] sm:$0xff]   ;;  %v2766_v60 = vld [vmem:[#allocation2 + $0x38] sm:$0xff] }
 0x242   : > { %v4229_v20 = vld [vmem:[%s4846_s3 + $0x8] sm:$0xff]   ;;  %v4233_v30 = vld [vmem:[%s4846_s3] sm:$0xff]   ;;  %v2759_v38 = vld [vmem:[#allocation2 + $0x30] sm:$0xff] }
 0x243   : > { %3622 = vmatpush3.bf16.msra.mxu0 %v4213_v1  ;;  %v4230_v23 = vld [vmem:[%s4846_s3 + $0x88] sm:$0xff]   ;;  %v4234_v32 = vld [vmem:[%s4846_s3 + $0x80] sm:$0xff]   ;;  %v2761_v41 = vld [vmem:[#allocation2 + $0x18] sm:$0xff] }
 0x244   : > { %3644 = vmatpush3.bf16.msra.mxu1 %v4214_v2  ;;  %3623 = vmatprep.subr.bf16.mxu0 %v4215_v3  ;;  %v2760_v33 = vld [vmem:[#allocation2] sm:$0xff]  ;;  %v2763_v21 = vld [vmem:[#allocation2 + $0x8] sm:$0xff] }
 0x245   : > { %3645 = vmatprep.subr.bf16.mxu1 %v4216_v4  ;;  %v2764_v34 = vld [vmem:[#allocation2 + $0x20] sm:$0xff]  ;;  %v2765_v45 = vld [vmem:[#allocation2 + $0x28] sm:$0xff] }
 0x246   : > { %v2767_v35 = vld [vmem:[%s4845_s2] sm:$0xf] }
 0x247   : > { %3624 = vmatpush3.bf16.msra.mxu0 %v4217_v5  ;;  %v2776_v36 = vrot.slane %v2767_v35, %v2775_v22  ;;  %v2784_v15 = vrot.slane %v2767_v35, %v2783_v24  ;;  %v2772_v39 = vrot.slane %v2767_v35, %v2771_v26  ;;  %v2780_v40 = vrot.slane %v2767_v35, %v2779_v29  ;;  %v3578_v0 = vld [vmem:[%s4847_s4] ss:$0 sm:$0xff] }
 0x248   : > { %3646 = vmatpush3.bf16.msra.mxu1 %v4218_v6  ;;  %3625 = vmatprep.subr.bf16.mxu0 %v4219_v7 }
 0x249   : > { %3647 = vmatprep.subr.bf16.mxu1 %v4220_v8  ;;  %v2790_v42 = vadd.f32 %v2776_v36, %v2760_v33  ;;  %v2794_v43 = vadd.f32 %v2776_v36, %v2764_v34  ;;  %v2792_v44 = vadd.f32 %v2784_v15, %v2762_v37  ;;  %v2796_v31 = vadd.f32 %v2784_v15, %v2766_v60 }
 0x24a   : > { %v2789_v46 = vadd.f32 %v2772_v39, %v2759_v38  ;;  %v2793_v47 = vadd.f32 %v2772_v39, %v2763_v21  ;;  %v2791_v48 = vadd.f32 %v2780_v40, %v2761_v41  ;;  %v2795_v49 = vadd.f32 %v2780_v40, %v2765_v45 }
 0x24b   : > { %3626 = vmatpush3.bf16.msra.mxu0 %v4221_v9  ;;  %v2798_v27 = vmax.f32 %v2790_v42, 0.0  ;;  %v2802_v50 = vmax.f32 %v2794_v43, 0.0  ;;  %v2800_v51 = vmax.f32 %v2792_v44, 0.0  ;;  %v2804_v52 = vmax.f32 %v2796_v31, 0.0 }
 0x24c   : > { %3648 = vmatpush3.bf16.msra.mxu1 %v4222_v11  ;;  %3627 = vmatprep.subr.bf16.mxu0 %v4223_v12  ;;  %v2797_v53 = vmax.f32 %v2789_v46, 0.0  ;;  %v2801_v54 = vmax.f32 %v2793_v47, 0.0  ;;  %v2799_v55 = vmax.f32 %v2791_v48, 0.0  ;;  %v2803_v56 = vmax.f32 %v2795_v49, 0.0 }
 0x24d   : > { %3649 = vmatprep.subr.bf16.mxu1 %v4224_v13  ;;  %v2806_v57 = vpack.c.bf16 %v2802_v50, %v2798_v27  ;;  %v2808_v58 = vpack.c.bf16 %v2804_v52, %v2800_v51 }
 0x24e   : > { %v2805_v59 = vpack.c.bf16 %v2801_v54, %v2797_v53  ;;  %v2807_v61 = vpack.c.bf16 %v2803_v56, %v2799_v55 }
 0x24f   : > { %3628 = vmatpush3.bf16.msra.mxu0 %v4225_v14  ;;  %3104 = vmatprep.mubr.bf16.mxu0 %v2806_v57 }
 0x250   : > { %3650 = vmatpush3.bf16.msra.mxu1 %v4226_v17  ;;  %3629 = vmatprep.subr.bf16.mxu0 %v4227_v18 }
 0x251   : > { %3651 = vmatprep.subr.bf16.mxu1 %v4228_v19  ;;  %3145 = vmatprep.mubr.bf16.mxu1 %v2808_v58 }
 0x253   : > { %3630 = vmatpush3.bf16.msra.mxu0 %v4229_v20 }
 0x254   : > { %3652 = vmatpush3.bf16.msra.mxu1 %v4230_v23  ;;  %3631 = vmatprep.subr.bf16.mxu0 %v4231_v25 }
 0x255   : > { %3653 = vmatprep.subr.bf16.mxu1 %v4232_v28 }
 0x257   : > { %3632 = vmatpush3.bf16.msra.mxu0 %v4233_v30 }
 0x258   : > { %3654 = vmatpush3.bf16.msra.mxu1 %v4234_v32 }
 0x25a   : > { %3105 = vmatmul.mubr.bf16.vlgmr.msra.gmra.mxu0 %v2805_v59 }
 0x25b   : > { %3146 = vmatmul.mubr.bf16.vlgmr.msra.gmra.mxu1 %v2807_v61 }
 0x31a   : > { %v3633_v62 = vpop.f32.mrf.mxu0 }
 0x31b   : > { %v3655_v63 = vpop.f32.mrf.mxu1 }
 0x31c   : > { %v3634_v1 = vpop.f32.mrf.mxu0 }
 0x31d   : > { %v3656_v2 = vpop.f32.mrf.mxu1  ;;  %v3635_v3 = vadd.f32 %v3634_v1, %v3633_v62 }
 0x31e   : > { %v3636_v4 = vpop.f32.mrf.mxu0  ;;  %v3657_v7 = vadd.f32 %v3656_v2, %v3655_v63 }
 0x31f   : > { %v3658_v5 = vpop.f32.mrf.mxu1  ;;  %v3107_v6 = vadd.f32 %v3635_v3, %v3578_v0 }
 0x320   : > { %v3637_v8 = vpop.f32.mrf.mxu0 }
 0x321   : > { %v3659_v9 = vpop.f32.mrf.mxu1  ;;  %v3148_v10 = vadd.f32 %v3657_v7, %v3107_v6  ;;  %v3638_v11 = vadd.f32 %v3637_v8, %v3636_v4 }
 0x322   : > { %v3660_v13 = vadd.f32 %v3659_v9, %v3658_v5 }
 0x323   : > { %3154 = vst [vmem:[%s4848_s5] sm:$0xff] %v3148_v10  ;;  %v3110_v12 = vadd.f32 %v3638_v11, %v3578_v0 }
 0x325   : > { %v3151_v14 = vadd.f32 %v3660_v13, %v3110_v12 }
 0x327   : > { %3155 = vst [vmem:[%s4848_s5 + $0x8] sm:$0xff] %v3151_v14 }
 0x328 PF: > { %s15_s22 = sadd.s32 1, %s4273_s22   ;;  %s4849_s18 = smov %s4261_s19 }
 0x329   : > { %p12_p12 = scmp.ge.s32.totalorder %s15_s22, 7   ;;  %s4850_s19 = smov %s4341_s26 }
 0x32a   : > { %s4851_s20 = smov %s4269_s21  ;;  %s4852_s21 = smov %s4854_s23 }
 0x32b   :  { %14 = sbr.rel (!%p12_p12) target bundleno = 3 (0x3), region = 109 }

</bundles_post_ra>
